<compile_context>
chip_gen: v7x
topology: tpu7x:2x2x1
jax: 0.10.0
libtpu: 0.0.40
codegen_flags: <defaults>
</compile_context>

<pallas_src>
import jax
import jax.numpy as jnp
from jax.experimental import pallas as pl
from jax.experimental.pallas import tpu as pltpu  # noqa: F401  (TPU backend)


FEATURE_DIM = 512          # CLIP ViT-B/32 embedding dim per modality
NUM_CLASSES = 128          # small, lane-aligned stand-in for 1000
VOCAB = 100
SEQ_LEN = 77               # CLIP context length
IMG_IN = 3 * 32 * 32       # flattened small NCHW image


# ----------------------------------------------------------------------------
# Fused Pallas kernel: encoder stand-ins + concat-free classifier
# ----------------------------------------------------------------------------
def _fused_transfer_kernel(img_ref, cnt_ref, emb_ref, w_img_ref, w_txt_ref,
                           w_cls_ref, b_ref, o_ref):
    """logits = concat(img_flat @ Wi, (cnt @ E) @ Wt) @ Wc + b, fully fused.

    All matmuls hit the MXU with bf16 operands / f32 accumulation; the
    intermediate (B, 512) features stay on-chip.
    """
    # ---- "encode_image" stand-in: (B, 3072) @ (3072, 512) -> (B, 512) f32
    img_feat = jnp.dot(img_ref[...], w_img_ref[...],
                       preferred_element_type=jnp.float32)

    # ---- "encode_text" stand-in: mean-pool as counts @ tok_emb, then project
    pooled = jnp.dot(cnt_ref[...], emb_ref[...],
                     preferred_element_type=jnp.float32)             # (B, 512)
    txt_feat = jnp.dot(pooled.astype(jnp.bfloat16), w_txt_ref[...],
                       preferred_element_type=jnp.float32)           # (B, 512)

    # ---- classifier: concat + Linear(1024, C), concat never materialized.
    # Static in-kernel slices of w_cls at row 512 (sublane-aligned, zero-cost).
    d = img_feat.shape[1]
    acc = jnp.dot(img_feat.astype(jnp.bfloat16), w_cls_ref[:d, :],
                  preferred_element_type=jnp.float32)
    acc = acc + jnp.dot(txt_feat.astype(jnp.bfloat16), w_cls_ref[d:, :],
                        preferred_element_type=jnp.float32)
    o_ref[...] = (acc + b_ref[...]).astype(o_ref.dtype)


# ----------------------------------------------------------------------------
# Wrapper
# ----------------------------------------------------------------------------
def _token_counts(tokens):
    """(B, SEQ) int tokens -> (B, VOCAB) normalized counts; counts @ tok_emb
    equals the mean over gathered embeddings."""
    one_hot = jax.nn.one_hot(tokens, VOCAB, dtype=jnp.float32)       # (B, S, V)
    return one_hot.sum(axis=1) / float(SEQ_LEN)                      # (B, V)


def transfer_model_forward(params, image, tokens):
    """image: (B, 3, 32, 32) NCHW float32; tokens: (B, SEQ_LEN) int32."""
    B = image.shape[0]
    num_classes = params["w_cls"].shape[1]

    img_flat = image.reshape(B, -1).astype(jnp.bfloat16)             # (B, 3072)
    counts = _token_counts(tokens).astype(jnp.bfloat16)              # (B, VOCAB)
    bias2d = params["b_cls"].reshape(1, num_classes)                 # (1, C) f32

    # Advisory cost hint for XLA's scheduler around the custom call.
    flops = 2 * B * (IMG_IN * FEATURE_DIM            # image projection
                     + VOCAB * FEATURE_DIM           # pooled embedding
                     + FEATURE_DIM * FEATURE_DIM     # text projection
                     + 2 * FEATURE_DIM * num_classes)  # classifier
    bytes_accessed = (
        img_flat.size * 2 + counts.size * 2
        + params["tok_emb"].size * 2 + params["w_img_proj"].size * 2
        + params["w_txt_proj"].size * 2 + params["w_cls"].size * 2
        + bias2d.size * 4 + B * num_classes * 4)
    cost = pl.CostEstimate(flops=flops, transcendentals=0,
                           bytes_accessed=bytes_accessed)

    return pl.pallas_call(
        _fused_transfer_kernel,
        out_shape=jax.ShapeDtypeStruct((B, num_classes), jnp.float32),
        in_specs=[
            pl.BlockSpec((B, IMG_IN), lambda: (0, 0)),                     # img_flat
            pl.BlockSpec((B, VOCAB), lambda: (0, 0)),                      # counts
            pl.BlockSpec((VOCAB, FEATURE_DIM), lambda: (0, 0)),            # tok_emb
            pl.BlockSpec((IMG_IN, FEATURE_DIM), lambda: (0, 0)),           # w_img_proj
            pl.BlockSpec((FEATURE_DIM, FEATURE_DIM), lambda: (0, 0)),      # w_txt_proj
            pl.BlockSpec((2 * FEATURE_DIM, num_classes), lambda: (0, 0)),  # w_cls (whole)
            pl.BlockSpec((1, num_classes), lambda: (0, 0)),                # bias
        ],
        out_specs=pl.BlockSpec((B, num_classes), lambda: (0, 0)),
        cost_estimate=cost,
    )(img_flat, counts, params["tok_emb"], params["w_img_proj"],
      params["w_txt_proj"], params["w_cls"], bias2d)


# ----------------------------------------------------------------------------
# Params (weights stored in bf16, bias in f32)
# ----------------------------------------------------------------------------
def init_params(key):
    kimg, ktxt, kemb, kw, kb = jax.random.split(key, 5)
    bf16 = jnp.bfloat16
    return {
        # synthetic "encode_image" projection
        "w_img_proj": (jax.random.normal(kimg, (IMG_IN, FEATURE_DIM), jnp.float32)
                       * 0.02).astype(bf16),
        # synthetic "encode_text": embedding table + projection
        "tok_emb": (jax.random.normal(kemb, (VOCAB, FEATURE_DIM), jnp.float32)
                    * 0.02).astype(bf16),
        "w_txt_proj": (jax.random.normal(ktxt, (FEATURE_DIM, FEATURE_DIM), jnp.float32)
                       * 0.02).astype(bf16),
        # classifier: nn.Linear(1024, num_classes), stored as (1024, C)
        "w_cls": (jax.random.normal(kw, (2 * FEATURE_DIM, NUM_CLASSES), jnp.float32)
                  * 0.02).astype(bf16),
        "b_cls": jax.random.normal(kb, (NUM_CLASSES,), jnp.float32) * 0.02,
    }


# ----------------------------------------------------------------------------
# Plain-JAX reference (same bf16-rounded operands, f32 accumulation)
# ----------------------------------------------------------------------------
def _reference_forward(params, image, tokens):
    f32 = jnp.float32
    B = image.shape[0]
    img_flat = image.reshape(B, -1).astype(jnp.bfloat16).astype(f32)
    counts = _token_counts(tokens).astype(jnp.bfloat16).astype(f32)

    w_img = params["w_img_proj"].astype(f32)
    tok_emb = params["tok_emb"].astype(f32)
    w_txt = params["w_txt_proj"].astype(f32)
    w_cls = params["w_cls"].astype(f32)
    b = params["b_cls"].astype(f32)

    img_feat = img_flat @ w_img
    pooled = counts @ tok_emb                      # == mean of gathered embeddings
    txt_feat = pooled.astype(jnp.bfloat16).astype(f32) @ w_txt
    feats = jnp.concatenate(
        [img_feat.astype(jnp.bfloat16).astype(f32),
         txt_feat.astype(jnp.bfloat16).astype(f32)], axis=1)
    return feats @ w_cls + b


if __name__ == "__main__":
    key = jax.random.PRNGKey(0)
    kparam, kimg, ktok = jax.random.split(key, 3)

    params = init_params(kparam)

    B = 2
    image = jax.random.normal(kimg, (B, 3, 32, 32), jnp.float32)      # NCHW
    tokens = jax.random.randint(ktok, (B, SEQ_LEN), 0, VOCAB, jnp.int32)

    fwd = jax.jit(transfer_model_forward)
    out = fwd(params, image, tokens)
    jax.block_until_ready(out)

    ref = _reference_forward(params, image, tokens)
    assert out.shape == (B, NUM_CLASSES)
    assert jnp.allclose(out, ref, atol=2e-2, rtol=2e-2), (
        float(jnp.max(jnp.abs(out - ref))))

    print("KERNEL_OK")
</pallas_src>

<mosaic_0001>
module attributes {stable_mosaic.version = 11 : i64} {
  func.func @_fused_transfer_kernel(%arg0: memref<2x3072xbf16, #tpu.memory_space<vmem>>, %arg1: memref<2x100xbf16, #tpu.memory_space<vmem>>, %arg2: memref<100x512xbf16, #tpu.memory_space<vmem>>, %arg3: memref<3072x512xbf16, #tpu.memory_space<vmem>>, %arg4: memref<512x512xbf16, #tpu.memory_space<vmem>>, %arg5: memref<1024x128xbf16, #tpu.memory_space<vmem>>, %arg6: memref<1x128xf32, #tpu.memory_space<vmem>>, %arg7: memref<2x128xf32, #tpu.memory_space<vmem>>) attributes {dimension_semantics = [], scalar_prefetch = 0 : i64, scratch_operands = 0 : i64, tpu.core_type = #tpu.core_type<tc>} {
    %c0 = arith.constant 0 : index
    %c0_0 = arith.constant 0 : index
    %0 = vector.load %arg0[%c0, %c0_0] : memref<2x3072xbf16, #tpu.memory_space<vmem>>, vector<2x3072xbf16>
    %c0_1 = arith.constant 0 : index
    %c0_2 = arith.constant 0 : index
    %1 = vector.load %arg3[%c0_1, %c0_2] : memref<3072x512xbf16, #tpu.memory_space<vmem>>, vector<3072x512xbf16>
    %cst = arith.constant dense<0.000000e+00> : vector<2x512xf32>
    %2 = tpu.matmul %0, %1, %cst {dimension_numbers = #tpu.dot_dimension_numbers<[1], [0], [0], [1], [0, 0, 1, 1], [], []>} : vector<2x3072xbf16>, vector<3072x512xbf16>, vector<2x512xf32> -> vector<2x512xf32>
    %c0_3 = arith.constant 0 : index
    %c0_4 = arith.constant 0 : index
    %3 = vector.load %arg1[%c0_3, %c0_4] : memref<2x100xbf16, #tpu.memory_space<vmem>>, vector<2x100xbf16>
    %c0_5 = arith.constant 0 : index
    %c0_6 = arith.constant 0 : index
    %4 = vector.load %arg2[%c0_5, %c0_6] : memref<100x512xbf16, #tpu.memory_space<vmem>>, vector<100x512xbf16>
    %cst_7 = arith.constant dense<0.000000e+00> : vector<2x512xf32>
    %5 = tpu.matmul %3, %4, %cst_7 {dimension_numbers = #tpu.dot_dimension_numbers<[1], [0], [0], [1], [0, 0, 1, 1], [], []>} : vector<2x100xbf16>, vector<100x512xbf16>, vector<2x512xf32> -> vector<2x512xf32>
    %6 = arith.truncf %5 : vector<2x512xf32> to vector<2x512xbf16>
    %c0_8 = arith.constant 0 : index
    %c0_9 = arith.constant 0 : index
    %7 = vector.load %arg4[%c0_8, %c0_9] : memref<512x512xbf16, #tpu.memory_space<vmem>>, vector<512x512xbf16>
    %cst_10 = arith.constant dense<0.000000e+00> : vector<2x512xf32>
    %8 = tpu.matmul %6, %7, %cst_10 {dimension_numbers = #tpu.dot_dimension_numbers<[1], [0], [0], [1], [0, 0, 1, 1], [], []>} : vector<2x512xbf16>, vector<512x512xbf16>, vector<2x512xf32> -> vector<2x512xf32>
    %9 = arith.truncf %2 : vector<2x512xf32> to vector<2x512xbf16>
    %c0_11 = arith.constant 0 : index
    %c0_12 = arith.constant 0 : index
    %10 = vector.load %arg5[%c0_11, %c0_12] : memref<1024x128xbf16, #tpu.memory_space<vmem>>, vector<512x128xbf16>
    %cst_13 = arith.constant dense<0.000000e+00> : vector<2x128xf32>
    %11 = tpu.matmul %9, %10, %cst_13 {dimension_numbers = #tpu.dot_dimension_numbers<[1], [0], [0], [1], [0, 0, 1, 1], [], []>} : vector<2x512xbf16>, vector<512x128xbf16>, vector<2x128xf32> -> vector<2x128xf32>
    %12 = arith.truncf %8 : vector<2x512xf32> to vector<2x512xbf16>
    %c512 = arith.constant 512 : index
    %c0_14 = arith.constant 0 : index
    %13 = vector.load %arg5[%c512, %c0_14] : memref<1024x128xbf16, #tpu.memory_space<vmem>>, vector<512x128xbf16>
    %cst_15 = arith.constant dense<0.000000e+00> : vector<2x128xf32>
    %14 = tpu.matmul %12, %13, %cst_15 {dimension_numbers = #tpu.dot_dimension_numbers<[1], [0], [0], [1], [0, 0, 1, 1], [], []>} : vector<2x512xbf16>, vector<512x128xbf16>, vector<2x128xf32> -> vector<2x128xf32>
    %15 = arith.addf %11, %14 : vector<2x128xf32>
    %c0_16 = arith.constant 0 : index
    %c0_17 = arith.constant 0 : index
    %16 = vector.load %arg6[%c0_16, %c0_17] : memref<1x128xf32, #tpu.memory_space<vmem>>, vector<1x128xf32>
    %17 = vector.broadcast %16 : vector<1x128xf32> to vector<2x128xf32>
    %18 = arith.addf %15, %17 : vector<2x128xf32>
    %c0_18 = arith.constant 0 : index
    %c0_19 = arith.constant 0 : index
    %19 = vector.load %arg7[%c0_18, %c0_19] : memref<2x128xf32, #tpu.memory_space<vmem>>, vector<2x128xf32>
    tpu.vector_store %arg7[%c0_18, %c0_19], %18 {strides = array<i32>} : memref<2x128xf32, #tpu.memory_space<vmem>>, vector<2x128xf32>,
    return
  }
}

</mosaic_0001>

<bundles_post_ra>
// kernel: transfer_model_forward.1
= control target key start
LH: loop header
LB: loop body
LE: loop exit
PB: predicated region body
PF: predicated region fallthrough
CT: control target
= control target key end

     0   :  { %12 = vsyncpa [#allocation3], 0  ;;  %s10845_s0 = inlined_call_operand.vmem [shape: bf16[2,3072], index: 0, kind: input, shape index: {}]   ;;  %s10846_s1 = inlined_call_operand.vmem [shape: bf16[2,100], index: 1, kind: input, shape index: {}]   ;;  %s10847_s2 = inlined_call_operand.hbm [shape: bf16[100,512], index: 2, kind: input, shape index: {}]   ;;  %s10848_s3 = inlined_call_operand.hbm [shape: bf16[3072,512], index: 3, kind: input, shape index: {}]   ;;  %s10849_s4 = inlined_call_operand.hbm [shape: bf16[512,512], index: 4, kind: input, shape index: {}]   ;;  %s10850_s5 = inlined_call_operand.hbm [shape: bf16[1024,128], index: 5, kind: input, shape index: {}]   ;;  %s10851_s6 = inlined_call_operand.hbm [shape: f32[1,128], index: 6, kind: input, shape index: {}]   ;;  %s10852_s7 = inlined_call_operand.hbm [shape: f32[2,128], index: 7, kind: output, shape index: {}]  }
   0x1   :  { %13 = vsyncpa [#allocation6], 0 }
   0x2   :  { %14 = vsyncpa [#allocation9], 0 }
   0x3   :  { %15 = vsyncpa [#allocation4], 0  ;;  %s10543_s24 = smov [#allocation5]   ;;  %s10544_s26 = smov [#allocation8]  }
   0x4   :  { %s37_s25 = sshll.u32 %s10543_s24, 4  ;;  %s61_s27 = sshll.u32 %s10544_s26, 4  ;;  %s38_s25 = int_to_ptr.vmem [resolvable:$true] %s37_s25  ;;  %s10595_s27 = int_to_ptr.vmem [resolvable:$true] %s61_s27 }
   0x5   :  { %s10403_s30 = scalar_lea.hbm %s10848_s3, 98304 }
   0x6   :  { %p10404_p0 = scmp.ne.s32.totalorder %s10848_s3, %s10403_s30  ;;  %p10407_p1 = scmp.lt.u32.totalorder %s10403_s30, %s10848_s3 }
   0x8   :  { %p10409_p2 = pnand %p10407_p1, %p10404_p0 }
   0xa   :  { %10412 = shalt.err (!%p10409_p2)
}
   0xb   :  { %s10413_s12 = scalar_lea.vmem %s38_s25, 98304  ;;  %p10418_p4 = scmp.lt.s32.totalorder %s38_s25, %s38_s25 }
   0xc   :  { %p10414_p3 = scmp.ne.s32.totalorder %s38_s25, %s10413_s12  ;;  %p10419_p5 = scmp.lt.s32.totalorder %s10413_s12, %s10413_s12 }
   0xe   :  { %p10420_p6 = por %p10419_p5, %p10418_p4 }
  0x10   :  { %p10421_p7 = pnand %p10420_p6, %p10414_p3 }
  0x12   :  { %10424 = shalt.err (!%p10421_p7)
}
  0x13   :  { %s10545_s13 = smov 256   ;;  %s10546_s14 = smov 16  }
  0x14   :  { %43 = dma.hbm_to_vmem [thread:$0]  %s10848_s3, 98304, %s38_s25, [#allocation6], %s10545_s13, %s10545_s13, %s10546_s14  }
  0x15   :  { %s10425_s19 = scalar_lea.hbm %s10850_s5, 8192 }
  0x16   :  { %p10426_p8 = scmp.ne.s32.totalorder %s10850_s5, %s10425_s19  ;;  %p10429_p9 = scmp.lt.u32.totalorder %s10425_s19, %s10850_s5 }
  0x18   :  { %p10431_p10 = pnand %p10429_p9, %p10426_p8 }
  0x1a   :  { %10434 = shalt.err (!%p10431_p10)
}
  0x1b   :  { %s10435_s24 = scalar_lea.vmem %s10595_s27, 8192  ;;  %p10440_p12 = scmp.lt.s32.totalorder %s10595_s27, %s10595_s27 }
  0x1c   :  { %p10436_p11 = scmp.ne.s32.totalorder %s10595_s27, %s10435_s24  ;;  %p10441_p13 = scmp.lt.s32.totalorder %s10435_s24, %s10435_s24 }
  0x1e   :  { %p10442_p0 = por %p10441_p13, %p10440_p12 }
  0x20   :  { %p10443_p1 = pnand %p10442_p0, %p10436_p11 }
  0x22   :  { %10446 = shalt.err (!%p10443_p1)
}
  0x23   :  { %s10547_s3 = smov 64   ;;  %s10548_s25 = smov 4  }
  0x24   :  { %67 = dma.hbm_to_vmem [thread:$0]  %s10850_s5, 8192, %s10595_s27, [#allocation9], %s10547_s3, %s10547_s3, %s10548_s25  }
  0x25   :  { %s10549_s29 = smov [#allocation2]   ;;  %s10550_s8 = smov [#allocation7]  }
  0x26   :  { %s25_s30 = sshll.u32 %s10549_s29, 4  ;;  %s49_s9 = sshll.u32 %s10550_s8, 4  ;;  %s26_s30 = int_to_ptr.vmem [resolvable:$true] %s25_s30  ;;  %s10629_s9 = int_to_ptr.vmem [resolvable:$true] %s49_s9 }
  0x27   :  { %s10447_s12 = scalar_lea.hbm %s10847_s2, 3328 }
  0x28   :  { %p10448_p2 = scmp.ne.s32.totalorder %s10847_s2, %s10447_s12  ;;  %p10451_p3 = scmp.lt.u32.totalorder %s10447_s12, %s10847_s2 }
  0x2a   :  { %p10453_p4 = pnand %p10451_p3, %p10448_p2 }
  0x2c   :  { %10456 = shalt.err (!%p10453_p4)
}
  0x2d   :  { %s10457_s5 = scalar_lea.vmem %s26_s30, 3328  ;;  %p10462_p6 = scmp.lt.s32.totalorder %s26_s30, %s26_s30 }
  0x2e   :  { %p10458_p5 = scmp.ne.s32.totalorder %s26_s30, %s10457_s5  ;;  %p10463_p7 = scmp.lt.s32.totalorder %s10457_s5, %s10457_s5 }
  0x30   :  { %p10464_p8 = por %p10463_p7, %p10462_p6 }
  0x32   :  { %p10465_p9 = pnand %p10464_p8, %p10458_p5 }
  0x34   :  { %10468 = shalt.err (!%p10465_p9)
}
  0x35   :  { %31 = dma.hbm_to_vmem [thread:$0]  %s10847_s2, 3328, %s26_s30, [#allocation3], %s10545_s13, %s10545_s13, %s10546_s14  }
  0x36   :  { %s10469_s22 = scalar_lea.hbm %s10849_s4, 16384 }
  0x37   :  { %p10470_p10 = scmp.ne.s32.totalorder %s10849_s4, %s10469_s22  ;;  %p10473_p11 = scmp.lt.u32.totalorder %s10469_s22, %s10849_s4 }
  0x39   :  { %p10475_p12 = pnand %p10473_p11, %p10470_p10 }
  0x3b   :  { %10478 = shalt.err (!%p10475_p12)
}
  0x3c   :  { %s10479_s26 = scalar_lea.vmem %s10629_s9, 16384  ;;  %p10484_p0 = scmp.lt.s32.totalorder %s10629_s9, %s10629_s9 }
  0x3d   :  { %p10480_p13 = scmp.ne.s32.totalorder %s10629_s9, %s10479_s26  ;;  %p10485_p1 = scmp.lt.s32.totalorder %s10479_s26, %s10479_s26 }
  0x3f   :  { %p10486_p2 = por %p10485_p1, %p10484_p0 }
  0x41   :  { %p10487_p3 = pnand %p10486_p2, %p10480_p13 }
  0x43   :  { %10490 = shalt.err (!%p10487_p3)
}
  0x44   :  { %55 = dma.hbm_to_vmem [thread:$0]  %s10849_s4, 16384, %s10629_s9, [#allocation6], %s10545_s13, %s10545_s13, %s10546_s14  }
  0x45   :  { %s10551_s29 = smov [#allocation10]   ;;  %s10491_s11 = scalar_lea.hbm %s10851_s6, 16 }
  0x46   :  { %s74_s30 = sshll.u32 %s10551_s29, 4  ;;  %p10492_p4 = scmp.ne.s32.totalorder %s10851_s6, %s10491_s11  ;;  %s75_s30 = int_to_ptr.vmem [resolvable:$true] %s74_s30 }
  0x47   :  { %p10495_p5 = scmp.lt.u32.totalorder %s10491_s11, %s10851_s6 }
  0x49   :  { %p10497_p6 = pnand %p10495_p5, %p10492_p4 }
  0x4b   :  { %10500 = shalt.err (!%p10497_p6)
}
  0x4c   :  { %s10501_s18 = scalar_lea.vmem %s75_s30, 16  ;;  %s10505_s4 = scalar_lea.vmem %s75_s30, 32 }
  0x4d   :  { %p10502_p7 = scmp.ne.s32.totalorder %s75_s30, %s10501_s18  ;;  %p10506_p8 = scmp.lt.s32.totalorder %s75_s30, %s75_s30 }
  0x4e   :  { %p10507_p9 = scmp.lt.s32.totalorder %s10505_s4, %s10501_s18 }
  0x50   :  { %p10508_p10 = por %p10507_p9, %p10506_p8 }
  0x52   :  { %p10509_p11 = pnand %p10508_p10, %p10502_p7 }
  0x54   :  { %10512 = shalt.err (!%p10509_p11)
}
  0x55   :  { %77 = dma.hbm_to_vmem [thread:$0]  %s10851_s6, 16, %s75_s30, [#allocation9]  }
  0x56   :  { %10535 = dma.done.wait [#allocation3], 3328  }
  0x57   :  { %10536 = vsyncadd [#allocation3], 4294963968 }
  0x58   :  { %10537 = dma.done.wait [#allocation6], 114688  }
  0x59   :  { %10538 = vsyncadd [#allocation6], 4294852608 }
  0x5a   :  { %10539 = dma.done.wait [#allocation9], 8208  }
  0x5b   :  { %10540 = vsyncadd [#allocation9], 4294959088  ;;  %v8950_v0 = vld [vmem:[#allocation5 + $0x4] ss:$16 sps:$4 sm:$0xff]   ;;  %v8952_v1 = vld [vmem:[#allocation5 + $0xc] ss:$16 sps:$4 sm:$0xff]   ;;  %v872_v38 = vlaneseq }
  0x5c   :  { %4879 = vmatprep.subr.bf16.mxu0 %v8950_v0  ;;  %v8954_v2 = vld [vmem:[#allocation5] ss:$16 sps:$4 sm:$0xff]   ;;  %v8955_v3 = vld [vmem:[#allocation5 + $0x8] ss:$16 sps:$4 sm:$0xff]   ;;  %5371 = vmatprep.subr.bf16.mxu1 %v8952_v1  ;;  %v8956_v4 = vld [vmem:[#allocation5 + $0x24] ss:$16 sps:$4 sm:$0xff]  }
  0x5d   :  { %4880 = vmatpush1.bf16.msra.mxu0 %v8954_v2  ;;  %5372 = vmatpush1.bf16.msra.mxu1 %v8955_v3  ;;  %v8958_v5 = vld [vmem:[#allocation5 + $0x2c] ss:$16 sps:$4 sm:$0xff]   ;;  %v8960_v6 = vld [vmem:[#allocation5 + $0x20] ss:$16 sps:$4 sm:$0xff]   ;;  %v8961_v7 = vld [vmem:[#allocation5 + $0x28] ss:$16 sps:$4 sm:$0xff]  }
  0x5e   :  { %4881 = vmatprep.subr.bf16.mxu0 %v8956_v4  ;;  %5373 = vmatprep.subr.bf16.mxu1 %v8958_v5  ;;  %v8962_v8 = vld [vmem:[#allocation5 + $0x44] ss:$16 sps:$4 sm:$0xff]   ;;  %v8964_v9 = vld [vmem:[#allocation5 + $0x4c] ss:$16 sps:$4 sm:$0xff]   ;;  %v8966_v10 = vld [vmem:[#allocation5 + $0x40] ss:$16 sps:$4 sm:$0xff]  }
  0x5f   :  { %v8967_v11 = vld [vmem:[#allocation5 + $0x48] ss:$16 sps:$4 sm:$0xff]   ;;  %v8968_v12 = vld [vmem:[#allocation5 + $0x64] ss:$16 sps:$4 sm:$0xff]   ;;  %v8970_v13 = vld [vmem:[#allocation5 + $0x6c] ss:$16 sps:$4 sm:$0xff]  }
  0x60   :  { %v8972_v14 = vld [vmem:[#allocation5 + $0x60] ss:$16 sps:$4 sm:$0xff]   ;;  %v8973_v15 = vld [vmem:[#allocation5 + $0x68] ss:$16 sps:$4 sm:$0xff]   ;;  %v8974_v16 = vld [vmem:[#allocation5 + $0x84] ss:$16 sps:$4 sm:$0xff]  }
  0x61   :  { %4882 = vmatpush1.bf16.msra.mxu0 %v8960_v6  ;;  %5374 = vmatpush1.bf16.msra.mxu1 %v8961_v7  ;;  %v8976_v17 = vld [vmem:[#allocation5 + $0x8c] ss:$16 sps:$4 sm:$0xff]   ;;  %v8978_v18 = vld [vmem:[#allocation5 + $0x80] ss:$16 sps:$4 sm:$0xff]   ;;  %v8979_v19 = vld [vmem:[#allocation5 + $0x88] ss:$16 sps:$4 sm:$0xff]  }
  0x62   :  { %4883 = vmatprep.subr.bf16.mxu0 %v8962_v8  ;;  %5375 = vmatprep.subr.bf16.mxu1 %v8964_v9  ;;  %v8980_v20 = vld [vmem:[#allocation5 + $0xa4] ss:$16 sps:$4 sm:$0xff]   ;;  %v8982_v21 = vld [vmem:[#allocation5 + $0xac] ss:$16 sps:$4 sm:$0xff]   ;;  %v8984_v22 = vld [vmem:[#allocation5 + $0xa0] ss:$16 sps:$4 sm:$0xff]  }
  0x63   :  { %v8985_v23 = vld [vmem:[#allocation5 + $0xa8] ss:$16 sps:$4 sm:$0xff]   ;;  %v8986_v24 = vld [vmem:[#allocation5 + $0xc4] ss:$16 sps:$4 sm:$0xff]   ;;  %v8988_v25 = vld [vmem:[#allocation5 + $0xcc] ss:$16 sps:$4 sm:$0xff]  }
  0x64   :  { %v8990_v26 = vld [vmem:[#allocation5 + $0xc0] ss:$16 sps:$4 sm:$0xff]   ;;  %v8991_v27 = vld [vmem:[#allocation5 + $0xc8] ss:$16 sps:$4 sm:$0xff]   ;;  %v8992_v28 = vld [vmem:[#allocation5 + $0xe4] ss:$16 sps:$4 sm:$0xff]  }
  0x65   :  { %4884 = vmatpush1.bf16.msra.mxu0 %v8966_v10  ;;  %5376 = vmatpush1.bf16.msra.mxu1 %v8967_v11  ;;  %v8994_v29 = vld [vmem:[#allocation5 + $0xec] ss:$16 sps:$4 sm:$0xff]   ;;  %v8996_v30 = vld [vmem:[#allocation5 + $0xe0] ss:$16 sps:$4 sm:$0xff]   ;;  %v8997_v31 = vld [vmem:[#allocation5 + $0xe8] ss:$16 sps:$4 sm:$0xff]  }
  0x66   :  { %4885 = vmatprep.subr.bf16.mxu0 %v8968_v12  ;;  %5377 = vmatprep.subr.bf16.mxu1 %v8970_v13  ;;  %v8998_v32 = vld [vmem:[#allocation5 + $0x104] ss:$16 sps:$4 sm:$0xff]   ;;  %v9000_v33 = vld [vmem:[#allocation5 + $0x10c] ss:$16 sps:$4 sm:$0xff]   ;;  %v9002_v34 = vld [vmem:[#allocation5 + $0x100] ss:$16 sps:$4 sm:$0xff]  }
  0x67   :  { %v9003_v35 = vld [vmem:[#allocation5 + $0x108] ss:$16 sps:$4 sm:$0xff]   ;;  %v10552_v36 = vmov 1966171168   ;;  %v9004_v39 = vld [vmem:[#allocation5 + $0x124] ss:$16 sps:$4 sm:$0xff]  }
  0x68   :  { %v870_v37 = vunpack.c.l.s4 %v10552_v36  ;;  %v9006_v40 = vld [vmem:[#allocation5 + $0x12c] ss:$16 sps:$4 sm:$0xff]   ;;  %v9008_v41 = vld [vmem:[#allocation5 + $0x120] ss:$16 sps:$4 sm:$0xff]   ;;  %v873_v43 = vshrl.u32 %v872_v38, 7  ;;  %vm6024_vm0 = vcmask 1041408  }
  0x69   :  { %4886 = vmatpush1.bf16.msra.mxu0 %v8972_v14  ;;  %5378 = vmatpush1.bf16.msra.mxu1 %v8973_v15  ;;  %v9009_v44 = vld [vmem:[#allocation5 + $0x128] ss:$16 sps:$4 sm:$0xff]   ;;  %v9010_v45 = vld [vmem:[#allocation5 + $0x144] ss:$16 sps:$4 sm:$0xff]   ;;  %v9012_v46 = vld [vmem:[#allocation5 + $0x14c] ss:$16 sps:$4 sm:$0xff]  }
  0x6a   :  { %4887 = vmatprep.subr.bf16.mxu0 %v8974_v16  ;;  %5379 = vmatprep.subr.bf16.mxu1 %v8976_v17  ;;  %v871_v42 = vunpack.c.0.s8 %v870_v37  ;;  %v9014_v47 = vld [vmem:[#allocation5 + $0x140] ss:$16 sps:$4 sm:$0xff]   ;;  %v9015_v48 = vld [vmem:[#allocation5 + $0x148] ss:$16 sps:$4 sm:$0xff]   ;;  %v9016_v50 = vld [vmem:[#allocation5 + $0x164] ss:$16 sps:$4 sm:$0xff]  }
  0x6b   :  { %v9018_v51 = vld [vmem:[#allocation5 + $0x16c] ss:$16 sps:$4 sm:$0xff]   ;;  %v10683_v52 = vld [vmem:[%s10845_s0] sm:$0xff]  ;;  %v9021_v55 = vld [vmem:[#allocation5 + $0x168] ss:$16 sps:$4 sm:$0xff]   ;;  %vm6020_vm1 = vcmask 818176  }
  0x6c   :  { %v10678_v49 = vsub.s32 %v871_v42, %v873_v43  ;;  %v9020_v53 = vld [vmem:[#allocation5 + $0x160] ss:$16 sps:$4 sm:$0xff]   ;;  %v9022_v56 = vld [vmem:[#allocation5 + $0x184] ss:$16 sps:$4 sm:$0xff]   ;;  %v9024_v57 = vld [vmem:[#allocation5 + $0x18c] ss:$16 sps:$4 sm:$0xff]  }
  0x6d   :  { %4888 = vmatpush1.bf16.msra.mxu0 %v8978_v18  ;;  %5380 = vmatpush1.bf16.msra.mxu1 %v8979_v19  ;;  %v9026_v59 = vld [vmem:[#allocation5 + $0x180] ss:$16 sps:$4 sm:$0xff]   ;;  %v9027_v61 = vld [vmem:[#allocation5 + $0x188] ss:$16 sps:$4 sm:$0xff]   ;;  %v9028_v62 = vld [vmem:[#allocation5 + $0x1a4] ss:$16 sps:$4 sm:$0xff]  }
  0x6e   :  { %4889 = vmatprep.subr.bf16.mxu0 %v8980_v20  ;;  %5381 = vmatprep.subr.bf16.mxu1 %v8982_v21  ;;  %v875_v54 = vrot.slane %v10683_v52, %v10678_v49  ;;  %v9030_v63 = vld [vmem:[#allocation5 + $0x1ac] ss:$16 sps:$4 sm:$0xff]   ;;  %v9032_v0 = vld [vmem:[#allocation5 + $0x1a0] ss:$16 sps:$4 sm:$0xff]   ;;  %v9033_v1 = vld [vmem:[#allocation5 + $0x1a8] ss:$16 sps:$4 sm:$0xff]  }
  0x6f   :  { %v9034_v2 = vld [vmem:[#allocation5 + $0x1c4] ss:$16 sps:$4 sm:$0xff]   ;;  %v9036_v3 = vld [vmem:[#allocation5 + $0x1cc] ss:$16 sps:$4 sm:$0xff]   ;;  %v9038_v4 = vld [vmem:[#allocation5 + $0x1c0] ss:$16 sps:$4 sm:$0xff]  }
  0x70   :  { %v883_v58 = vcombine.high %v875_v54, %v875_v54  ;;  %v9039_v5 = vld [vmem:[#allocation5 + $0x1c8] ss:$16 sps:$4 sm:$0xff]   ;;  %v9040_v6 = vld [vmem:[#allocation5 + $0x1e4] ss:$16 sps:$4 sm:$0xff]   ;;  %v9042_v7 = vld [vmem:[#allocation5 + $0x1ec] ss:$16 sps:$4 sm:$0xff]   ;;  %v10689_v13 = vrot.slane %v875_v54, %v10678_v49 }
  0x71   :  { %4890 = vmatpush1.bf16.msra.mxu0 %v8984_v22  ;;  %5382 = vmatpush1.bf16.msra.mxu1 %v8985_v23  ;;  %v9044_v8 = vld [vmem:[#allocation5 + $0x1e0] ss:$16 sps:$4 sm:$0xff]   ;;  %v9045_v9 = vld [vmem:[#allocation5 + $0x1e8] ss:$16 sps:$4 sm:$0xff]   ;;  %v9048_v10 = vld [vmem:[#allocation5 + $0x204] ss:$16 sps:$4 sm:$0xff]  }
  0x72   :  { %4891 = vmatprep.subr.bf16.mxu0 %v8986_v24  ;;  %5383 = vmatprep.subr.bf16.mxu1 %v8988_v25  ;;  %v905_v60 = vrot.slane %v883_v58, %v10678_v49  ;;  %v9051_v11 = vld [vmem:[#allocation5 + $0x20c] ss:$16 sps:$4 sm:$0xff]   ;;  %v9046_v12 = vld [vmem:[#allocation5 + $0x200] ss:$16 sps:$4 sm:$0xff]   ;;  %v9049_v14 = vld [vmem:[#allocation5 + $0x208] ss:$16 sps:$4 sm:$0xff]  }
  0x73   :  { %v9054_v15 = vld [vmem:[#allocation5 + $0x224] ss:$16 sps:$4 sm:$0xff]   ;;  %v9057_v16 = vld [vmem:[#allocation5 + $0x22c] ss:$16 sps:$4 sm:$0xff]   ;;  %v9052_v18 = vld [vmem:[#allocation5 + $0x220] ss:$16 sps:$4 sm:$0xff]  }
  0x74   :  { %4911 = vmatprep.mubr.bf16.mxu0 %v905_v60  ;;  %5403 = vmatprep.mubr.bf16.mxu1 %v905_v60  ;;  %v915_v17 = vcombine.high %v905_v60, %v905_v60  ;;  %v9055_v19 = vld [vmem:[#allocation5 + $0x228] ss:$16 sps:$4 sm:$0xff]   ;;  %v9060_v20 = vld [vmem:[#allocation5 + $0x244] ss:$16 sps:$4 sm:$0xff]   ;;  %v9063_v21 = vld [vmem:[#allocation5 + $0x24c] ss:$16 sps:$4 sm:$0xff]  }
  0x75   :  { %4892 = vmatpush1.bf16.msra.mxu0 %v8990_v26  ;;  %5384 = vmatpush1.bf16.msra.mxu1 %v8991_v27  ;;  %v9058_v22 = vld [vmem:[#allocation5 + $0x240] ss:$16 sps:$4 sm:$0xff]   ;;  %v9061_v23 = vld [vmem:[#allocation5 + $0x248] ss:$16 sps:$4 sm:$0xff]   ;;  %v9066_v24 = vld [vmem:[#allocation5 + $0x264] ss:$16 sps:$4 sm:$0xff]  }
  0x76   :  { %4893 = vmatprep.subr.bf16.mxu0 %v8992_v28  ;;  %5385 = vmatprep.subr.bf16.mxu1 %v8994_v29  ;;  %v9069_v25 = vld [vmem:[#allocation5 + $0x26c] ss:$16 sps:$4 sm:$0xff]   ;;  %v9064_v26 = vld [vmem:[#allocation5 + $0x260] ss:$16 sps:$4 sm:$0xff]   ;;  %v9067_v27 = vld [vmem:[#allocation5 + $0x268] ss:$16 sps:$4 sm:$0xff]  }
  0x77   :  { %v9072_v28 = vld [vmem:[#allocation5 + $0x284] ss:$16 sps:$4 sm:$0xff]   ;;  %v9075_v29 = vld [vmem:[#allocation5 + $0x28c] ss:$16 sps:$4 sm:$0xff]   ;;  %v9082_v38 = vld [vmem:[#allocation5 + $0x2c0] ss:$16 sps:$4 sm:$0xff]  }
  0x78   :  { %v9084_v36 = vld [vmem:[#allocation5 + $0x2c4] ss:$16 sps:$4 sm:$0xff]   ;;  %v9087_v37 = vld [vmem:[#allocation5 + $0x2cc] ss:$16 sps:$4 sm:$0xff]   ;;  %v9088_v42 = vld [vmem:[#allocation5 + $0x2e0] ss:$16 sps:$4 sm:$0xff]  }
  0x79   :  { %4894 = vmatpush1.bf16.msra.mxu0 %v8996_v30  ;;  %5386 = vmatpush1.bf16.msra.mxu1 %v8997_v31  ;;  %v9070_v30 = vld [vmem:[#allocation5 + $0x280] ss:$16 sps:$4 sm:$0xff]   ;;  %v9073_v31 = vld [vmem:[#allocation5 + $0x288] ss:$16 sps:$4 sm:$0xff]   ;;  %v9108_v54 = vld [vmem:[#allocation5 + $0x344] ss:$16 sps:$4 sm:$0xff]  }
  0x7a   :  { %4895 = vmatprep.subr.bf16.mxu0 %v8998_v32  ;;  %5387 = vmatprep.subr.bf16.mxu1 %v9000_v33  ;;  %v9078_v32 = vld [vmem:[#allocation5 + $0x2a4] ss:$16 sps:$4 sm:$0xff]   ;;  %v9081_v33 = vld [vmem:[#allocation5 + $0x2ac] ss:$16 sps:$4 sm:$0xff]   ;;  %v9091_v43 = vld [vmem:[#allocation5 + $0x2e8] ss:$16 sps:$4 sm:$0xff]  }
  0x7b   :  { %v9114_v58 = vld [vmem:[#allocation5 + $0x364] ss:$16 sps:$4 sm:$0xff]   ;;  %v9112_v60 = vld [vmem:[#allocation5 + $0x360] ss:$16 sps:$4 sm:$0xff]  }
  0x7d   :  { %4896 = vmatpush1.bf16.msra.mxu0 %v9002_v34  ;;  %5388 = vmatpush1.bf16.msra.mxu1 %v9003_v35  ;;  %v9076_v34 = vld [vmem:[#allocation5 + $0x2a0] ss:$16 sps:$4 sm:$0xff]   ;;  %v9079_v35 = vld [vmem:[#allocation5 + $0x2a8] ss:$16 sps:$4 sm:$0xff]  }
  0x7e   :  { %4897 = vmatprep.subr.bf16.mxu0 %v9004_v39  ;;  %5389 = vmatprep.subr.bf16.mxu1 %v9006_v40  ;;  %v9085_v39 = vld [vmem:[#allocation5 + $0x2c8] ss:$16 sps:$4 sm:$0xff]   ;;  %v9090_v40 = vld [vmem:[#allocation5 + $0x2e4] ss:$16 sps:$4 sm:$0xff]  }
  0x81   :  { %4898 = vmatpush1.bf16.msra.mxu0 %v9008_v41  ;;  %5390 = vmatpush1.bf16.msra.mxu1 %v9009_v44  ;;  %v9093_v41 = vld [vmem:[#allocation5 + $0x2ec] ss:$16 sps:$4 sm:$0xff]   ;;  %v9096_v44 = vld [vmem:[#allocation5 + $0x304] ss:$16 sps:$4 sm:$0xff]  }
  0x82   :  { %4899 = vmatprep.subr.bf16.mxu0 %v9010_v45  ;;  %5391 = vmatprep.subr.bf16.mxu1 %v9012_v46  ;;  %v9099_v45 = vld [vmem:[#allocation5 + $0x30c] ss:$16 sps:$4 sm:$0xff]   ;;  %v9094_v46 = vld [vmem:[#allocation5 + $0x300] ss:$16 sps:$4 sm:$0xff]  }
  0x85   :  { %4900 = vmatpush1.bf16.msra.mxu0 %v9014_v47  ;;  %5392 = vmatpush1.bf16.msra.mxu1 %v9015_v48  ;;  %v9097_v47 = vld [vmem:[#allocation5 + $0x308] ss:$16 sps:$4 sm:$0xff]   ;;  %v9102_v48 = vld [vmem:[#allocation5 + $0x324] ss:$16 sps:$4 sm:$0xff]  }
  0x86   :  { %4901 = vmatprep.subr.bf16.mxu0 %v9016_v50  ;;  %5393 = vmatprep.subr.bf16.mxu1 %v9018_v51  ;;  %v9105_v50 = vld [vmem:[#allocation5 + $0x32c] ss:$16 sps:$4 sm:$0xff]   ;;  %v9100_v51 = vld [vmem:[#allocation5 + $0x320] ss:$16 sps:$4 sm:$0xff]  }
  0x89   :  { %4902 = vmatpush1.bf16.msra.mxu0 %v9020_v53  ;;  %5394 = vmatpush1.bf16.msra.mxu1 %v9021_v55  ;;  %v9103_v53 = vld [vmem:[#allocation5 + $0x328] ss:$16 sps:$4 sm:$0xff]   ;;  %v9111_v55 = vld [vmem:[#allocation5 + $0x34c] ss:$16 sps:$4 sm:$0xff]  }
  0x8a   :  { %4903 = vmatprep.subr.bf16.mxu0 %v9022_v56  ;;  %5395 = vmatprep.subr.bf16.mxu1 %v9024_v57  ;;  %v9106_v56 = vld [vmem:[#allocation5 + $0x340] ss:$16 sps:$4 sm:$0xff]   ;;  %v9109_v57 = vld [vmem:[#allocation5 + $0x348] ss:$16 sps:$4 sm:$0xff]  }
  0x8d   :  { %4904 = vmatpush1.bf16.msra.mxu0 %v9026_v59  ;;  %5396 = vmatpush1.bf16.msra.mxu1 %v9027_v61  ;;  %v9117_v59 = vld [vmem:[#allocation5 + $0x36c] ss:$16 sps:$4 sm:$0xff]   ;;  %v9115_v61 = vld [vmem:[#allocation5 + $0x368] ss:$16 sps:$4 sm:$0xff]  }
  0x8e   :  { %4905 = vmatprep.subr.bf16.mxu0 %v9028_v62  ;;  %5397 = vmatprep.subr.bf16.mxu1 %v9030_v63  ;;  %v9120_v62 = vld [vmem:[#allocation5 + $0x384] ss:$16 sps:$4 sm:$0xff]   ;;  %v9123_v63 = vld [vmem:[#allocation5 + $0x38c] ss:$16 sps:$4 sm:$0xff]  }
  0x91   :  { %4906 = vmatpush1.bf16.msra.mxu0 %v9032_v0  ;;  %5398 = vmatpush1.bf16.msra.mxu1 %v9033_v1  ;;  %v9118_v0 = vld [vmem:[#allocation5 + $0x380] ss:$16 sps:$4 sm:$0xff]   ;;  %v9121_v1 = vld [vmem:[#allocation5 + $0x388] ss:$16 sps:$4 sm:$0xff]  }
  0x92   :  { %4907 = vmatprep.subr.bf16.mxu0 %v9034_v2  ;;  %5399 = vmatprep.subr.bf16.mxu1 %v9036_v3  ;;  %v9126_v2 = vld [vmem:[#allocation5 + $0x3a4] ss:$16 sps:$4 sm:$0xff]   ;;  %v9129_v3 = vld [vmem:[#allocation5 + $0x3ac] ss:$16 sps:$4 sm:$0xff]  }
  0x95   :  { %4908 = vmatpush1.bf16.msra.mxu0 %v9038_v4  ;;  %5400 = vmatpush1.bf16.msra.mxu1 %v9039_v5  ;;  %v9124_v4 = vld [vmem:[#allocation5 + $0x3a0] ss:$16 sps:$4 sm:$0xff]   ;;  %v9127_v5 = vld [vmem:[#allocation5 + $0x3a8] ss:$16 sps:$4 sm:$0xff]  }
  0x96   :  { %4909 = vmatprep.subr.bf16.mxu0 %v9040_v6  ;;  %5401 = vmatprep.subr.bf16.mxu1 %v9042_v7  ;;  %v9132_v6 = vld [vmem:[#allocation5 + $0x3c4] ss:$16 sps:$4 sm:$0xff]   ;;  %v9135_v7 = vld [vmem:[#allocation5 + $0x3cc] ss:$16 sps:$4 sm:$0xff]  }
  0x99   :  { %4910 = vmatpush1.bf16.msra.mxu0 %v9044_v8  ;;  %5402 = vmatpush1.bf16.msra.mxu1 %v9045_v9  ;;  %v868_v8 = vcombine.high %v10683_v52, %v10683_v52  ;;  %v9130_v9 = vld [vmem:[#allocation5 + $0x3c0] ss:$16 sps:$4 sm:$0xff]  }
  0x9a   :  { %4920 = vmatprep.subr.bf16.mxu0 %v9048_v10  ;;  %5412 = vmatprep.subr.bf16.mxu1 %v9051_v11  ;;  %v9133_v10 = vld [vmem:[#allocation5 + $0x3c8] ss:$16 sps:$4 sm:$0xff]   ;;  %v9138_v11 = vld [vmem:[#allocation5 + $0x3e4] ss:$16 sps:$4 sm:$0xff]  }
  0x9c   :  { %4912 = vmatmul.mubr.bf16.vlgmr.msra.gmra.mrb[0].mxu0 %v10689_v13  ;;  %5404 = vmatmul.mubr.bf16.vlgmr.msra.gmra.mrb[0].mxu1 %v10689_v13 }
  0x9d   :  { %4921 = vmatpush1.bf16.msra.mxu0 %v9046_v12  ;;  %5413 = vmatpush1.bf16.msra.mxu1 %v9049_v14  ;;  %v9141_v12 = vld [vmem:[#allocation5 + $0x3ec] ss:$16 sps:$4 sm:$0xff]   ;;  %v10696_v14 = vrot.slane %v868_v8, %v10678_v49  ;;  %v9222_v8 = vld [vmem:[#allocation5 + $0x5a4] ss:$16 sps:$4 sm:$0xff]  }
  0x9e   :  { %4922 = vmatprep.subr.bf16.mxu0 %v9054_v15  ;;  %5414 = vmatprep.subr.bf16.mxu1 %v9057_v16  ;;  %v9136_v15 = vld [vmem:[#allocation5 + $0x3e0] ss:$16 sps:$4 sm:$0xff]   ;;  %v9139_v16 = vld [vmem:[#allocation5 + $0x3e8] ss:$16 sps:$4 sm:$0xff]  }
  0x9f   :  { %4952 = vmatprep.mubr.bf16.mxu0 %v915_v17  ;;  %5444 = vmatprep.mubr.bf16.mxu1 %v915_v17  ;;  %v9144_v17 = vld [vmem:[#allocation5 + $0x404] ss:$16 sps:$4 sm:$0xff]   ;;  %v884_v52 = vcombine.high %v10696_v14, %v10696_v14 }
  0xa1   :  { %4923 = vmatpush1.bf16.msra.mxu0 %v9052_v18  ;;  %5415 = vmatpush1.bf16.msra.mxu1 %v9055_v19  ;;  %v9147_v18 = vld [vmem:[#allocation5 + $0x40c] ss:$16 sps:$4 sm:$0xff]   ;;  %v9142_v19 = vld [vmem:[#allocation5 + $0x400] ss:$16 sps:$4 sm:$0xff]  }
  0xa2   :  { %4924 = vmatprep.subr.bf16.mxu0 %v9060_v20  ;;  %5416 = vmatprep.subr.bf16.mxu1 %v9063_v21  ;;  %v913_v20 = vcombine.high %v10689_v13, %v10689_v13  ;;  %v9145_v21 = vld [vmem:[#allocation5 + $0x408] ss:$16 sps:$4 sm:$0xff]   ;;  %v9159_v13 = vld [vmem:[#allocation5 + $0x44c] ss:$16 sps:$4 sm:$0xff]  }
  0xa5   :  { %4925 = vmatpush1.bf16.msra.mxu0 %v9058_v22  ;;  %5417 = vmatpush1.bf16.msra.mxu1 %v9061_v23  ;;  %v9150_v22 = vld [vmem:[#allocation5 + $0x424] ss:$16 sps:$4 sm:$0xff]   ;;  %v9153_v23 = vld [vmem:[#allocation5 + $0x42c] ss:$16 sps:$4 sm:$0xff]  }
  0xa6   :  { %4926 = vmatprep.subr.bf16.mxu0 %v9066_v24  ;;  %5418 = vmatprep.subr.bf16.mxu1 %v9069_v25  ;;  %v10703_v24 = vrot.slane %v884_v52, %v10678_v49  ;;  %v9148_v25 = vld [vmem:[#allocation5 + $0x420] ss:$16 sps:$4 sm:$0xff]   ;;  %v9237_v52 = vld [vmem:[#allocation5 + $0x5ec] ss:$16 sps:$4 sm:$0xff]  }
  0xa9   :  { %4927 = vmatpush1.bf16.msra.mxu0 %v9064_v26  ;;  %5419 = vmatpush1.bf16.msra.mxu1 %v9067_v27  ;;  %v9151_v26 = vld [vmem:[#allocation5 + $0x428] ss:$16 sps:$4 sm:$0xff]   ;;  %v9156_v27 = vld [vmem:[#allocation5 + $0x444] ss:$16 sps:$4 sm:$0xff]  }
  0xaa   :  { %4928 = vmatprep.subr.bf16.mxu0 %v9072_v28  ;;  %5420 = vmatprep.subr.bf16.mxu1 %v9075_v29  ;;  %v9154_v28 = vld [vmem:[#allocation5 + $0x440] ss:$16 sps:$4 sm:$0xff]   ;;  %v9157_v29 = vld [vmem:[#allocation5 + $0x448] ss:$16 sps:$4 sm:$0xff]  }
  0xad   :  { %4929 = vmatpush1.bf16.msra.mxu0 %v9070_v30  ;;  %5421 = vmatpush1.bf16.msra.mxu1 %v9073_v31  ;;  %v9162_v30 = vld [vmem:[#allocation5 + $0x464] ss:$16 sps:$4 sm:$0xff]   ;;  %v9165_v31 = vld [vmem:[#allocation5 + $0x46c] ss:$16 sps:$4 sm:$0xff]  }
  0xae   :  { %4930 = vmatprep.subr.bf16.mxu0 %v9078_v32  ;;  %5422 = vmatprep.subr.bf16.mxu1 %v9081_v33  ;;  %v9160_v32 = vld [vmem:[#allocation5 + $0x460] ss:$16 sps:$4 sm:$0xff]   ;;  %v9163_v33 = vld [vmem:[#allocation5 + $0x468] ss:$16 sps:$4 sm:$0xff]  }
  0xb1   :  { %4931 = vmatpush1.bf16.msra.mxu0 %v9076_v34  ;;  %5423 = vmatpush1.bf16.msra.mxu1 %v9079_v35  ;;  %v9168_v34 = vld [vmem:[#allocation5 + $0x484] ss:$16 sps:$4 sm:$0xff]   ;;  %v9171_v35 = vld [vmem:[#allocation5 + $0x48c] ss:$16 sps:$4 sm:$0xff]  }
  0xb2   :  { %4932 = vmatprep.subr.bf16.mxu0 %v9084_v36  ;;  %5424 = vmatprep.subr.bf16.mxu1 %v9087_v37  ;;  %v9166_v36 = vld [vmem:[#allocation5 + $0x480] ss:$16 sps:$4 sm:$0xff]   ;;  %v9169_v37 = vld [vmem:[#allocation5 + $0x488] ss:$16 sps:$4 sm:$0xff]  }
  0xb5   :  { %4933 = vmatpush1.bf16.msra.mxu0 %v9082_v38  ;;  %5425 = vmatpush1.bf16.msra.mxu1 %v9085_v39  ;;  %v9174_v38 = vld [vmem:[#allocation5 + $0x4a4] ss:$16 sps:$4 sm:$0xff]   ;;  %v9177_v39 = vld [vmem:[#allocation5 + $0x4ac] ss:$16 sps:$4 sm:$0xff]  }
  0xb6   :  { %4934 = vmatprep.subr.bf16.mxu0 %v9090_v40  ;;  %5426 = vmatprep.subr.bf16.mxu1 %v9093_v41  ;;  %v9172_v40 = vld [vmem:[#allocation5 + $0x4a0] ss:$16 sps:$4 sm:$0xff]   ;;  %v9175_v41 = vld [vmem:[#allocation5 + $0x4a8] ss:$16 sps:$4 sm:$0xff]  }
  0xb9   :  { %4935 = vmatpush1.bf16.msra.mxu0 %v9088_v42  ;;  %5427 = vmatpush1.bf16.msra.mxu1 %v9091_v43  ;;  %v9180_v42 = vld [vmem:[#allocation5 + $0x4c4] ss:$16 sps:$4 sm:$0xff]   ;;  %v9183_v43 = vld [vmem:[#allocation5 + $0x4cc] ss:$16 sps:$4 sm:$0xff]  }
  0xba   :  { %4936 = vmatprep.subr.bf16.mxu0 %v9096_v44  ;;  %5428 = vmatprep.subr.bf16.mxu1 %v9099_v45  ;;  %v9178_v44 = vld [vmem:[#allocation5 + $0x4c0] ss:$16 sps:$4 sm:$0xff]   ;;  %v9181_v45 = vld [vmem:[#allocation5 + $0x4c8] ss:$16 sps:$4 sm:$0xff]  }
  0xbd   :  { %4937 = vmatpush1.bf16.msra.mxu0 %v9094_v46  ;;  %5429 = vmatpush1.bf16.msra.mxu1 %v9097_v47  ;;  %v9186_v46 = vld [vmem:[#allocation5 + $0x4e4] ss:$16 sps:$4 sm:$0xff]   ;;  %v9189_v47 = vld [vmem:[#allocation5 + $0x4ec] ss:$16 sps:$4 sm:$0xff]  }
  0xbe   :  { %4938 = vmatprep.subr.bf16.mxu0 %v9102_v48  ;;  %5430 = vmatprep.subr.bf16.mxu1 %v9105_v50  ;;  %v9184_v48 = vld [vmem:[#allocation5 + $0x4e0] ss:$16 sps:$4 sm:$0xff]   ;;  %v9187_v50 = vld [vmem:[#allocation5 + $0x4e8] ss:$16 sps:$4 sm:$0xff]  }
  0xc1   :  { %4939 = vmatpush1.bf16.msra.mxu0 %v9100_v51  ;;  %5431 = vmatpush1.bf16.msra.mxu1 %v9103_v53  ;;  %v9192_v51 = vld [vmem:[#allocation5 + $0x504] ss:$16 sps:$4 sm:$0xff]   ;;  %v9195_v53 = vld [vmem:[#allocation5 + $0x50c] ss:$16 sps:$4 sm:$0xff]  }
  0xc2   :  { %4940 = vmatprep.subr.bf16.mxu0 %v9108_v54  ;;  %5432 = vmatprep.subr.bf16.mxu1 %v9111_v55  ;;  %v9190_v54 = vld [vmem:[#allocation5 + $0x500] ss:$16 sps:$4 sm:$0xff]   ;;  %v9193_v55 = vld [vmem:[#allocation5 + $0x508] ss:$16 sps:$4 sm:$0xff]  }
  0xc5   :  { %4941 = vmatpush1.bf16.msra.mxu0 %v9106_v56  ;;  %5433 = vmatpush1.bf16.msra.mxu1 %v9109_v57  ;;  %v9198_v56 = vld [vmem:[#allocation5 + $0x524] ss:$16 sps:$4 sm:$0xff]   ;;  %v9201_v57 = vld [vmem:[#allocation5 + $0x52c] ss:$16 sps:$4 sm:$0xff]  }
  0xc6   :  { %4942 = vmatprep.subr.bf16.mxu0 %v9114_v58  ;;  %5434 = vmatprep.subr.bf16.mxu1 %v9117_v59  ;;  %v9196_v58 = vld [vmem:[#allocation5 + $0x520] ss:$16 sps:$4 sm:$0xff]   ;;  %v9199_v59 = vld [vmem:[#allocation5 + $0x528] ss:$16 sps:$4 sm:$0xff]  }
  0xc9   :  { %4943 = vmatpush1.bf16.msra.mxu0 %v9112_v60  ;;  %5435 = vmatpush1.bf16.msra.mxu1 %v9115_v61  ;;  %v9204_v60 = vld [vmem:[#allocation5 + $0x544] ss:$16 sps:$4 sm:$0xff]   ;;  %v9207_v61 = vld [vmem:[#allocation5 + $0x54c] ss:$16 sps:$4 sm:$0xff]  }
  0xca   :  { %4944 = vmatprep.subr.bf16.mxu0 %v9120_v62  ;;  %5436 = vmatprep.subr.bf16.mxu1 %v9123_v63  ;;  %v9202_v62 = vld [vmem:[#allocation5 + $0x540] ss:$16 sps:$4 sm:$0xff]   ;;  %v9205_v63 = vld [vmem:[#allocation5 + $0x548] ss:$16 sps:$4 sm:$0xff]  }
  0xcd   :  { %4945 = vmatpush1.bf16.msra.mxu0 %v9118_v0  ;;  %5437 = vmatpush1.bf16.msra.mxu1 %v9121_v1  ;;  %v9210_v0 = vld [vmem:[#allocation5 + $0x564] ss:$16 sps:$4 sm:$0xff]   ;;  %v9213_v1 = vld [vmem:[#allocation5 + $0x56c] ss:$16 sps:$4 sm:$0xff]  }
  0xce   :  { %4946 = vmatprep.subr.bf16.mxu0 %v9126_v2  ;;  %5438 = vmatprep.subr.bf16.mxu1 %v9129_v3  ;;  %v9208_v2 = vld [vmem:[#allocation5 + $0x560] ss:$16 sps:$4 sm:$0xff]   ;;  %v9211_v3 = vld [vmem:[#allocation5 + $0x568] ss:$16 sps:$4 sm:$0xff]  }
  0xd1   :  { %4947 = vmatpush1.bf16.msra.mxu0 %v9124_v4  ;;  %5439 = vmatpush1.bf16.msra.mxu1 %v9127_v5  ;;  %v9216_v4 = vld [vmem:[#allocation5 + $0x584] ss:$16 sps:$4 sm:$0xff]   ;;  %v9219_v5 = vld [vmem:[#allocation5 + $0x58c] ss:$16 sps:$4 sm:$0xff]  }
  0xd2   :  { %4948 = vmatprep.subr.bf16.mxu0 %v9132_v6  ;;  %5440 = vmatprep.subr.bf16.mxu1 %v9135_v7  ;;  %v9214_v6 = vld [vmem:[#allocation5 + $0x580] ss:$16 sps:$4 sm:$0xff]   ;;  %v9217_v7 = vld [vmem:[#allocation5 + $0x588] ss:$16 sps:$4 sm:$0xff]  }
  0xd5   :  { %4949 = vmatpush1.bf16.msra.mxu0 %v9130_v9  ;;  %5441 = vmatpush1.bf16.msra.mxu1 %v9133_v10  ;;  %v9225_v9 = vld [vmem:[#allocation5 + $0x5ac] ss:$16 sps:$4 sm:$0xff]   ;;  %v9220_v10 = vld [vmem:[#allocation5 + $0x5a0] ss:$16 sps:$4 sm:$0xff]  }
  0xd6   :  { %4950 = vmatprep.subr.bf16.mxu0 %v9138_v11  ;;  %5442 = vmatprep.subr.bf16.mxu1 %v9141_v12  ;;  %v9223_v11 = vld [vmem:[#allocation5 + $0x5a8] ss:$16 sps:$4 sm:$0xff]   ;;  %v9228_v12 = vld [vmem:[#allocation5 + $0x5c4] ss:$16 sps:$4 sm:$0xff]  }
  0xd9   :  { %4951 = vmatpush1.bf16.msra.mxu0 %v9136_v15  ;;  %5443 = vmatpush1.bf16.msra.mxu1 %v9139_v16  ;;  %v9231_v15 = vld [vmem:[#allocation5 + $0x5cc] ss:$16 sps:$4 sm:$0xff]   ;;  %v9226_v16 = vld [vmem:[#allocation5 + $0x5c0] ss:$16 sps:$4 sm:$0xff]  }
  0xda   :  { %4961 = vmatprep.subr.bf16.mxu0 %v9144_v17  ;;  %5453 = vmatprep.subr.bf16.mxu1 %v9147_v18  ;;  %v9229_v17 = vld [vmem:[#allocation5 + $0x5c8] ss:$16 sps:$4 sm:$0xff]   ;;  %v9234_v18 = vld [vmem:[#allocation5 + $0x5e4] ss:$16 sps:$4 sm:$0xff]  }
  0xdc   :  { %4953 = vmatmul.mubr.bf16.vlgmr.msra.gmra.mrb[0].mxu0 %v913_v20  ;;  %5445 = vmatmul.mubr.bf16.vlgmr.msra.gmra.mrb[0].mxu1 %v913_v20  ;;  %v9235_v20 = vld [vmem:[#allocation5 + $0x5e8] ss:$16 sps:$4 sm:$0xff]  }
  0xdd   :  { %4962 = vmatpush1.bf16.msra.mxu0 %v9142_v19  ;;  %5454 = vmatpush1.bf16.msra.mxu1 %v9145_v21  ;;  %v9232_v19 = vld [vmem:[#allocation5 + $0x5e0] ss:$16 sps:$4 sm:$0xff]   ;;  %v9241_v21 = vld [vmem:[#allocation5 + $0x604] ss:$16 sps:$4 sm:$0xff]  }
  0xde   :  { %4963 = vmatprep.subr.bf16.mxu0 %v9150_v22  ;;  %5455 = vmatprep.subr.bf16.mxu1 %v9153_v23  ;;  %v9244_v22 = vld [vmem:[#allocation5 + $0x60c] ss:$16 sps:$4 sm:$0xff]   ;;  %v9239_v23 = vld [vmem:[#allocation5 + $0x600] ss:$16 sps:$4 sm:$0xff]  }
  0xdf   :  { %4993 = vmatprep.mubr.bf16.mxu0 %v10703_v24  ;;  %5485 = vmatprep.mubr.bf16.mxu1 %v10703_v24 }
  0xe1   :  { %4964 = vmatpush1.bf16.msra.mxu0 %v9148_v25  ;;  %5456 = vmatpush1.bf16.msra.mxu1 %v9151_v26  ;;  %v10709_v25 = vrot.slane %v10696_v14, %v10678_v49  ;;  %v9242_v26 = vld [vmem:[#allocation5 + $0x608] ss:$16 sps:$4 sm:$0xff]   ;;  %v9253_v14 = vld [vmem:[#allocation5 + $0x644] ss:$16 sps:$4 sm:$0xff]  }
  0xe2   :  { %4965 = vmatprep.subr.bf16.mxu0 %v9156_v27  ;;  %5457 = vmatprep.subr.bf16.mxu1 %v9159_v13  ;;  %v9247_v27 = vld [vmem:[#allocation5 + $0x624] ss:$16 sps:$4 sm:$0xff]   ;;  %v9250_v13 = vld [vmem:[#allocation5 + $0x62c] ss:$16 sps:$4 sm:$0xff]  }
  0xe5   :  { %4966 = vmatpush1.bf16.msra.mxu0 %v9154_v28  ;;  %5458 = vmatpush1.bf16.msra.mxu1 %v9157_v29  ;;  %v916_v28 = vcombine.high %v10703_v24, %v10703_v24  ;;  %v9245_v29 = vld [vmem:[#allocation5 + $0x620] ss:$16 sps:$4 sm:$0xff]   ;;  %v9259_v24 = vld [vmem:[#allocation5 + $0x664] ss:$16 sps:$4 sm:$0xff]  }
  0xe6   :  { %4967 = vmatprep.subr.bf16.mxu0 %v9162_v30  ;;  %5459 = vmatprep.subr.bf16.mxu1 %v9165_v31  ;;  %v9248_v30 = vld [vmem:[#allocation5 + $0x628] ss:$16 sps:$4 sm:$0xff]   ;;  %v9256_v31 = vld [vmem:[#allocation5 + $0x64c] ss:$16 sps:$4 sm:$0xff]  }
  0xe9   :  { %4968 = vmatpush1.bf16.msra.mxu0 %v9160_v32  ;;  %5460 = vmatpush1.bf16.msra.mxu1 %v9163_v33  ;;  %v9251_v32 = vld [vmem:[#allocation5 + $0x640] ss:$16 sps:$4 sm:$0xff]   ;;  %v9254_v33 = vld [vmem:[#allocation5 + $0x648] ss:$16 sps:$4 sm:$0xff]  }
  0xea   :  { %4969 = vmatprep.subr.bf16.mxu0 %v9168_v34  ;;  %5461 = vmatprep.subr.bf16.mxu1 %v9171_v35  ;;  %v9262_v34 = vld [vmem:[#allocation5 + $0x66c] ss:$16 sps:$4 sm:$0xff]   ;;  %v9257_v35 = vld [vmem:[#allocation5 + $0x660] ss:$16 sps:$4 sm:$0xff]  }
  0xed   :  { %4970 = vmatpush1.bf16.msra.mxu0 %v9166_v36  ;;  %5462 = vmatpush1.bf16.msra.mxu1 %v9169_v37  ;;  %v9260_v36 = vld [vmem:[#allocation5 + $0x668] ss:$16 sps:$4 sm:$0xff]   ;;  %v9265_v37 = vld [vmem:[#allocation5 + $0x684] ss:$16 sps:$4 sm:$0xff]  }
  0xee   :  { %4971 = vmatprep.subr.bf16.mxu0 %v9174_v38  ;;  %5463 = vmatprep.subr.bf16.mxu1 %v9177_v39  ;;  %v9268_v38 = vld [vmem:[#allocation5 + $0x68c] ss:$16 sps:$4 sm:$0xff]   ;;  %v9263_v39 = vld [vmem:[#allocation5 + $0x680] ss:$16 sps:$4 sm:$0xff]  }
  0xf1   :  { %4972 = vmatpush1.bf16.msra.mxu0 %v9172_v40  ;;  %5464 = vmatpush1.bf16.msra.mxu1 %v9175_v41  ;;  %v9266_v40 = vld [vmem:[#allocation5 + $0x688] ss:$16 sps:$4 sm:$0xff]   ;;  %v9271_v41 = vld [vmem:[#allocation5 + $0x6a4] ss:$16 sps:$4 sm:$0xff]  }
  0xf2   :  { %4973 = vmatprep.subr.bf16.mxu0 %v9180_v42  ;;  %5465 = vmatprep.subr.bf16.mxu1 %v9183_v43  ;;  %v9274_v42 = vld [vmem:[#allocation5 + $0x6ac] ss:$16 sps:$4 sm:$0xff]   ;;  %v9269_v43 = vld [vmem:[#allocation5 + $0x6a0] ss:$16 sps:$4 sm:$0xff]  }
  0xf5   :  { %4974 = vmatpush1.bf16.msra.mxu0 %v9178_v44  ;;  %5466 = vmatpush1.bf16.msra.mxu1 %v9181_v45  ;;  %v9272_v44 = vld [vmem:[#allocation5 + $0x6a8] ss:$16 sps:$4 sm:$0xff]   ;;  %v9277_v45 = vld [vmem:[#allocation5 + $0x6c4] ss:$16 sps:$4 sm:$0xff]  }
  0xf6   :  { %4975 = vmatprep.subr.bf16.mxu0 %v9186_v46  ;;  %5467 = vmatprep.subr.bf16.mxu1 %v9189_v47  ;;  %v9280_v46 = vld [vmem:[#allocation5 + $0x6cc] ss:$16 sps:$4 sm:$0xff]   ;;  %v9275_v47 = vld [vmem:[#allocation5 + $0x6c0] ss:$16 sps:$4 sm:$0xff]  }
  0xf9   :  { %4976 = vmatpush1.bf16.msra.mxu0 %v9184_v48  ;;  %5468 = vmatpush1.bf16.msra.mxu1 %v9187_v50  ;;  %v9278_v48 = vld [vmem:[#allocation5 + $0x6c8] ss:$16 sps:$4 sm:$0xff]   ;;  %v9283_v50 = vld [vmem:[#allocation5 + $0x6e4] ss:$16 sps:$4 sm:$0xff]  }
  0xfa   :  { %4977 = vmatprep.subr.bf16.mxu0 %v9192_v51  ;;  %5469 = vmatprep.subr.bf16.mxu1 %v9195_v53  ;;  %v9286_v51 = vld [vmem:[#allocation5 + $0x6ec] ss:$16 sps:$4 sm:$0xff]   ;;  %v9281_v53 = vld [vmem:[#allocation5 + $0x6e0] ss:$16 sps:$4 sm:$0xff]  }
  0xfd   :  { %4978 = vmatpush1.bf16.msra.mxu0 %v9190_v54  ;;  %5470 = vmatpush1.bf16.msra.mxu1 %v9193_v55  ;;  %v9284_v54 = vld [vmem:[#allocation5 + $0x6e8] ss:$16 sps:$4 sm:$0xff]   ;;  %v9289_v55 = vld [vmem:[#allocation5 + $0x704] ss:$16 sps:$4 sm:$0xff]  }
  0xfe   :  { %4979 = vmatprep.subr.bf16.mxu0 %v9198_v56  ;;  %5471 = vmatprep.subr.bf16.mxu1 %v9201_v57  ;;  %v9292_v56 = vld [vmem:[#allocation5 + $0x70c] ss:$16 sps:$4 sm:$0xff]   ;;  %v9287_v57 = vld [vmem:[#allocation5 + $0x700] ss:$16 sps:$4 sm:$0xff]  }
 0x101   :  { %4980 = vmatpush1.bf16.msra.mxu0 %v9196_v58  ;;  %5472 = vmatpush1.bf16.msra.mxu1 %v9199_v59  ;;  %v9290_v58 = vld [vmem:[#allocation5 + $0x708] ss:$16 sps:$4 sm:$0xff]   ;;  %v9295_v59 = vld [vmem:[#allocation5 + $0x724] ss:$16 sps:$4 sm:$0xff]  }
 0x102   :  { %4981 = vmatprep.subr.bf16.mxu0 %v9204_v60  ;;  %5473 = vmatprep.subr.bf16.mxu1 %v9207_v61  ;;  %v9298_v60 = vld [vmem:[#allocation5 + $0x72c] ss:$16 sps:$4 sm:$0xff]   ;;  %v9293_v61 = vld [vmem:[#allocation5 + $0x720] ss:$16 sps:$4 sm:$0xff]  }
 0x105   :  { %4982 = vmatpush1.bf16.msra.mxu0 %v9202_v62  ;;  %5474 = vmatpush1.bf16.msra.mxu1 %v9205_v63  ;;  %v9296_v62 = vld [vmem:[#allocation5 + $0x728] ss:$16 sps:$4 sm:$0xff]   ;;  %v9301_v63 = vld [vmem:[#allocation5 + $0x744] ss:$16 sps:$4 sm:$0xff]  }
 0x106   :  { %4983 = vmatprep.subr.bf16.mxu0 %v9210_v0  ;;  %5475 = vmatprep.subr.bf16.mxu1 %v9213_v1  ;;  %v9304_v0 = vld [vmem:[#allocation5 + $0x74c] ss:$16 sps:$4 sm:$0xff]   ;;  %v9299_v1 = vld [vmem:[#allocation5 + $0x740] ss:$16 sps:$4 sm:$0xff]  }
 0x109   :  { %4984 = vmatpush1.bf16.msra.mxu0 %v9208_v2  ;;  %5476 = vmatpush1.bf16.msra.mxu1 %v9211_v3  ;;  %v9302_v2 = vld [vmem:[#allocation5 + $0x748] ss:$16 sps:$4 sm:$0xff]   ;;  %v9307_v3 = vld [vmem:[#allocation5 + $0x764] ss:$16 sps:$4 sm:$0xff]  }
 0x10a   :  { %4985 = vmatprep.subr.bf16.mxu0 %v9216_v4  ;;  %5477 = vmatprep.subr.bf16.mxu1 %v9219_v5  ;;  %v9310_v4 = vld [vmem:[#allocation5 + $0x76c] ss:$16 sps:$4 sm:$0xff]   ;;  %v9305_v5 = vld [vmem:[#allocation5 + $0x760] ss:$16 sps:$4 sm:$0xff]  }
 0x10d   :  { %4986 = vmatpush1.bf16.msra.mxu0 %v9214_v6  ;;  %5478 = vmatpush1.bf16.msra.mxu1 %v9217_v7  ;;  %v9308_v6 = vld [vmem:[#allocation5 + $0x768] ss:$16 sps:$4 sm:$0xff]   ;;  %v9313_v7 = vld [vmem:[#allocation5 + $0x784] ss:$16 sps:$4 sm:$0xff]  }
 0x10e   :  { %4987 = vmatprep.subr.bf16.mxu0 %v9222_v8  ;;  %5479 = vmatprep.subr.bf16.mxu1 %v9225_v9  ;;  %v9316_v8 = vld [vmem:[#allocation5 + $0x78c] ss:$16 sps:$4 sm:$0xff]   ;;  %v9311_v9 = vld [vmem:[#allocation5 + $0x780] ss:$16 sps:$4 sm:$0xff]  }
 0x111   :  { %4988 = vmatpush1.bf16.msra.mxu0 %v9220_v10  ;;  %5480 = vmatpush1.bf16.msra.mxu1 %v9223_v11  ;;  %v9314_v10 = vld [vmem:[#allocation5 + $0x788] ss:$16 sps:$4 sm:$0xff]   ;;  %v9319_v11 = vld [vmem:[#allocation5 + $0x7a4] ss:$16 sps:$4 sm:$0xff]  }
 0x112   :  { %4989 = vmatprep.subr.bf16.mxu0 %v9228_v12  ;;  %5481 = vmatprep.subr.bf16.mxu1 %v9231_v15  ;;  %v9322_v12 = vld [vmem:[#allocation5 + $0x7ac] ss:$16 sps:$4 sm:$0xff]   ;;  %v9317_v15 = vld [vmem:[#allocation5 + $0x7a0] ss:$16 sps:$4 sm:$0xff]  }
 0x115   :  { %4990 = vmatpush1.bf16.msra.mxu0 %v9226_v16  ;;  %5482 = vmatpush1.bf16.msra.mxu1 %v9229_v17  ;;  %v9320_v16 = vld [vmem:[#allocation5 + $0x7a8] ss:$16 sps:$4 sm:$0xff]   ;;  %v9325_v17 = vld [vmem:[#allocation5 + $0x7c4] ss:$16 sps:$4 sm:$0xff]  }
 0x116   :  { %4991 = vmatprep.subr.bf16.mxu0 %v9234_v18  ;;  %5483 = vmatprep.subr.bf16.mxu1 %v9237_v52  ;;  %v9328_v18 = vld [vmem:[#allocation5 + $0x7cc] ss:$16 sps:$4 sm:$0xff]  }
 0x117   :  { %v10718_v52 = vld.sshfl [vmem:[%s10845_s0 + $0x8] sm:$0xff pattern:$0x75316420] }
 0x119   :  { %4992 = vmatpush1.bf16.msra.mxu0 %v9232_v19  ;;  %5484 = vmatpush1.bf16.msra.mxu1 %v9235_v20  ;;  %v9323_v19 = vld [vmem:[#allocation5 + $0x7c0] ss:$16 sps:$4 sm:$0xff]   ;;  %v9326_v20 = vld [vmem:[#allocation5 + $0x7c8] ss:$16 sps:$4 sm:$0xff]  }
 0x11a   :  { %5002 = vmatprep.subr.bf16.mxu0 %v9241_v21  ;;  %5494 = vmatprep.subr.bf16.mxu1 %v9244_v22  ;;  %v9331_v21 = vld [vmem:[#allocation5 + $0x7e4] ss:$16 sps:$4 sm:$0xff]   ;;  %v9334_v22 = vld [vmem:[#allocation5 + $0x7ec] ss:$16 sps:$4 sm:$0xff]  }
 0x11c   :  { %4994 = vmatmul.mubr.bf16.vlgmr.msra.gmra.mrb[0].mxu0 %v10709_v25  ;;  %5486 = vmatmul.mubr.bf16.vlgmr.msra.gmra.mrb[0].mxu1 %v10709_v25 }
 0x11d   :  { %5003 = vmatpush1.bf16.msra.mxu0 %v9239_v23  ;;  %5495 = vmatpush1.bf16.msra.mxu1 %v9242_v26  ;;  %v9329_v23 = vld [vmem:[#allocation5 + $0x7e0] ss:$16 sps:$4 sm:$0xff]   ;;  %v9332_v26 = vld [vmem:[#allocation5 + $0x7e8] ss:$16 sps:$4 sm:$0xff]  }
 0x11e   :  { %5004 = vmatprep.subr.bf16.mxu0 %v9247_v27  ;;  %5496 = vmatprep.subr.bf16.mxu1 %v9250_v13  ;;  %v9337_v27 = vld [vmem:[#allocation5 + $0x804] ss:$16 sps:$4 sm:$0xff]   ;;  %v9340_v13 = vld [vmem:[#allocation5 + $0x80c] ss:$16 sps:$4 sm:$0xff]  }
 0x11f   :  { %5034 = vmatprep.mubr.bf16.mxu0 %v916_v28  ;;  %5526 = vmatprep.mubr.bf16.mxu1 %v916_v28  ;;  %v932_v28 = vcombine.high %v10718_v52, %v10718_v52 }
 0x121   :  { %5005 = vmatpush1.bf16.msra.mxu0 %v9245_v29  ;;  %5497 = vmatpush1.bf16.msra.mxu1 %v9248_v30  ;;  %v914_v29 = vcombine.high %v10709_v25, %v10709_v25  ;;  %v9335_v30 = vld [vmem:[#allocation5 + $0x800] ss:$16 sps:$4 sm:$0xff]   ;;  %v9349_v25 = vld [vmem:[#allocation5 + $0x844] ss:$16 sps:$4 sm:$0xff]  }
 0x122   :  { %5006 = vmatprep.subr.bf16.mxu0 %v9253_v14  ;;  %5498 = vmatprep.subr.bf16.mxu1 %v9256_v31  ;;  %v9338_v14 = vld [vmem:[#allocation5 + $0x808] ss:$16 sps:$4 sm:$0xff]   ;;  %v9343_v31 = vld [vmem:[#allocation5 + $0x824] ss:$16 sps:$4 sm:$0xff]  }
 0x125   :  { %5007 = vmatpush1.bf16.msra.mxu0 %v9251_v32  ;;  %5499 = vmatpush1.bf16.msra.mxu1 %v9254_v33  ;;  %v9346_v32 = vld [vmem:[#allocation5 + $0x82c] ss:$16 sps:$4 sm:$0xff]   ;;  %v10725_v33 = vrot.slane %v932_v28, %v10678_v49 }
 0x126   :  { %5008 = vmatprep.subr.bf16.mxu0 %v9259_v24  ;;  %5500 = vmatprep.subr.bf16.mxu1 %v9262_v34  ;;  %v9341_v24 = vld [vmem:[#allocation5 + $0x820] ss:$16 sps:$4 sm:$0xff]   ;;  %v9344_v34 = vld [vmem:[#allocation5 + $0x828] ss:$16 sps:$4 sm:$0xff]   ;;  %v9430_v28 = vld [vmem:[#allocation5 + $0x9ec] ss:$16 sps:$4 sm:$0xff]  }
 0x129   :  { %5009 = vmatpush1.bf16.msra.mxu0 %v9257_v35  ;;  %5501 = vmatpush1.bf16.msra.mxu1 %v9260_v36  ;;  %v9352_v35 = vld [vmem:[#allocation5 + $0x84c] ss:$16 sps:$4 sm:$0xff]   ;;  %v9347_v36 = vld [vmem:[#allocation5 + $0x840] ss:$16 sps:$4 sm:$0xff]  }
 0x12a   :  { %5010 = vmatprep.subr.bf16.mxu0 %v9265_v37  ;;  %5502 = vmatprep.subr.bf16.mxu1 %v9268_v38  ;;  %v9350_v37 = vld [vmem:[#allocation5 + $0x848] ss:$16 sps:$4 sm:$0xff]   ;;  %v9355_v38 = vld [vmem:[#allocation5 + $0x864] ss:$16 sps:$4 sm:$0xff]  }
 0x12d   :  { %5011 = vmatpush1.bf16.msra.mxu0 %v9263_v39  ;;  %5503 = vmatpush1.bf16.msra.mxu1 %v9266_v40  ;;  %v9358_v39 = vld [vmem:[#allocation5 + $0x86c] ss:$16 sps:$4 sm:$0xff]   ;;  %v9353_v40 = vld [vmem:[#allocation5 + $0x860] ss:$16 sps:$4 sm:$0xff]  }
 0x12e   :  { %5012 = vmatprep.subr.bf16.mxu0 %v9271_v41  ;;  %5504 = vmatprep.subr.bf16.mxu1 %v9274_v42  ;;  %v9356_v41 = vld [vmem:[#allocation5 + $0x868] ss:$16 sps:$4 sm:$0xff]   ;;  %v9361_v42 = vld [vmem:[#allocation5 + $0x884] ss:$16 sps:$4 sm:$0xff]  }
 0x131   :  { %5013 = vmatpush1.bf16.msra.mxu0 %v9269_v43  ;;  %5505 = vmatpush1.bf16.msra.mxu1 %v9272_v44  ;;  %v9364_v43 = vld [vmem:[#allocation5 + $0x88c] ss:$16 sps:$4 sm:$0xff]   ;;  %v9359_v44 = vld [vmem:[#allocation5 + $0x880] ss:$16 sps:$4 sm:$0xff]  }
 0x132   :  { %5014 = vmatprep.subr.bf16.mxu0 %v9277_v45  ;;  %5506 = vmatprep.subr.bf16.mxu1 %v9280_v46  ;;  %v9362_v45 = vld [vmem:[#allocation5 + $0x888] ss:$16 sps:$4 sm:$0xff]   ;;  %v9367_v46 = vld [vmem:[#allocation5 + $0x8a4] ss:$16 sps:$4 sm:$0xff]  }
 0x135   :  { %5015 = vmatpush1.bf16.msra.mxu0 %v9275_v47  ;;  %5507 = vmatpush1.bf16.msra.mxu1 %v9278_v48  ;;  %v9370_v47 = vld [vmem:[#allocation5 + $0x8ac] ss:$16 sps:$4 sm:$0xff]   ;;  %v9365_v48 = vld [vmem:[#allocation5 + $0x8a0] ss:$16 sps:$4 sm:$0xff]  }
 0x136   :  { %5016 = vmatprep.subr.bf16.mxu0 %v9283_v50  ;;  %5508 = vmatprep.subr.bf16.mxu1 %v9286_v51  ;;  %v9368_v50 = vld [vmem:[#allocation5 + $0x8a8] ss:$16 sps:$4 sm:$0xff]   ;;  %v9373_v51 = vld [vmem:[#allocation5 + $0x8c4] ss:$16 sps:$4 sm:$0xff]  }
 0x139   :  { %5017 = vmatpush1.bf16.msra.mxu0 %v9281_v53  ;;  %5509 = vmatpush1.bf16.msra.mxu1 %v9284_v54  ;;  %v9376_v53 = vld [vmem:[#allocation5 + $0x8cc] ss:$16 sps:$4 sm:$0xff]   ;;  %v9371_v54 = vld [vmem:[#allocation5 + $0x8c0] ss:$16 sps:$4 sm:$0xff]  }
 0x13a   :  { %5018 = vmatprep.subr.bf16.mxu0 %v9289_v55  ;;  %5510 = vmatprep.subr.bf16.mxu1 %v9292_v56  ;;  %v9374_v55 = vld [vmem:[#allocation5 + $0x8c8] ss:$16 sps:$4 sm:$0xff]   ;;  %v9379_v56 = vld [vmem:[#allocation5 + $0x8e4] ss:$16 sps:$4 sm:$0xff]  }
 0x13d   :  { %5019 = vmatpush1.bf16.msra.mxu0 %v9287_v57  ;;  %5511 = vmatpush1.bf16.msra.mxu1 %v9290_v58  ;;  %v9382_v57 = vld [vmem:[#allocation5 + $0x8ec] ss:$16 sps:$4 sm:$0xff]   ;;  %v9377_v58 = vld [vmem:[#allocation5 + $0x8e0] ss:$16 sps:$4 sm:$0xff]  }
 0x13e   :  { %5020 = vmatprep.subr.bf16.mxu0 %v9295_v59  ;;  %5512 = vmatprep.subr.bf16.mxu1 %v9298_v60  ;;  %v9380_v59 = vld [vmem:[#allocation5 + $0x8e8] ss:$16 sps:$4 sm:$0xff]   ;;  %v9385_v60 = vld [vmem:[#allocation5 + $0x904] ss:$16 sps:$4 sm:$0xff]  }
 0x141   :  { %5021 = vmatpush1.bf16.msra.mxu0 %v9293_v61  ;;  %5513 = vmatpush1.bf16.msra.mxu1 %v9296_v62  ;;  %v9388_v61 = vld [vmem:[#allocation5 + $0x90c] ss:$16 sps:$4 sm:$0xff]   ;;  %v9383_v62 = vld [vmem:[#allocation5 + $0x900] ss:$16 sps:$4 sm:$0xff]  }
 0x142   :  { %5022 = vmatprep.subr.bf16.mxu0 %v9301_v63  ;;  %5514 = vmatprep.subr.bf16.mxu1 %v9304_v0  ;;  %v9386_v63 = vld [vmem:[#allocation5 + $0x908] ss:$16 sps:$4 sm:$0xff]   ;;  %v9391_v0 = vld [vmem:[#allocation5 + $0x924] ss:$16 sps:$4 sm:$0xff]  }
 0x145   :  { %5023 = vmatpush1.bf16.msra.mxu0 %v9299_v1  ;;  %5515 = vmatpush1.bf16.msra.mxu1 %v9302_v2  ;;  %v9394_v1 = vld [vmem:[#allocation5 + $0x92c] ss:$16 sps:$4 sm:$0xff]   ;;  %v9389_v2 = vld [vmem:[#allocation5 + $0x920] ss:$16 sps:$4 sm:$0xff]  }
 0x146   :  { %5024 = vmatprep.subr.bf16.mxu0 %v9307_v3  ;;  %5516 = vmatprep.subr.bf16.mxu1 %v9310_v4  ;;  %v9392_v3 = vld [vmem:[#allocation5 + $0x928] ss:$16 sps:$4 sm:$0xff]   ;;  %v9397_v4 = vld [vmem:[#allocation5 + $0x944] ss:$16 sps:$4 sm:$0xff]  }
 0x149   :  { %5025 = vmatpush1.bf16.msra.mxu0 %v9305_v5  ;;  %5517 = vmatpush1.bf16.msra.mxu1 %v9308_v6  ;;  %v9400_v5 = vld [vmem:[#allocation5 + $0x94c] ss:$16 sps:$4 sm:$0xff]   ;;  %v9395_v6 = vld [vmem:[#allocation5 + $0x940] ss:$16 sps:$4 sm:$0xff]  }
 0x14a   :  { %5026 = vmatprep.subr.bf16.mxu0 %v9313_v7  ;;  %5518 = vmatprep.subr.bf16.mxu1 %v9316_v8  ;;  %v9398_v7 = vld [vmem:[#allocation5 + $0x948] ss:$16 sps:$4 sm:$0xff]   ;;  %v9403_v8 = vld [vmem:[#allocation5 + $0x964] ss:$16 sps:$4 sm:$0xff]  }
 0x14d   :  { %5027 = vmatpush1.bf16.msra.mxu0 %v9311_v9  ;;  %5519 = vmatpush1.bf16.msra.mxu1 %v9314_v10  ;;  %v9406_v9 = vld [vmem:[#allocation5 + $0x96c] ss:$16 sps:$4 sm:$0xff]   ;;  %v9401_v10 = vld [vmem:[#allocation5 + $0x960] ss:$16 sps:$4 sm:$0xff]  }
 0x14e   :  { %5028 = vmatprep.subr.bf16.mxu0 %v9319_v11  ;;  %5520 = vmatprep.subr.bf16.mxu1 %v9322_v12  ;;  %v9404_v11 = vld [vmem:[#allocation5 + $0x968] ss:$16 sps:$4 sm:$0xff]   ;;  %v9409_v12 = vld [vmem:[#allocation5 + $0x984] ss:$16 sps:$4 sm:$0xff]  }
 0x151   :  { %5029 = vmatpush1.bf16.msra.mxu0 %v9317_v15  ;;  %5521 = vmatpush1.bf16.msra.mxu1 %v9320_v16  ;;  %v9412_v15 = vld [vmem:[#allocation5 + $0x98c] ss:$16 sps:$4 sm:$0xff]   ;;  %v9407_v16 = vld [vmem:[#allocation5 + $0x980] ss:$16 sps:$4 sm:$0xff]  }
 0x152   :  { %5030 = vmatprep.subr.bf16.mxu0 %v9325_v17  ;;  %5522 = vmatprep.subr.bf16.mxu1 %v9328_v18  ;;  %v9410_v17 = vld [vmem:[#allocation5 + $0x988] ss:$16 sps:$4 sm:$0xff]   ;;  %v9415_v18 = vld [vmem:[#allocation5 + $0x9a4] ss:$16 sps:$4 sm:$0xff]  }
 0x155   :  { %5031 = vmatpush1.bf16.msra.mxu0 %v9323_v19  ;;  %5523 = vmatpush1.bf16.msra.mxu1 %v9326_v20  ;;  %v9418_v19 = vld [vmem:[#allocation5 + $0x9ac] ss:$16 sps:$4 sm:$0xff]   ;;  %v9413_v20 = vld [vmem:[#allocation5 + $0x9a0] ss:$16 sps:$4 sm:$0xff]  }
 0x156   :  { %5032 = vmatprep.subr.bf16.mxu0 %v9331_v21  ;;  %5524 = vmatprep.subr.bf16.mxu1 %v9334_v22  ;;  %v9416_v21 = vld [vmem:[#allocation5 + $0x9a8] ss:$16 sps:$4 sm:$0xff]   ;;  %v9421_v22 = vld [vmem:[#allocation5 + $0x9c4] ss:$16 sps:$4 sm:$0xff]  }
 0x159   :  { %5033 = vmatpush1.bf16.msra.mxu0 %v9329_v23  ;;  %5525 = vmatpush1.bf16.msra.mxu1 %v9332_v26  ;;  %v9424_v23 = vld [vmem:[#allocation5 + $0x9cc] ss:$16 sps:$4 sm:$0xff]   ;;  %v9419_v26 = vld [vmem:[#allocation5 + $0x9c0] ss:$16 sps:$4 sm:$0xff]  }
 0x15a   :  { %5043 = vmatprep.subr.bf16.mxu0 %v9337_v27  ;;  %5535 = vmatprep.subr.bf16.mxu1 %v9340_v13  ;;  %v9422_v27 = vld [vmem:[#allocation5 + $0x9c8] ss:$16 sps:$4 sm:$0xff]   ;;  %v9427_v13 = vld [vmem:[#allocation5 + $0x9e4] ss:$16 sps:$4 sm:$0xff]  }
 0x15c   :  { %5035 = vmatmul.mubr.bf16.vlgmr.msra.gmra.mrb[0].mxu0 %v914_v29  ;;  %5527 = vmatmul.mubr.bf16.vlgmr.msra.gmra.mrb[0].mxu1 %v914_v29  ;;  %v9425_v29 = vld [vmem:[#allocation5 + $0x9e0] ss:$16 sps:$4 sm:$0xff]  }
 0x15d   :  { %5044 = vmatpush1.bf16.msra.mxu0 %v9335_v30  ;;  %5536 = vmatpush1.bf16.msra.mxu1 %v9338_v14  ;;  %v9428_v30 = vld [vmem:[#allocation5 + $0x9e8] ss:$16 sps:$4 sm:$0xff]   ;;  %v9433_v14 = vld [vmem:[#allocation5 + $0xa04] ss:$16 sps:$4 sm:$0xff]  }
 0x15e   :  { %5045 = vmatprep.subr.bf16.mxu0 %v9343_v31  ;;  %5537 = vmatprep.subr.bf16.mxu1 %v9346_v32  ;;  %v9436_v31 = vld [vmem:[#allocation5 + $0xa0c] ss:$16 sps:$4 sm:$0xff]   ;;  %v10731_v32 = vrot.slane %v10718_v52, %v10678_v49  ;;  %v9440_v52 = vld [vmem:[#allocation5 + $0xa28] ss:$16 sps:$4 sm:$0xff]  }
 0x15f   :  { %5075 = vmatprep.mubr.bf16.mxu0 %v10725_v33  ;;  %5567 = vmatprep.mubr.bf16.mxu1 %v10725_v33 }
 0x161   :  { %5046 = vmatpush1.bf16.msra.mxu0 %v9341_v24  ;;  %5538 = vmatpush1.bf16.msra.mxu1 %v9344_v34  ;;  %v9431_v24 = vld [vmem:[#allocation5 + $0xa00] ss:$16 sps:$4 sm:$0xff]   ;;  %v9434_v34 = vld [vmem:[#allocation5 + $0xa08] ss:$16 sps:$4 sm:$0xff]  }
 0x162   :  { %5047 = vmatprep.subr.bf16.mxu0 %v9349_v25  ;;  %5539 = vmatprep.subr.bf16.mxu1 %v9352_v35  ;;  %v9439_v25 = vld [vmem:[#allocation5 + $0xa24] ss:$16 sps:$4 sm:$0xff]   ;;  %v9442_v35 = vld [vmem:[#allocation5 + $0xa2c] ss:$16 sps:$4 sm:$0xff]  }
 0x165   :  { %5048 = vmatpush1.bf16.msra.mxu0 %v9347_v36  ;;  %5540 = vmatpush1.bf16.msra.mxu1 %v9350_v37  ;;  %v964_v36 = vcombine.high %v10725_v33, %v10725_v33  ;;  %v9437_v37 = vld [vmem:[#allocation5 + $0xa20] ss:$16 sps:$4 sm:$0xff]   ;;  %v9451_v33 = vld [vmem:[#allocation5 + $0xa64] ss:$16 sps:$4 sm:$0xff]  }
 0x166   :  { %5049 = vmatprep.subr.bf16.mxu0 %v9355_v38  ;;  %5541 = vmatprep.subr.bf16.mxu1 %v9358_v39  ;;  %v9445_v38 = vld [vmem:[#allocation5 + $0xa44] ss:$16 sps:$4 sm:$0xff]   ;;  %v9448_v39 = vld [vmem:[#allocation5 + $0xa4c] ss:$16 sps:$4 sm:$0xff]  }
 0x169   :  { %5050 = vmatpush1.bf16.msra.mxu0 %v9353_v40  ;;  %5542 = vmatpush1.bf16.msra.mxu1 %v9356_v41  ;;  %v9443_v40 = vld [vmem:[#allocation5 + $0xa40] ss:$16 sps:$4 sm:$0xff]   ;;  %v9446_v41 = vld [vmem:[#allocation5 + $0xa48] ss:$16 sps:$4 sm:$0xff]  }
 0x16a   :  { %5051 = vmatprep.subr.bf16.mxu0 %v9361_v42  ;;  %5543 = vmatprep.subr.bf16.mxu1 %v9364_v43  ;;  %v9454_v42 = vld [vmem:[#allocation5 + $0xa6c] ss:$16 sps:$4 sm:$0xff]   ;;  %v9449_v43 = vld [vmem:[#allocation5 + $0xa60] ss:$16 sps:$4 sm:$0xff]  }
 0x16d   :  { %5052 = vmatpush1.bf16.msra.mxu0 %v9359_v44  ;;  %5544 = vmatpush1.bf16.msra.mxu1 %v9362_v45  ;;  %v9452_v44 = vld [vmem:[#allocation5 + $0xa68] ss:$16 sps:$4 sm:$0xff]   ;;  %v9457_v45 = vld [vmem:[#allocation5 + $0xa84] ss:$16 sps:$4 sm:$0xff]  }
 0x16e   :  { %5053 = vmatprep.subr.bf16.mxu0 %v9367_v46  ;;  %5545 = vmatprep.subr.bf16.mxu1 %v9370_v47  ;;  %v9460_v46 = vld [vmem:[#allocation5 + $0xa8c] ss:$16 sps:$4 sm:$0xff]   ;;  %v9455_v47 = vld [vmem:[#allocation5 + $0xa80] ss:$16 sps:$4 sm:$0xff]  }
 0x171   :  { %5054 = vmatpush1.bf16.msra.mxu0 %v9365_v48  ;;  %5546 = vmatpush1.bf16.msra.mxu1 %v9368_v50  ;;  %v9458_v48 = vld [vmem:[#allocation5 + $0xa88] ss:$16 sps:$4 sm:$0xff]   ;;  %v9463_v50 = vld [vmem:[#allocation5 + $0xaa4] ss:$16 sps:$4 sm:$0xff]  }
 0x172   :  { %5055 = vmatprep.subr.bf16.mxu0 %v9373_v51  ;;  %5547 = vmatprep.subr.bf16.mxu1 %v9376_v53  ;;  %v9466_v51 = vld [vmem:[#allocation5 + $0xaac] ss:$16 sps:$4 sm:$0xff]   ;;  %v9461_v53 = vld [vmem:[#allocation5 + $0xaa0] ss:$16 sps:$4 sm:$0xff]  }
 0x175   :  { %5056 = vmatpush1.bf16.msra.mxu0 %v9371_v54  ;;  %5548 = vmatpush1.bf16.msra.mxu1 %v9374_v55  ;;  %v9464_v54 = vld [vmem:[#allocation5 + $0xaa8] ss:$16 sps:$4 sm:$0xff]   ;;  %v9469_v55 = vld [vmem:[#allocation5 + $0xac4] ss:$16 sps:$4 sm:$0xff]  }
 0x176   :  { %5057 = vmatprep.subr.bf16.mxu0 %v9379_v56  ;;  %5549 = vmatprep.subr.bf16.mxu1 %v9382_v57  ;;  %v9472_v56 = vld [vmem:[#allocation5 + $0xacc] ss:$16 sps:$4 sm:$0xff]   ;;  %v9467_v57 = vld [vmem:[#allocation5 + $0xac0] ss:$16 sps:$4 sm:$0xff]  }
 0x179   :  { %5058 = vmatpush1.bf16.msra.mxu0 %v9377_v58  ;;  %5550 = vmatpush1.bf16.msra.mxu1 %v9380_v59  ;;  %v9470_v58 = vld [vmem:[#allocation5 + $0xac8] ss:$16 sps:$4 sm:$0xff]   ;;  %v9475_v59 = vld [vmem:[#allocation5 + $0xae4] ss:$16 sps:$4 sm:$0xff]  }
 0x17a   :  { %5059 = vmatprep.subr.bf16.mxu0 %v9385_v60  ;;  %5551 = vmatprep.subr.bf16.mxu1 %v9388_v61  ;;  %v9478_v60 = vld [vmem:[#allocation5 + $0xaec] ss:$16 sps:$4 sm:$0xff]   ;;  %v9473_v61 = vld [vmem:[#allocation5 + $0xae0] ss:$16 sps:$4 sm:$0xff]  }
 0x17d   :  { %5060 = vmatpush1.bf16.msra.mxu0 %v9383_v62  ;;  %5552 = vmatpush1.bf16.msra.mxu1 %v9386_v63  ;;  %v9476_v62 = vld [vmem:[#allocation5 + $0xae8] ss:$16 sps:$4 sm:$0xff]   ;;  %v9481_v63 = vld [vmem:[#allocation5 + $0xb04] ss:$16 sps:$4 sm:$0xff]  }
 0x17e   :  { %5061 = vmatprep.subr.bf16.mxu0 %v9391_v0  ;;  %5553 = vmatprep.subr.bf16.mxu1 %v9394_v1  ;;  %v9484_v0 = vld [vmem:[#allocation5 + $0xb0c] ss:$16 sps:$4 sm:$0xff]   ;;  %v9479_v1 = vld [vmem:[#allocation5 + $0xb00] ss:$16 sps:$4 sm:$0xff]  }
 0x181   :  { %5062 = vmatpush1.bf16.msra.mxu0 %v9389_v2  ;;  %5554 = vmatpush1.bf16.msra.mxu1 %v9392_v3  ;;  %v9482_v2 = vld [vmem:[#allocation5 + $0xb08] ss:$16 sps:$4 sm:$0xff]   ;;  %v9487_v3 = vld [vmem:[#allocation5 + $0xb24] ss:$16 sps:$4 sm:$0xff]  }
 0x182   :  { %5063 = vmatprep.subr.bf16.mxu0 %v9397_v4  ;;  %5555 = vmatprep.subr.bf16.mxu1 %v9400_v5  ;;  %v9490_v4 = vld [vmem:[#allocation5 + $0xb2c] ss:$16 sps:$4 sm:$0xff]   ;;  %v9485_v5 = vld [vmem:[#allocation5 + $0xb20] ss:$16 sps:$4 sm:$0xff]  }
 0x185   :  { %5064 = vmatpush1.bf16.msra.mxu0 %v9395_v6  ;;  %5556 = vmatpush1.bf16.msra.mxu1 %v9398_v7  ;;  %v9488_v6 = vld [vmem:[#allocation5 + $0xb28] ss:$16 sps:$4 sm:$0xff]   ;;  %v9493_v7 = vld [vmem:[#allocation5 + $0xb44] ss:$16 sps:$4 sm:$0xff]  }
 0x186   :  { %5065 = vmatprep.subr.bf16.mxu0 %v9403_v8  ;;  %5557 = vmatprep.subr.bf16.mxu1 %v9406_v9  ;;  %v9496_v8 = vld [vmem:[#allocation5 + $0xb4c] ss:$16 sps:$4 sm:$0xff]   ;;  %v9491_v9 = vld [vmem:[#allocation5 + $0xb40] ss:$16 sps:$4 sm:$0xff]  }
 0x189   :  { %5066 = vmatpush1.bf16.msra.mxu0 %v9401_v10  ;;  %5558 = vmatpush1.bf16.msra.mxu1 %v9404_v11  ;;  %v9494_v10 = vld [vmem:[#allocation5 + $0xb48] ss:$16 sps:$4 sm:$0xff]   ;;  %v9499_v11 = vld [vmem:[#allocation5 + $0xb64] ss:$16 sps:$4 sm:$0xff]  }
 0x18a   :  { %5067 = vmatprep.subr.bf16.mxu0 %v9409_v12  ;;  %5559 = vmatprep.subr.bf16.mxu1 %v9412_v15  ;;  %v9502_v12 = vld [vmem:[#allocation5 + $0xb6c] ss:$16 sps:$4 sm:$0xff]   ;;  %v9497_v15 = vld [vmem:[#allocation5 + $0xb60] ss:$16 sps:$4 sm:$0xff]  }
 0x18d   :  { %5068 = vmatpush1.bf16.msra.mxu0 %v9407_v16  ;;  %5560 = vmatpush1.bf16.msra.mxu1 %v9410_v17  ;;  %v9500_v16 = vld [vmem:[#allocation5 + $0xb68] ss:$16 sps:$4 sm:$0xff]   ;;  %v9505_v17 = vld [vmem:[#allocation5 + $0xb84] ss:$16 sps:$4 sm:$0xff]  }
 0x18e   :  { %5069 = vmatprep.subr.bf16.mxu0 %v9415_v18  ;;  %5561 = vmatprep.subr.bf16.mxu1 %v9418_v19  ;;  %v9508_v18 = vld [vmem:[#allocation5 + $0xb8c] ss:$16 sps:$4 sm:$0xff]   ;;  %v9503_v19 = vld [vmem:[#allocation5 + $0xb80] ss:$16 sps:$4 sm:$0xff]  }
 0x191   :  { %5070 = vmatpush1.bf16.msra.mxu0 %v9413_v20  ;;  %5562 = vmatpush1.bf16.msra.mxu1 %v9416_v21  ;;  %v9506_v20 = vld [vmem:[#allocation5 + $0xb88] ss:$16 sps:$4 sm:$0xff]   ;;  %v9511_v21 = vld [vmem:[#allocation5 + $0xba4] ss:$16 sps:$4 sm:$0xff]  }
 0x192   :  { %5071 = vmatprep.subr.bf16.mxu0 %v9421_v22  ;;  %5563 = vmatprep.subr.bf16.mxu1 %v9424_v23  ;;  %v9514_v22 = vld [vmem:[#allocation5 + $0xbac] ss:$16 sps:$4 sm:$0xff]   ;;  %v9509_v23 = vld [vmem:[#allocation5 + $0xba0] ss:$16 sps:$4 sm:$0xff]  }
 0x195   :  { %5072 = vmatpush1.bf16.msra.mxu0 %v9419_v26  ;;  %5564 = vmatpush1.bf16.msra.mxu1 %v9422_v27  ;;  %v9512_v26 = vld [vmem:[#allocation5 + $0xba8] ss:$16 sps:$4 sm:$0xff]   ;;  %v9517_v27 = vld [vmem:[#allocation5 + $0xbc4] ss:$16 sps:$4 sm:$0xff]  }
 0x196   :  { %5073 = vmatprep.subr.bf16.mxu0 %v9427_v13  ;;  %5565 = vmatprep.subr.bf16.mxu1 %v9430_v28  ;;  %v9520_v13 = vld [vmem:[#allocation5 + $0xbcc] ss:$16 sps:$4 sm:$0xff]  }
 0x197   :  { %v10401_v28 = vld [vmem:[%s10845_s0 + $0x8] sm:$0xff] }
 0x199   :  { %5074 = vmatpush1.bf16.msra.mxu0 %v9425_v29  ;;  %5566 = vmatpush1.bf16.msra.mxu1 %v9428_v30  ;;  %v917_v29 = vcombine.high %v10401_v28, %v10401_v28  ;;  %v9515_v30 = vld [vmem:[#allocation5 + $0xbc0] ss:$16 sps:$4 sm:$0xff]   ;;  %v9602_v28 = vld [vmem:[#allocation5 + $0xd88] ss:$16 sps:$4 sm:$0xff]  }
 0x19a   :  { %5084 = vmatprep.subr.bf16.mxu0 %v9433_v14  ;;  %5576 = vmatprep.subr.bf16.mxu1 %v9436_v31  ;;  %v9518_v14 = vld [vmem:[#allocation5 + $0xbc8] ss:$16 sps:$4 sm:$0xff]   ;;  %v9523_v31 = vld [vmem:[#allocation5 + $0xbe4] ss:$16 sps:$4 sm:$0xff]  }
 0x19c   :  { %5076 = vmatmul.mubr.bf16.vlgmr.msra.gmra.mrb[0].mxu0 %v10731_v32  ;;  %5568 = vmatmul.mubr.bf16.vlgmr.msra.gmra.mrb[0].mxu1 %v10731_v32 }
 0x19d   :  { %5085 = vmatpush1.bf16.msra.mxu0 %v9431_v24  ;;  %5577 = vmatpush1.bf16.msra.mxu1 %v9434_v34  ;;  %v9526_v24 = vld [vmem:[#allocation5 + $0xbec] ss:$16 sps:$4 sm:$0xff]   ;;  %v10741_v34 = vrot.slane %v917_v29, %v10678_v49  ;;  %v9607_v29 = vld [vmem:[#allocation5 + $0xda4] ss:$16 sps:$4 sm:$0xff]  }
 0x19e   :  { %5086 = vmatprep.subr.bf16.mxu0 %v9439_v25  ;;  %5578 = vmatprep.subr.bf16.mxu1 %v9442_v35  ;;  %v9521_v25 = vld [vmem:[#allocation5 + $0xbe0] ss:$16 sps:$4 sm:$0xff]   ;;  %v9524_v35 = vld [vmem:[#allocation5 + $0xbe8] ss:$16 sps:$4 sm:$0xff]  }
 0x19f   :  { %5116 = vmatprep.mubr.bf16.mxu0 %v964_v36  ;;  %5608 = vmatprep.mubr.bf16.mxu1 %v964_v36  ;;  %v9529_v36 = vld [vmem:[#allocation5 + $0xc04] ss:$16 sps:$4 sm:$0xff]  }
 0x1a1   :  { %5087 = vmatpush1.bf16.msra.mxu0 %v9437_v37  ;;  %5579 = vmatpush1.bf16.msra.mxu1 %v9440_v52  ;;  %v9532_v37 = vld [vmem:[#allocation5 + $0xc0c] ss:$16 sps:$4 sm:$0xff]   ;;  %v933_v52 = vcombine.high %v10741_v34, %v10741_v34 }
 0x1a2   :  { %5088 = vmatprep.subr.bf16.mxu0 %v9445_v38  ;;  %5580 = vmatprep.subr.bf16.mxu1 %v9448_v39  ;;  %v962_v38 = vcombine.high %v10731_v32, %v10731_v32  ;;  %v9527_v39 = vld [vmem:[#allocation5 + $0xc00] ss:$16 sps:$4 sm:$0xff]   ;;  %v9541_v32 = vld [vmem:[#allocation5 + $0xc44] ss:$16 sps:$4 sm:$0xff]  }
 0x1a5   :  { %5089 = vmatpush1.bf16.msra.mxu0 %v9443_v40  ;;  %5581 = vmatpush1.bf16.msra.mxu1 %v9446_v41  ;;  %v9530_v40 = vld [vmem:[#allocation5 + $0xc08] ss:$16 sps:$4 sm:$0xff]   ;;  %v9535_v41 = vld [vmem:[#allocation5 + $0xc24] ss:$16 sps:$4 sm:$0xff]  }
 0x1a6   :  { %5090 = vmatprep.subr.bf16.mxu0 %v9451_v33  ;;  %5582 = vmatprep.subr.bf16.mxu1 %v9454_v42  ;;  %v9538_v33 = vld [vmem:[#allocation5 + $0xc2c] ss:$16 sps:$4 sm:$0xff]   ;;  %v10748_v42 = vrot.slane %v933_v52, %v10678_v49 }
 0x1a7   :  { %v9622_v52 = vld [vmem:[#allocation5 + $0xdec] ss:$16 sps:$4 sm:$0xff]  }
 0x1a9   :  { %5091 = vmatpush1.bf16.msra.mxu0 %v9449_v43  ;;  %5583 = vmatpush1.bf16.msra.mxu1 %v9452_v44  ;;  %v9533_v43 = vld [vmem:[#allocation5 + $0xc20] ss:$16 sps:$4 sm:$0xff]   ;;  %v9536_v44 = vld [vmem:[#allocation5 + $0xc28] ss:$16 sps:$4 sm:$0xff]  }
 0x1aa   :  { %5092 = vmatprep.subr.bf16.mxu0 %v9457_v45  ;;  %5584 = vmatprep.subr.bf16.mxu1 %v9460_v46  ;;  %v9544_v45 = vld [vmem:[#allocation5 + $0xc4c] ss:$16 sps:$4 sm:$0xff]   ;;  %v9539_v46 = vld [vmem:[#allocation5 + $0xc40] ss:$16 sps:$4 sm:$0xff]  }
 0x1ad   :  { %5093 = vmatpush1.bf16.msra.mxu0 %v9455_v47  ;;  %5585 = vmatpush1.bf16.msra.mxu1 %v9458_v48  ;;  %v9542_v47 = vld [vmem:[#allocation5 + $0xc48] ss:$16 sps:$4 sm:$0xff]   ;;  %v9547_v48 = vld [vmem:[#allocation5 + $0xc64] ss:$16 sps:$4 sm:$0xff]  }
 0x1ae   :  { %5094 = vmatprep.subr.bf16.mxu0 %v9463_v50  ;;  %5586 = vmatprep.subr.bf16.mxu1 %v9466_v51  ;;  %v9550_v50 = vld [vmem:[#allocation5 + $0xc6c] ss:$16 sps:$4 sm:$0xff]   ;;  %v9545_v51 = vld [vmem:[#allocation5 + $0xc60] ss:$16 sps:$4 sm:$0xff]  }
 0x1b1   :  { %5095 = vmatpush1.bf16.msra.mxu0 %v9461_v53  ;;  %5587 = vmatpush1.bf16.msra.mxu1 %v9464_v54  ;;  %v9548_v53 = vld [vmem:[#allocation5 + $0xc68] ss:$16 sps:$4 sm:$0xff]   ;;  %v9553_v54 = vld [vmem:[#allocation5 + $0xc84] ss:$16 sps:$4 sm:$0xff]  }
 0x1b2   :  { %5096 = vmatprep.subr.bf16.mxu0 %v9469_v55  ;;  %5588 = vmatprep.subr.bf16.mxu1 %v9472_v56  ;;  %v9556_v55 = vld [vmem:[#allocation5 + $0xc8c] ss:$16 sps:$4 sm:$0xff]   ;;  %v9551_v56 = vld [vmem:[#allocation5 + $0xc80] ss:$16 sps:$4 sm:$0xff]  }
 0x1b5   :  { %5097 = vmatpush1.bf16.msra.mxu0 %v9467_v57  ;;  %5589 = vmatpush1.bf16.msra.mxu1 %v9470_v58  ;;  %v9554_v57 = vld [vmem:[#allocation5 + $0xc88] ss:$16 sps:$4 sm:$0xff]   ;;  %v9559_v58 = vld [vmem:[#allocation5 + $0xca4] ss:$16 sps:$4 sm:$0xff]  }
 0x1b6   :  { %5098 = vmatprep.subr.bf16.mxu0 %v9475_v59  ;;  %5590 = vmatprep.subr.bf16.mxu1 %v9478_v60  ;;  %v9562_v59 = vld [vmem:[#allocation5 + $0xcac] ss:$16 sps:$4 sm:$0xff]   ;;  %v9557_v60 = vld [vmem:[#allocation5 + $0xca0] ss:$16 sps:$4 sm:$0xff]  }
 0x1b9   :  { %5099 = vmatpush1.bf16.msra.mxu0 %v9473_v61  ;;  %5591 = vmatpush1.bf16.msra.mxu1 %v9476_v62  ;;  %v9560_v61 = vld [vmem:[#allocation5 + $0xca8] ss:$16 sps:$4 sm:$0xff]   ;;  %v9565_v62 = vld [vmem:[#allocation5 + $0xcc4] ss:$16 sps:$4 sm:$0xff]  }
 0x1ba   :  { %5100 = vmatprep.subr.bf16.mxu0 %v9481_v63  ;;  %5592 = vmatprep.subr.bf16.mxu1 %v9484_v0  ;;  %v9568_v63 = vld [vmem:[#allocation5 + $0xccc] ss:$16 sps:$4 sm:$0xff]   ;;  %v9563_v0 = vld [vmem:[#allocation5 + $0xcc0] ss:$16 sps:$4 sm:$0xff]  }
 0x1bd   :  { %5101 = vmatpush1.bf16.msra.mxu0 %v9479_v1  ;;  %5593 = vmatpush1.bf16.msra.mxu1 %v9482_v2  ;;  %v9566_v1 = vld [vmem:[#allocation5 + $0xcc8] ss:$16 sps:$4 sm:$0xff]   ;;  %v9571_v2 = vld [vmem:[#allocation5 + $0xce4] ss:$16 sps:$4 sm:$0xff]  }
 0x1be   :  { %5102 = vmatprep.subr.bf16.mxu0 %v9487_v3  ;;  %5594 = vmatprep.subr.bf16.mxu1 %v9490_v4  ;;  %v9574_v3 = vld [vmem:[#allocation5 + $0xcec] ss:$16 sps:$4 sm:$0xff]   ;;  %v9569_v4 = vld [vmem:[#allocation5 + $0xce0] ss:$16 sps:$4 sm:$0xff]  }
 0x1c1   :  { %5103 = vmatpush1.bf16.msra.mxu0 %v9485_v5  ;;  %5595 = vmatpush1.bf16.msra.mxu1 %v9488_v6  ;;  %v9572_v5 = vld [vmem:[#allocation5 + $0xce8] ss:$16 sps:$4 sm:$0xff]   ;;  %v9577_v6 = vld [vmem:[#allocation5 + $0xd04] ss:$16 sps:$4 sm:$0xff]  }
 0x1c2   :  { %5104 = vmatprep.subr.bf16.mxu0 %v9493_v7  ;;  %5596 = vmatprep.subr.bf16.mxu1 %v9496_v8  ;;  %v9580_v7 = vld [vmem:[#allocation5 + $0xd0c] ss:$16 sps:$4 sm:$0xff]   ;;  %v9575_v8 = vld [vmem:[#allocation5 + $0xd00] ss:$16 sps:$4 sm:$0xff]  }
 0x1c5   :  { %5105 = vmatpush1.bf16.msra.mxu0 %v9491_v9  ;;  %5597 = vmatpush1.bf16.msra.mxu1 %v9494_v10  ;;  %v9578_v9 = vld [vmem:[#allocation5 + $0xd08] ss:$16 sps:$4 sm:$0xff]   ;;  %v9583_v10 = vld [vmem:[#allocation5 + $0xd24] ss:$16 sps:$4 sm:$0xff]  }
 0x1c6   :  { %5106 = vmatprep.subr.bf16.mxu0 %v9499_v11  ;;  %5598 = vmatprep.subr.bf16.mxu1 %v9502_v12  ;;  %v9586_v11 = vld [vmem:[#allocation5 + $0xd2c] ss:$16 sps:$4 sm:$0xff]   ;;  %v9581_v12 = vld [vmem:[#allocation5 + $0xd20] ss:$16 sps:$4 sm:$0xff]  }
 0x1c9   :  { %5107 = vmatpush1.bf16.msra.mxu0 %v9497_v15  ;;  %5599 = vmatpush1.bf16.msra.mxu1 %v9500_v16  ;;  %v9584_v15 = vld [vmem:[#allocation5 + $0xd28] ss:$16 sps:$4 sm:$0xff]   ;;  %v9589_v16 = vld [vmem:[#allocation5 + $0xd44] ss:$16 sps:$4 sm:$0xff]  }
 0x1ca   :  { %5108 = vmatprep.subr.bf16.mxu0 %v9505_v17  ;;  %5600 = vmatprep.subr.bf16.mxu1 %v9508_v18  ;;  %v9592_v17 = vld [vmem:[#allocation5 + $0xd4c] ss:$16 sps:$4 sm:$0xff]   ;;  %v9587_v18 = vld [vmem:[#allocation5 + $0xd40] ss:$16 sps:$4 sm:$0xff]  }
 0x1cd   :  { %5109 = vmatpush1.bf16.msra.mxu0 %v9503_v19  ;;  %5601 = vmatpush1.bf16.msra.mxu1 %v9506_v20  ;;  %v9590_v19 = vld [vmem:[#allocation5 + $0xd48] ss:$16 sps:$4 sm:$0xff]   ;;  %v9595_v20 = vld [vmem:[#allocation5 + $0xd64] ss:$16 sps:$4 sm:$0xff]  }
 0x1ce   :  { %5110 = vmatprep.subr.bf16.mxu0 %v9511_v21  ;;  %5602 = vmatprep.subr.bf16.mxu1 %v9514_v22  ;;  %v9598_v21 = vld [vmem:[#allocation5 + $0xd6c] ss:$16 sps:$4 sm:$0xff]   ;;  %v9593_v22 = vld [vmem:[#allocation5 + $0xd60] ss:$16 sps:$4 sm:$0xff]  }
 0x1d1   :  { %5111 = vmatpush1.bf16.msra.mxu0 %v9509_v23  ;;  %5603 = vmatpush1.bf16.msra.mxu1 %v9512_v26  ;;  %v9596_v23 = vld [vmem:[#allocation5 + $0xd68] ss:$16 sps:$4 sm:$0xff]   ;;  %v9601_v26 = vld [vmem:[#allocation5 + $0xd84] ss:$16 sps:$4 sm:$0xff]  }
 0x1d2   :  { %5112 = vmatprep.subr.bf16.mxu0 %v9517_v27  ;;  %5604 = vmatprep.subr.bf16.mxu1 %v9520_v13  ;;  %v9604_v27 = vld [vmem:[#allocation5 + $0xd8c] ss:$16 sps:$4 sm:$0xff]   ;;  %v9599_v13 = vld [vmem:[#allocation5 + $0xd80] ss:$16 sps:$4 sm:$0xff]  }
 0x1d5   :  { %5113 = vmatpush1.bf16.msra.mxu0 %v9515_v30  ;;  %5605 = vmatpush1.bf16.msra.mxu1 %v9518_v14  ;;  %v9610_v30 = vld [vmem:[#allocation5 + $0xdac] ss:$16 sps:$4 sm:$0xff]   ;;  %v9605_v14 = vld [vmem:[#allocation5 + $0xda0] ss:$16 sps:$4 sm:$0xff]  }
 0x1d6   :  { %5114 = vmatprep.subr.bf16.mxu0 %v9523_v31  ;;  %5606 = vmatprep.subr.bf16.mxu1 %v9526_v24  ;;  %v9608_v31 = vld [vmem:[#allocation5 + $0xda8] ss:$16 sps:$4 sm:$0xff]   ;;  %v9613_v24 = vld [vmem:[#allocation5 + $0xdc4] ss:$16 sps:$4 sm:$0xff]  }
 0x1d9   :  { %5115 = vmatpush1.bf16.msra.mxu0 %v9521_v25  ;;  %5607 = vmatpush1.bf16.msra.mxu1 %v9524_v35  ;;  %v9616_v25 = vld [vmem:[#allocation5 + $0xdcc] ss:$16 sps:$4 sm:$0xff]   ;;  %v9611_v35 = vld [vmem:[#allocation5 + $0xdc0] ss:$16 sps:$4 sm:$0xff]  }
 0x1da   :  { %5125 = vmatprep.subr.bf16.mxu0 %v9529_v36  ;;  %5617 = vmatprep.subr.bf16.mxu1 %v9532_v37  ;;  %v9614_v36 = vld [vmem:[#allocation5 + $0xdc8] ss:$16 sps:$4 sm:$0xff]   ;;  %v9619_v37 = vld [vmem:[#allocation5 + $0xde4] ss:$16 sps:$4 sm:$0xff]  }
 0x1dc   :  { %5117 = vmatmul.mubr.bf16.vlgmr.msra.gmra.mrb[0].mxu0 %v962_v38  ;;  %5609 = vmatmul.mubr.bf16.vlgmr.msra.gmra.mrb[0].mxu1 %v962_v38  ;;  %v9617_v38 = vld [vmem:[#allocation5 + $0xde0] ss:$16 sps:$4 sm:$0xff]  }
 0x1dd   :  { %5126 = vmatpush1.bf16.msra.mxu0 %v9527_v39  ;;  %5618 = vmatpush1.bf16.msra.mxu1 %v9530_v40  ;;  %v9620_v39 = vld [vmem:[#allocation5 + $0xde8] ss:$16 sps:$4 sm:$0xff]   ;;  %v9626_v40 = vld [vmem:[#allocation5 + $0xe04] ss:$16 sps:$4 sm:$0xff]  }
 0x1de   :  { %5127 = vmatprep.subr.bf16.mxu0 %v9535_v41  ;;  %5619 = vmatprep.subr.bf16.mxu1 %v9538_v33  ;;  %v9629_v41 = vld [vmem:[#allocation5 + $0xe0c] ss:$16 sps:$4 sm:$0xff]   ;;  %v10754_v33 = vrot.slane %v10741_v34, %v10678_v49  ;;  %v9633_v34 = vld [vmem:[#allocation5 + $0xe28] ss:$16 sps:$4 sm:$0xff]  }
 0x1df   :  { %5157 = vmatprep.mubr.bf16.mxu0 %v10748_v42  ;;  %5649 = vmatprep.mubr.bf16.mxu1 %v10748_v42 }
 0x1e1   :  { %5128 = vmatpush1.bf16.msra.mxu0 %v9533_v43  ;;  %5620 = vmatpush1.bf16.msra.mxu1 %v9536_v44  ;;  %v9624_v43 = vld [vmem:[#allocation5 + $0xe00] ss:$16 sps:$4 sm:$0xff]   ;;  %v9627_v44 = vld [vmem:[#allocation5 + $0xe08] ss:$16 sps:$4 sm:$0xff]  }
 0x1e2   :  { %5129 = vmatprep.subr.bf16.mxu0 %v9541_v32  ;;  %5621 = vmatprep.subr.bf16.mxu1 %v9544_v45  ;;  %v9632_v32 = vld [vmem:[#allocation5 + $0xe24] ss:$16 sps:$4 sm:$0xff]   ;;  %v9635_v45 = vld [vmem:[#allocation5 + $0xe2c] ss:$16 sps:$4 sm:$0xff]  }
 0x1e5   :  { %5130 = vmatpush1.bf16.msra.mxu0 %v9539_v46  ;;  %5622 = vmatpush1.bf16.msra.mxu1 %v9542_v47  ;;  %v965_v46 = vcombine.high %v10748_v42, %v10748_v42  ;;  %v9630_v47 = vld [vmem:[#allocation5 + $0xe20] ss:$16 sps:$4 sm:$0xff]   ;;  %v9644_v42 = vld [vmem:[#allocation5 + $0xe64] ss:$16 sps:$4 sm:$0xff]  }
 0x1e6   :  { %5131 = vmatprep.subr.bf16.mxu0 %v9547_v48  ;;  %5623 = vmatprep.subr.bf16.mxu1 %v9550_v50  ;;  %v9638_v48 = vld [vmem:[#allocation5 + $0xe44] ss:$16 sps:$4 sm:$0xff]   ;;  %v9641_v50 = vld [vmem:[#allocation5 + $0xe4c] ss:$16 sps:$4 sm:$0xff]  }
 0x1e9   :  { %5132 = vmatpush1.bf16.msra.mxu0 %v9545_v51  ;;  %5624 = vmatpush1.bf16.msra.mxu1 %v9548_v53  ;;  %v9636_v51 = vld [vmem:[#allocation5 + $0xe40] ss:$16 sps:$4 sm:$0xff]   ;;  %v9639_v53 = vld [vmem:[#allocation5 + $0xe48] ss:$16 sps:$4 sm:$0xff]  }
 0x1ea   :  { %5133 = vmatprep.subr.bf16.mxu0 %v9553_v54  ;;  %5625 = vmatprep.subr.bf16.mxu1 %v9556_v55  ;;  %v9647_v54 = vld [vmem:[#allocation5 + $0xe6c] ss:$16 sps:$4 sm:$0xff]   ;;  %v9642_v55 = vld [vmem:[#allocation5 + $0xe60] ss:$16 sps:$4 sm:$0xff]  }
 0x1ed   :  { %5134 = vmatpush1.bf16.msra.mxu0 %v9551_v56  ;;  %5626 = vmatpush1.bf16.msra.mxu1 %v9554_v57  ;;  %v9645_v56 = vld [vmem:[#allocation5 + $0xe68] ss:$16 sps:$4 sm:$0xff]   ;;  %v9650_v57 = vld [vmem:[#allocation5 + $0xe84] ss:$16 sps:$4 sm:$0xff]  }
 0x1ee   :  { %5135 = vmatprep.subr.bf16.mxu0 %v9559_v58  ;;  %5627 = vmatprep.subr.bf16.mxu1 %v9562_v59  ;;  %v9653_v58 = vld [vmem:[#allocation5 + $0xe8c] ss:$16 sps:$4 sm:$0xff]   ;;  %v9648_v59 = vld [vmem:[#allocation5 + $0xe80] ss:$16 sps:$4 sm:$0xff]  }
 0x1f1   :  { %5136 = vmatpush1.bf16.msra.mxu0 %v9557_v60  ;;  %5628 = vmatpush1.bf16.msra.mxu1 %v9560_v61  ;;  %v9651_v60 = vld [vmem:[#allocation5 + $0xe88] ss:$16 sps:$4 sm:$0xff]   ;;  %v9656_v61 = vld [vmem:[#allocation5 + $0xea4] ss:$16 sps:$4 sm:$0xff]  }
 0x1f2   :  { %5137 = vmatprep.subr.bf16.mxu0 %v9565_v62  ;;  %5629 = vmatprep.subr.bf16.mxu1 %v9568_v63  ;;  %v9659_v62 = vld [vmem:[#allocation5 + $0xeac] ss:$16 sps:$4 sm:$0xff]   ;;  %v9654_v63 = vld [vmem:[#allocation5 + $0xea0] ss:$16 sps:$4 sm:$0xff]  }
 0x1f5   :  { %5138 = vmatpush1.bf16.msra.mxu0 %v9563_v0  ;;  %5630 = vmatpush1.bf16.msra.mxu1 %v9566_v1  ;;  %v9657_v0 = vld [vmem:[#allocation5 + $0xea8] ss:$16 sps:$4 sm:$0xff]   ;;  %v9662_v1 = vld [vmem:[#allocation5 + $0xec4] ss:$16 sps:$4 sm:$0xff]  }
 0x1f6   :  { %5139 = vmatprep.subr.bf16.mxu0 %v9571_v2  ;;  %5631 = vmatprep.subr.bf16.mxu1 %v9574_v3  ;;  %v9665_v2 = vld [vmem:[#allocation5 + $0xecc] ss:$16 sps:$4 sm:$0xff]   ;;  %v9660_v3 = vld [vmem:[#allocation5 + $0xec0] ss:$16 sps:$4 sm:$0xff]  }
 0x1f9   :  { %5140 = vmatpush1.bf16.msra.mxu0 %v9569_v4  ;;  %5632 = vmatpush1.bf16.msra.mxu1 %v9572_v5  ;;  %v9663_v4 = vld [vmem:[#allocation5 + $0xec8] ss:$16 sps:$4 sm:$0xff]   ;;  %v9668_v5 = vld [vmem:[#allocation5 + $0xee4] ss:$16 sps:$4 sm:$0xff]  }
 0x1fa   :  { %5141 = vmatprep.subr.bf16.mxu0 %v9577_v6  ;;  %5633 = vmatprep.subr.bf16.mxu1 %v9580_v7  ;;  %v9671_v6 = vld [vmem:[#allocation5 + $0xeec] ss:$16 sps:$4 sm:$0xff]   ;;  %v9666_v7 = vld [vmem:[#allocation5 + $0xee0] ss:$16 sps:$4 sm:$0xff]  }
 0x1fd   :  { %5142 = vmatpush1.bf16.msra.mxu0 %v9575_v8  ;;  %5634 = vmatpush1.bf16.msra.mxu1 %v9578_v9  ;;  %v9669_v8 = vld [vmem:[#allocation5 + $0xee8] ss:$16 sps:$4 sm:$0xff]   ;;  %v9674_v9 = vld [vmem:[#allocation5 + $0xf04] ss:$16 sps:$4 sm:$0xff]  }
 0x1fe   :  { %5143 = vmatprep.subr.bf16.mxu0 %v9583_v10  ;;  %5635 = vmatprep.subr.bf16.mxu1 %v9586_v11  ;;  %v9677_v10 = vld [vmem:[#allocation5 + $0xf0c] ss:$16 sps:$4 sm:$0xff]   ;;  %v9672_v11 = vld [vmem:[#allocation5 + $0xf00] ss:$16 sps:$4 sm:$0xff]  }
 0x201   :  { %5144 = vmatpush1.bf16.msra.mxu0 %v9581_v12  ;;  %5636 = vmatpush1.bf16.msra.mxu1 %v9584_v15  ;;  %v9675_v12 = vld [vmem:[#allocation5 + $0xf08] ss:$16 sps:$4 sm:$0xff]   ;;  %v9680_v15 = vld [vmem:[#allocation5 + $0xf24] ss:$16 sps:$4 sm:$0xff]  }
 0x202   :  { %5145 = vmatprep.subr.bf16.mxu0 %v9589_v16  ;;  %5637 = vmatprep.subr.bf16.mxu1 %v9592_v17  ;;  %v9683_v16 = vld [vmem:[#allocation5 + $0xf2c] ss:$16 sps:$4 sm:$0xff]   ;;  %v9678_v17 = vld [vmem:[#allocation5 + $0xf20] ss:$16 sps:$4 sm:$0xff]  }
 0x205   :  { %5146 = vmatpush1.bf16.msra.mxu0 %v9587_v18  ;;  %5638 = vmatpush1.bf16.msra.mxu1 %v9590_v19  ;;  %v9681_v18 = vld [vmem:[#allocation5 + $0xf28] ss:$16 sps:$4 sm:$0xff]   ;;  %v9686_v19 = vld [vmem:[#allocation5 + $0xf44] ss:$16 sps:$4 sm:$0xff]  }
 0x206   :  { %5147 = vmatprep.subr.bf16.mxu0 %v9595_v20  ;;  %5639 = vmatprep.subr.bf16.mxu1 %v9598_v21  ;;  %v9689_v20 = vld [vmem:[#allocation5 + $0xf4c] ss:$16 sps:$4 sm:$0xff]   ;;  %v9684_v21 = vld [vmem:[#allocation5 + $0xf40] ss:$16 sps:$4 sm:$0xff]  }
 0x209   :  { %5148 = vmatpush1.bf16.msra.mxu0 %v9593_v22  ;;  %5640 = vmatpush1.bf16.msra.mxu1 %v9596_v23  ;;  %v9687_v22 = vld [vmem:[#allocation5 + $0xf48] ss:$16 sps:$4 sm:$0xff]   ;;  %v9692_v23 = vld [vmem:[#allocation5 + $0xf64] ss:$16 sps:$4 sm:$0xff]  }
 0x20a   :  { %5149 = vmatprep.subr.bf16.mxu0 %v9601_v26  ;;  %5641 = vmatprep.subr.bf16.mxu1 %v9604_v27  ;;  %v9695_v26 = vld [vmem:[#allocation5 + $0xf6c] ss:$16 sps:$4 sm:$0xff]   ;;  %v9690_v27 = vld [vmem:[#allocation5 + $0xf60] ss:$16 sps:$4 sm:$0xff]  }
 0x20d   :  { %5150 = vmatpush1.bf16.msra.mxu0 %v9599_v13  ;;  %5642 = vmatpush1.bf16.msra.mxu1 %v9602_v28  ;;  %v9693_v13 = vld [vmem:[#allocation5 + $0xf68] ss:$16 sps:$4 sm:$0xff]   ;;  %v9698_v28 = vld [vmem:[#allocation5 + $0xf84] ss:$16 sps:$4 sm:$0xff]  }
 0x20e   :  { %5151 = vmatprep.subr.bf16.mxu0 %v9607_v29  ;;  %5643 = vmatprep.subr.bf16.mxu1 %v9610_v30  ;;  %v9701_v29 = vld [vmem:[#allocation5 + $0xf8c] ss:$16 sps:$4 sm:$0xff]   ;;  %v9696_v30 = vld [vmem:[#allocation5 + $0xf80] ss:$16 sps:$4 sm:$0xff]  }
 0x211   :  { %5152 = vmatpush1.bf16.msra.mxu0 %v9605_v14  ;;  %5644 = vmatpush1.bf16.msra.mxu1 %v9608_v31  ;;  %v9699_v14 = vld [vmem:[#allocation5 + $0xf88] ss:$16 sps:$4 sm:$0xff]   ;;  %v9704_v31 = vld [vmem:[#allocation5 + $0xfa4] ss:$16 sps:$4 sm:$0xff]  }
 0x212   :  { %5153 = vmatprep.subr.bf16.mxu0 %v9613_v24  ;;  %5645 = vmatprep.subr.bf16.mxu1 %v9616_v25  ;;  %v9707_v24 = vld [vmem:[#allocation5 + $0xfac] ss:$16 sps:$4 sm:$0xff]   ;;  %v9702_v25 = vld [vmem:[#allocation5 + $0xfa0] ss:$16 sps:$4 sm:$0xff]  }
 0x215   :  { %5154 = vmatpush1.bf16.msra.mxu0 %v9611_v35  ;;  %5646 = vmatpush1.bf16.msra.mxu1 %v9614_v36  ;;  %v9705_v35 = vld [vmem:[#allocation5 + $0xfa8] ss:$16 sps:$4 sm:$0xff]   ;;  %v9710_v36 = vld [vmem:[#allocation5 + $0xfc4] ss:$16 sps:$4 sm:$0xff]  }
 0x216   :  { %5155 = vmatprep.subr.bf16.mxu0 %v9619_v37  ;;  %5647 = vmatprep.subr.bf16.mxu1 %v9622_v52  ;;  %v9713_v37 = vld [vmem:[#allocation5 + $0xfcc] ss:$16 sps:$4 sm:$0xff]   ;;  %v10763_v52 = vld [vmem:[%s10845_s0 + $0x10] sm:$0xff] }
 0x219   :  { %5156 = vmatpush1.bf16.msra.mxu0 %v9617_v38  ;;  %5648 = vmatpush1.bf16.msra.mxu1 %v9620_v39  ;;  %v9708_v38 = vld [vmem:[#allocation5 + $0xfc0] ss:$16 sps:$4 sm:$0xff]   ;;  %v9711_v39 = vld [vmem:[#allocation5 + $0xfc8] ss:$16 sps:$4 sm:$0xff]  }
 0x21a   :  { %5166 = vmatprep.subr.bf16.mxu0 %v9626_v40  ;;  %5658 = vmatprep.subr.bf16.mxu1 %v9629_v41  ;;  %v9716_v40 = vld [vmem:[#allocation5 + $0xfe4] ss:$16 sps:$4 sm:$0xff]   ;;  %v9719_v41 = vld [vmem:[#allocation5 + $0xfec] ss:$16 sps:$4 sm:$0xff]  }
 0x21c   :  { %5158 = vmatmul.mubr.bf16.vlgmr.msra.gmra.mrb[0].mxu0 %v10754_v33  ;;  %5650 = vmatmul.mubr.bf16.vlgmr.msra.gmra.mrb[0].mxu1 %v10754_v33 }
 0x21d   :  { %5167 = vmatpush1.bf16.msra.mxu0 %v9624_v43  ;;  %5659 = vmatpush1.bf16.msra.mxu1 %v9627_v44  ;;  %v10767_v43 = vrot.slane %v10763_v52, %v10678_v49  ;;  %v9714_v44 = vld [vmem:[#allocation5 + $0xfe0] ss:$16 sps:$4 sm:$0xff]  }
 0x21e   :  { %5168 = vmatprep.subr.bf16.mxu0 %v9632_v32  ;;  %5660 = vmatprep.subr.bf16.mxu1 %v9635_v45  ;;  %v9717_v32 = vld [vmem:[#allocation5 + $0xfe8] ss:$16 sps:$4 sm:$0xff]   ;;  %v9722_v45 = vld [vmem:[#allocation5 + $0x1004] ss:$16 sps:$4 sm:$0xff]  }
 0x21f   :  { %5198 = vmatprep.mubr.bf16.mxu0 %v965_v46  ;;  %5690 = vmatprep.mubr.bf16.mxu1 %v965_v46  ;;  %v9725_v46 = vld [vmem:[#allocation5 + $0x100c] ss:$16 sps:$4 sm:$0xff]  }
 0x221   :  { %5169 = vmatpush1.bf16.msra.mxu0 %v9630_v47  ;;  %5661 = vmatpush1.bf16.msra.mxu1 %v9633_v34  ;;  %v981_v47 = vcombine.high %v10767_v43, %v10767_v43  ;;  %v963_v34 = vcombine.high %v10754_v33, %v10754_v33  ;;  %v9734_v33 = vld [vmem:[#allocation5 + $0x1044] ss:$16 sps:$4 sm:$0xff]  }
 0x222   :  { %5170 = vmatprep.subr.bf16.mxu0 %v9638_v48  ;;  %5662 = vmatprep.subr.bf16.mxu1 %v9641_v50  ;;  %v9720_v48 = vld [vmem:[#allocation5 + $0x1000] ss:$16 sps:$4 sm:$0xff]   ;;  %v9723_v50 = vld [vmem:[#allocation5 + $0x1008] ss:$16 sps:$4 sm:$0xff]  }
 0x225   :  { %5171 = vmatpush1.bf16.msra.mxu0 %v9636_v51  ;;  %5663 = vmatpush1.bf16.msra.mxu1 %v9639_v53  ;;  %v9728_v51 = vld [vmem:[#allocation5 + $0x1024] ss:$16 sps:$4 sm:$0xff]   ;;  %v9731_v53 = vld [vmem:[#allocation5 + $0x102c] ss:$16 sps:$4 sm:$0xff]  }
 0x226   :  { %5172 = vmatprep.subr.bf16.mxu0 %v9644_v42  ;;  %5664 = vmatprep.subr.bf16.mxu1 %v9647_v54  ;;  %v10774_v42 = vrot.slane %v981_v47, %v10678_v49  ;;  %v9726_v54 = vld [vmem:[#allocation5 + $0x1020] ss:$16 sps:$4 sm:$0xff]   ;;  %v9812_v47 = vld [vmem:[#allocation5 + $0x11e4] ss:$16 sps:$4 sm:$0xff]  }
 0x229   :  { %5173 = vmatpush1.bf16.msra.mxu0 %v9642_v55  ;;  %5665 = vmatpush1.bf16.msra.mxu1 %v9645_v56  ;;  %v9729_v55 = vld [vmem:[#allocation5 + $0x1028] ss:$16 sps:$4 sm:$0xff]   ;;  %v9737_v56 = vld [vmem:[#allocation5 + $0x104c] ss:$16 sps:$4 sm:$0xff]  }
 0x22a   :  { %5174 = vmatprep.subr.bf16.mxu0 %v9650_v57  ;;  %5666 = vmatprep.subr.bf16.mxu1 %v9653_v58  ;;  %v9732_v57 = vld [vmem:[#allocation5 + $0x1040] ss:$16 sps:$4 sm:$0xff]   ;;  %v9735_v58 = vld [vmem:[#allocation5 + $0x1048] ss:$16 sps:$4 sm:$0xff]  }
 0x22d   :  { %5175 = vmatpush1.bf16.msra.mxu0 %v9648_v59  ;;  %5667 = vmatpush1.bf16.msra.mxu1 %v9651_v60  ;;  %v9740_v59 = vld [vmem:[#allocation5 + $0x1064] ss:$16 sps:$4 sm:$0xff]   ;;  %v9743_v60 = vld [vmem:[#allocation5 + $0x106c] ss:$16 sps:$4 sm:$0xff]  }
 0x22e   :  { %5176 = vmatprep.subr.bf16.mxu0 %v9656_v61  ;;  %5668 = vmatprep.subr.bf16.mxu1 %v9659_v62  ;;  %v9738_v61 = vld [vmem:[#allocation5 + $0x1060] ss:$16 sps:$4 sm:$0xff]   ;;  %v9741_v62 = vld [vmem:[#allocation5 + $0x1068] ss:$16 sps:$4 sm:$0xff]  }
 0x231   :  { %5177 = vmatpush1.bf16.msra.mxu0 %v9654_v63  ;;  %5669 = vmatpush1.bf16.msra.mxu1 %v9657_v0  ;;  %v9746_v63 = vld [vmem:[#allocation5 + $0x1084] ss:$16 sps:$4 sm:$0xff]   ;;  %v9749_v0 = vld [vmem:[#allocation5 + $0x108c] ss:$16 sps:$4 sm:$0xff]  }
 0x232   :  { %5178 = vmatprep.subr.bf16.mxu0 %v9662_v1  ;;  %5670 = vmatprep.subr.bf16.mxu1 %v9665_v2  ;;  %v9744_v1 = vld [vmem:[#allocation5 + $0x1080] ss:$16 sps:$4 sm:$0xff]   ;;  %v9747_v2 = vld [vmem:[#allocation5 + $0x1088] ss:$16 sps:$4 sm:$0xff]  }
 0x235   :  { %5179 = vmatpush1.bf16.msra.mxu0 %v9660_v3  ;;  %5671 = vmatpush1.bf16.msra.mxu1 %v9663_v4  ;;  %v9752_v3 = vld [vmem:[#allocation5 + $0x10a4] ss:$16 sps:$4 sm:$0xff]   ;;  %v9755_v4 = vld [vmem:[#allocation5 + $0x10ac] ss:$16 sps:$4 sm:$0xff]  }
 0x236   :  { %5180 = vmatprep.subr.bf16.mxu0 %v9668_v5  ;;  %5672 = vmatprep.subr.bf16.mxu1 %v9671_v6  ;;  %v9750_v5 = vld [vmem:[#allocation5 + $0x10a0] ss:$16 sps:$4 sm:$0xff]   ;;  %v9753_v6 = vld [vmem:[#allocation5 + $0x10a8] ss:$16 sps:$4 sm:$0xff]  }
 0x239   :  { %5181 = vmatpush1.bf16.msra.mxu0 %v9666_v7  ;;  %5673 = vmatpush1.bf16.msra.mxu1 %v9669_v8  ;;  %v9758_v7 = vld [vmem:[#allocation5 + $0x10c4] ss:$16 sps:$4 sm:$0xff]   ;;  %v9761_v8 = vld [vmem:[#allocation5 + $0x10cc] ss:$16 sps:$4 sm:$0xff]  }
 0x23a   :  { %5182 = vmatprep.subr.bf16.mxu0 %v9674_v9  ;;  %5674 = vmatprep.subr.bf16.mxu1 %v9677_v10  ;;  %v9756_v9 = vld [vmem:[#allocation5 + $0x10c0] ss:$16 sps:$4 sm:$0xff]   ;;  %v9759_v10 = vld [vmem:[#allocation5 + $0x10c8] ss:$16 sps:$4 sm:$0xff]  }
 0x23d   :  { %5183 = vmatpush1.bf16.msra.mxu0 %v9672_v11  ;;  %5675 = vmatpush1.bf16.msra.mxu1 %v9675_v12  ;;  %v9764_v11 = vld [vmem:[#allocation5 + $0x10e4] ss:$16 sps:$4 sm:$0xff]   ;;  %v9767_v12 = vld [vmem:[#allocation5 + $0x10ec] ss:$16 sps:$4 sm:$0xff]  }
 0x23e   :  { %5184 = vmatprep.subr.bf16.mxu0 %v9680_v15  ;;  %5676 = vmatprep.subr.bf16.mxu1 %v9683_v16  ;;  %v9762_v15 = vld [vmem:[#allocation5 + $0x10e0] ss:$16 sps:$4 sm:$0xff]   ;;  %v9765_v16 = vld [vmem:[#allocation5 + $0x10e8] ss:$16 sps:$4 sm:$0xff]  }
 0x241   :  { %5185 = vmatpush1.bf16.msra.mxu0 %v9678_v17  ;;  %5677 = vmatpush1.bf16.msra.mxu1 %v9681_v18  ;;  %v9770_v17 = vld [vmem:[#allocation5 + $0x1104] ss:$16 sps:$4 sm:$0xff]   ;;  %v9773_v18 = vld [vmem:[#allocation5 + $0x110c] ss:$16 sps:$4 sm:$0xff]  }
 0x242   :  { %5186 = vmatprep.subr.bf16.mxu0 %v9686_v19  ;;  %5678 = vmatprep.subr.bf16.mxu1 %v9689_v20  ;;  %v9768_v19 = vld [vmem:[#allocation5 + $0x1100] ss:$16 sps:$4 sm:$0xff]   ;;  %v9771_v20 = vld [vmem:[#allocation5 + $0x1108] ss:$16 sps:$4 sm:$0xff]  }
 0x245   :  { %5187 = vmatpush1.bf16.msra.mxu0 %v9684_v21  ;;  %5679 = vmatpush1.bf16.msra.mxu1 %v9687_v22  ;;  %v9776_v21 = vld [vmem:[#allocation5 + $0x1124] ss:$16 sps:$4 sm:$0xff]   ;;  %v9779_v22 = vld [vmem:[#allocation5 + $0x112c] ss:$16 sps:$4 sm:$0xff]  }
 0x246   :  { %5188 = vmatprep.subr.bf16.mxu0 %v9692_v23  ;;  %5680 = vmatprep.subr.bf16.mxu1 %v9695_v26  ;;  %v9774_v23 = vld [vmem:[#allocation5 + $0x1120] ss:$16 sps:$4 sm:$0xff]   ;;  %v9777_v26 = vld [vmem:[#allocation5 + $0x1128] ss:$16 sps:$4 sm:$0xff]  }
 0x249   :  { %5189 = vmatpush1.bf16.msra.mxu0 %v9690_v27  ;;  %5681 = vmatpush1.bf16.msra.mxu1 %v9693_v13  ;;  %v9782_v27 = vld [vmem:[#allocation5 + $0x1144] ss:$16 sps:$4 sm:$0xff]   ;;  %v9785_v13 = vld [vmem:[#allocation5 + $0x114c] ss:$16 sps:$4 sm:$0xff]  }
 0x24a   :  { %5190 = vmatprep.subr.bf16.mxu0 %v9698_v28  ;;  %5682 = vmatprep.subr.bf16.mxu1 %v9701_v29  ;;  %v9780_v28 = vld [vmem:[#allocation5 + $0x1140] ss:$16 sps:$4 sm:$0xff]   ;;  %v9783_v29 = vld [vmem:[#allocation5 + $0x1148] ss:$16 sps:$4 sm:$0xff]  }
 0x24d   :  { %5191 = vmatpush1.bf16.msra.mxu0 %v9696_v30  ;;  %5683 = vmatpush1.bf16.msra.mxu1 %v9699_v14  ;;  %v9788_v30 = vld [vmem:[#allocation5 + $0x1164] ss:$16 sps:$4 sm:$0xff]   ;;  %v9791_v14 = vld [vmem:[#allocation5 + $0x116c] ss:$16 sps:$4 sm:$0xff]  }
 0x24e   :  { %5192 = vmatprep.subr.bf16.mxu0 %v9704_v31  ;;  %5684 = vmatprep.subr.bf16.mxu1 %v9707_v24  ;;  %v9786_v31 = vld [vmem:[#allocation5 + $0x1160] ss:$16 sps:$4 sm:$0xff]   ;;  %v9789_v24 = vld [vmem:[#allocation5 + $0x1168] ss:$16 sps:$4 sm:$0xff]  }
 0x251   :  { %5193 = vmatpush1.bf16.msra.mxu0 %v9702_v25  ;;  %5685 = vmatpush1.bf16.msra.mxu1 %v9705_v35  ;;  %v9794_v25 = vld [vmem:[#allocation5 + $0x1184] ss:$16 sps:$4 sm:$0xff]   ;;  %v9797_v35 = vld [vmem:[#allocation5 + $0x118c] ss:$16 sps:$4 sm:$0xff]  }
 0x252   :  { %5194 = vmatprep.subr.bf16.mxu0 %v9710_v36  ;;  %5686 = vmatprep.subr.bf16.mxu1 %v9713_v37  ;;  %v9792_v36 = vld [vmem:[#allocation5 + $0x1180] ss:$16 sps:$4 sm:$0xff]   ;;  %v9795_v37 = vld [vmem:[#allocation5 + $0x1188] ss:$16 sps:$4 sm:$0xff]  }
 0x255   :  { %5195 = vmatpush1.bf16.msra.mxu0 %v9708_v38  ;;  %5687 = vmatpush1.bf16.msra.mxu1 %v9711_v39  ;;  %v9800_v38 = vld [vmem:[#allocation5 + $0x11a4] ss:$16 sps:$4 sm:$0xff]   ;;  %v9803_v39 = vld [vmem:[#allocation5 + $0x11ac] ss:$16 sps:$4 sm:$0xff]  }
 0x256   :  { %5196 = vmatprep.subr.bf16.mxu0 %v9716_v40  ;;  %5688 = vmatprep.subr.bf16.mxu1 %v9719_v41  ;;  %v9798_v40 = vld [vmem:[#allocation5 + $0x11a0] ss:$16 sps:$4 sm:$0xff]   ;;  %v9801_v41 = vld [vmem:[#allocation5 + $0x11a8] ss:$16 sps:$4 sm:$0xff]  }
 0x259   :  { %5197 = vmatpush1.bf16.msra.mxu0 %v9714_v44  ;;  %5689 = vmatpush1.bf16.msra.mxu1 %v9717_v32  ;;  %v9806_v44 = vld [vmem:[#allocation5 + $0x11c4] ss:$16 sps:$4 sm:$0xff]   ;;  %v9809_v32 = vld [vmem:[#allocation5 + $0x11cc] ss:$16 sps:$4 sm:$0xff]  }
 0x25a   :  { %5207 = vmatprep.subr.bf16.mxu0 %v9722_v45  ;;  %5699 = vmatprep.subr.bf16.mxu1 %v9725_v46  ;;  %v9804_v45 = vld [vmem:[#allocation5 + $0x11c0] ss:$16 sps:$4 sm:$0xff]   ;;  %v9807_v46 = vld [vmem:[#allocation5 + $0x11c8] ss:$16 sps:$4 sm:$0xff]  }
 0x25c   :  { %5199 = vmatmul.mubr.bf16.vlgmr.msra.gmra.mrb[0].mxu0 %v963_v34  ;;  %5691 = vmatmul.mubr.bf16.vlgmr.msra.gmra.mrb[0].mxu1 %v963_v34  ;;  %v9815_v34 = vld [vmem:[#allocation5 + $0x11ec] ss:$16 sps:$4 sm:$0xff]  }
 0x25d   :  { %5208 = vmatpush1.bf16.msra.mxu0 %v9720_v48  ;;  %5700 = vmatpush1.bf16.msra.mxu1 %v9723_v50  ;;  %v9810_v48 = vld [vmem:[#allocation5 + $0x11e0] ss:$16 sps:$4 sm:$0xff]   ;;  %v9813_v50 = vld [vmem:[#allocation5 + $0x11e8] ss:$16 sps:$4 sm:$0xff]  }
 0x25e   :  { %5209 = vmatprep.subr.bf16.mxu0 %v9728_v51  ;;  %5701 = vmatprep.subr.bf16.mxu1 %v9731_v53  ;;  %v9818_v51 = vld [vmem:[#allocation5 + $0x1204] ss:$16 sps:$4 sm:$0xff]   ;;  %v9821_v53 = vld [vmem:[#allocation5 + $0x120c] ss:$16 sps:$4 sm:$0xff]  }
 0x25f   :  { %5239 = vmatprep.mubr.bf16.mxu0 %v10774_v42  ;;  %5731 = vmatprep.mubr.bf16.mxu1 %v10774_v42 }
 0x261   :  { %5210 = vmatpush1.bf16.msra.mxu0 %v9726_v54  ;;  %5702 = vmatpush1.bf16.msra.mxu1 %v9729_v55  ;;  %v10780_v54 = vrot.slane %v10767_v43, %v10678_v49  ;;  %v9816_v55 = vld [vmem:[#allocation5 + $0x1200] ss:$16 sps:$4 sm:$0xff]   ;;  %v9825_v43 = vld [vmem:[#allocation5 + $0x1228] ss:$16 sps:$4 sm:$0xff]  }
 0x262   :  { %5211 = vmatprep.subr.bf16.mxu0 %v9734_v33  ;;  %5703 = vmatprep.subr.bf16.mxu1 %v9737_v56  ;;  %v9819_v33 = vld [vmem:[#allocation5 + $0x1208] ss:$16 sps:$4 sm:$0xff]   ;;  %v9824_v56 = vld [vmem:[#allocation5 + $0x1224] ss:$16 sps:$4 sm:$0xff]  }
 0x265   :  { %5212 = vmatpush1.bf16.msra.mxu0 %v9732_v57  ;;  %5704 = vmatpush1.bf16.msra.mxu1 %v9735_v58  ;;  %v9827_v57 = vld [vmem:[#allocation5 + $0x122c] ss:$16 sps:$4 sm:$0xff]   ;;  %v1013_v58 = vcombine.high %v10774_v42, %v10774_v42  ;;  %v9836_v42 = vld [vmem:[#allocation5 + $0x1264] ss:$16 sps:$4 sm:$0xff]  }
 0x266   :  { %5213 = vmatprep.subr.bf16.mxu0 %v9740_v59  ;;  %5705 = vmatprep.subr.bf16.mxu1 %v9743_v60  ;;  %v9822_v59 = vld [vmem:[#allocation5 + $0x1220] ss:$16 sps:$4 sm:$0xff]   ;;  %v9830_v60 = vld [vmem:[#allocation5 + $0x1244] ss:$16 sps:$4 sm:$0xff]  }
 0x269   :  { %5214 = vmatpush1.bf16.msra.mxu0 %v9738_v61  ;;  %5706 = vmatpush1.bf16.msra.mxu1 %v9741_v62  ;;  %v9833_v61 = vld [vmem:[#allocation5 + $0x124c] ss:$16 sps:$4 sm:$0xff]   ;;  %v9828_v62 = vld [vmem:[#allocation5 + $0x1240] ss:$16 sps:$4 sm:$0xff]  }
 0x26a   :  { %5215 = vmatprep.subr.bf16.mxu0 %v9746_v63  ;;  %5707 = vmatprep.subr.bf16.mxu1 %v9749_v0  ;;  %v9831_v63 = vld [vmem:[#allocation5 + $0x1248] ss:$16 sps:$4 sm:$0xff]   ;;  %v9839_v0 = vld [vmem:[#allocation5 + $0x126c] ss:$16 sps:$4 sm:$0xff]  }
 0x26d   :  { %5216 = vmatpush1.bf16.msra.mxu0 %v9744_v1  ;;  %5708 = vmatpush1.bf16.msra.mxu1 %v9747_v2  ;;  %v9834_v1 = vld [vmem:[#allocation5 + $0x1260] ss:$16 sps:$4 sm:$0xff]   ;;  %v9837_v2 = vld [vmem:[#allocation5 + $0x1268] ss:$16 sps:$4 sm:$0xff]  }
 0x26e   :  { %5217 = vmatprep.subr.bf16.mxu0 %v9752_v3  ;;  %5709 = vmatprep.subr.bf16.mxu1 %v9755_v4  ;;  %v9842_v3 = vld [vmem:[#allocation5 + $0x1284] ss:$16 sps:$4 sm:$0xff]   ;;  %v9845_v4 = vld [vmem:[#allocation5 + $0x128c] ss:$16 sps:$4 sm:$0xff]  }
 0x271   :  { %5218 = vmatpush1.bf16.msra.mxu0 %v9750_v5  ;;  %5710 = vmatpush1.bf16.msra.mxu1 %v9753_v6  ;;  %v9840_v5 = vld [vmem:[#allocation5 + $0x1280] ss:$16 sps:$4 sm:$0xff]   ;;  %v9843_v6 = vld [vmem:[#allocation5 + $0x1288] ss:$16 sps:$4 sm:$0xff]  }
 0x272   :  { %5219 = vmatprep.subr.bf16.mxu0 %v9758_v7  ;;  %5711 = vmatprep.subr.bf16.mxu1 %v9761_v8  ;;  %v9848_v7 = vld [vmem:[#allocation5 + $0x12a4] ss:$16 sps:$4 sm:$0xff]   ;;  %v9851_v8 = vld [vmem:[#allocation5 + $0x12ac] ss:$16 sps:$4 sm:$0xff]  }
 0x275   :  { %5220 = vmatpush1.bf16.msra.mxu0 %v9756_v9  ;;  %5712 = vmatpush1.bf16.msra.mxu1 %v9759_v10  ;;  %v9846_v9 = vld [vmem:[#allocation5 + $0x12a0] ss:$16 sps:$4 sm:$0xff]   ;;  %v9849_v10 = vld [vmem:[#allocation5 + $0x12a8] ss:$16 sps:$4 sm:$0xff]  }
 0x276   :  { %5221 = vmatprep.subr.bf16.mxu0 %v9764_v11  ;;  %5713 = vmatprep.subr.bf16.mxu1 %v9767_v12  ;;  %v9854_v11 = vld [vmem:[#allocation5 + $0x12c4] ss:$16 sps:$4 sm:$0xff]   ;;  %v9857_v12 = vld [vmem:[#allocation5 + $0x12cc] ss:$16 sps:$4 sm:$0xff]  }
 0x279   :  { %5222 = vmatpush1.bf16.msra.mxu0 %v9762_v15  ;;  %5714 = vmatpush1.bf16.msra.mxu1 %v9765_v16  ;;  %v9852_v15 = vld [vmem:[#allocation5 + $0x12c0] ss:$16 sps:$4 sm:$0xff]   ;;  %v9855_v16 = vld [vmem:[#allocation5 + $0x12c8] ss:$16 sps:$4 sm:$0xff]  }
 0x27a   :  { %5223 = vmatprep.subr.bf16.mxu0 %v9770_v17  ;;  %5715 = vmatprep.subr.bf16.mxu1 %v9773_v18  ;;  %v9860_v17 = vld [vmem:[#allocation5 + $0x12e4] ss:$16 sps:$4 sm:$0xff]   ;;  %v9863_v18 = vld [vmem:[#allocation5 + $0x12ec] ss:$16 sps:$4 sm:$0xff]  }
 0x27d   :  { %5224 = vmatpush1.bf16.msra.mxu0 %v9768_v19  ;;  %5716 = vmatpush1.bf16.msra.mxu1 %v9771_v20  ;;  %v9858_v19 = vld [vmem:[#allocation5 + $0x12e0] ss:$16 sps:$4 sm:$0xff]   ;;  %v9861_v20 = vld [vmem:[#allocation5 + $0x12e8] ss:$16 sps:$4 sm:$0xff]  }
 0x27e   :  { %5225 = vmatprep.subr.bf16.mxu0 %v9776_v21  ;;  %5717 = vmatprep.subr.bf16.mxu1 %v9779_v22  ;;  %v9866_v21 = vld [vmem:[#allocation5 + $0x1304] ss:$16 sps:$4 sm:$0xff]   ;;  %v9869_v22 = vld [vmem:[#allocation5 + $0x130c] ss:$16 sps:$4 sm:$0xff]  }
 0x281   :  { %5226 = vmatpush1.bf16.msra.mxu0 %v9774_v23  ;;  %5718 = vmatpush1.bf16.msra.mxu1 %v9777_v26  ;;  %v9864_v23 = vld [vmem:[#allocation5 + $0x1300] ss:$16 sps:$4 sm:$0xff]   ;;  %v9867_v26 = vld [vmem:[#allocation5 + $0x1308] ss:$16 sps:$4 sm:$0xff]  }
 0x282   :  { %5227 = vmatprep.subr.bf16.mxu0 %v9782_v27  ;;  %5719 = vmatprep.subr.bf16.mxu1 %v9785_v13  ;;  %v9872_v27 = vld [vmem:[#allocation5 + $0x1324] ss:$16 sps:$4 sm:$0xff]   ;;  %v9875_v13 = vld [vmem:[#allocation5 + $0x132c] ss:$16 sps:$4 sm:$0xff]  }
 0x285   :  { %5228 = vmatpush1.bf16.msra.mxu0 %v9780_v28  ;;  %5720 = vmatpush1.bf16.msra.mxu1 %v9783_v29  ;;  %v9870_v28 = vld [vmem:[#allocation5 + $0x1320] ss:$16 sps:$4 sm:$0xff]   ;;  %v9873_v29 = vld [vmem:[#allocation5 + $0x1328] ss:$16 sps:$4 sm:$0xff]  }
 0x286   :  { %5229 = vmatprep.subr.bf16.mxu0 %v9788_v30  ;;  %5721 = vmatprep.subr.bf16.mxu1 %v9791_v14  ;;  %v9878_v30 = vld [vmem:[#allocation5 + $0x1344] ss:$16 sps:$4 sm:$0xff]   ;;  %v9881_v14 = vld [vmem:[#allocation5 + $0x134c] ss:$16 sps:$4 sm:$0xff]  }
 0x289   :  { %5230 = vmatpush1.bf16.msra.mxu0 %v9786_v31  ;;  %5722 = vmatpush1.bf16.msra.mxu1 %v9789_v24  ;;  %v9876_v31 = vld [vmem:[#allocation5 + $0x1340] ss:$16 sps:$4 sm:$0xff]   ;;  %v9879_v24 = vld [vmem:[#allocation5 + $0x1348] ss:$16 sps:$4 sm:$0xff]  }
 0x28a   :  { %5231 = vmatprep.subr.bf16.mxu0 %v9794_v25  ;;  %5723 = vmatprep.subr.bf16.mxu1 %v9797_v35  ;;  %v9884_v25 = vld [vmem:[#allocation5 + $0x1364] ss:$16 sps:$4 sm:$0xff]   ;;  %v9887_v35 = vld [vmem:[#allocation5 + $0x136c] ss:$16 sps:$4 sm:$0xff]  }
 0x28d   :  { %5232 = vmatpush1.bf16.msra.mxu0 %v9792_v36  ;;  %5724 = vmatpush1.bf16.msra.mxu1 %v9795_v37  ;;  %v9882_v36 = vld [vmem:[#allocation5 + $0x1360] ss:$16 sps:$4 sm:$0xff]   ;;  %v9885_v37 = vld [vmem:[#allocation5 + $0x1368] ss:$16 sps:$4 sm:$0xff]  }
 0x28e   :  { %5233 = vmatprep.subr.bf16.mxu0 %v9800_v38  ;;  %5725 = vmatprep.subr.bf16.mxu1 %v9803_v39  ;;  %v9890_v38 = vld [vmem:[#allocation5 + $0x1384] ss:$16 sps:$4 sm:$0xff]   ;;  %v9893_v39 = vld [vmem:[#allocation5 + $0x138c] ss:$16 sps:$4 sm:$0xff]  }
 0x291   :  { %5234 = vmatpush1.bf16.msra.mxu0 %v9798_v40  ;;  %5726 = vmatpush1.bf16.msra.mxu1 %v9801_v41  ;;  %v9888_v40 = vld [vmem:[#allocation5 + $0x1380] ss:$16 sps:$4 sm:$0xff]   ;;  %v9891_v41 = vld [vmem:[#allocation5 + $0x1388] ss:$16 sps:$4 sm:$0xff]  }
 0x292   :  { %5235 = vmatprep.subr.bf16.mxu0 %v9806_v44  ;;  %5727 = vmatprep.subr.bf16.mxu1 %v9809_v32  ;;  %v9896_v44 = vld [vmem:[#allocation5 + $0x13a4] ss:$16 sps:$4 sm:$0xff]   ;;  %v9899_v32 = vld [vmem:[#allocation5 + $0x13ac] ss:$16 sps:$4 sm:$0xff]  }
 0x295   :  { %5236 = vmatpush1.bf16.msra.mxu0 %v9804_v45  ;;  %5728 = vmatpush1.bf16.msra.mxu1 %v9807_v46  ;;  %v9894_v45 = vld [vmem:[#allocation5 + $0x13a0] ss:$16 sps:$4 sm:$0xff]   ;;  %v9897_v46 = vld [vmem:[#allocation5 + $0x13a8] ss:$16 sps:$4 sm:$0xff]  }
 0x296   :  { %5237 = vmatprep.subr.bf16.mxu0 %v9812_v47  ;;  %5729 = vmatprep.subr.bf16.mxu1 %v9815_v34  ;;  %v9902_v47 = vld [vmem:[#allocation5 + $0x13c4] ss:$16 sps:$4 sm:$0xff]   ;;  %v9905_v34 = vld [vmem:[#allocation5 + $0x13cc] ss:$16 sps:$4 sm:$0xff]  }
 0x299   :  { %5238 = vmatpush1.bf16.msra.mxu0 %v9810_v48  ;;  %5730 = vmatpush1.bf16.msra.mxu1 %v9813_v50  ;;  %v966_v48 = vcombine.high %v10763_v52, %v10763_v52  ;;  %v9900_v50 = vld [vmem:[#allocation5 + $0x13c0] ss:$16 sps:$4 sm:$0xff]  }
 0x29a   :  { %5248 = vmatprep.subr.bf16.mxu0 %v9818_v51  ;;  %5740 = vmatprep.subr.bf16.mxu1 %v9821_v53  ;;  %v9903_v51 = vld [vmem:[#allocation5 + $0x13c8] ss:$16 sps:$4 sm:$0xff]   ;;  %v9908_v53 = vld [vmem:[#allocation5 + $0x13e4] ss:$16 sps:$4 sm:$0xff]  }
 0x29c   :  { %5240 = vmatmul.mubr.bf16.vlgmr.msra.gmra.mrb[0].mxu0 %v10780_v54  ;;  %5732 = vmatmul.mubr.bf16.vlgmr.msra.gmra.mrb[0].mxu1 %v10780_v54 }
 0x29d   :  { %5249 = vmatpush1.bf16.msra.mxu0 %v9816_v55  ;;  %5741 = vmatpush1.bf16.msra.mxu1 %v9819_v33  ;;  %v9911_v55 = vld [vmem:[#allocation5 + $0x13ec] ss:$16 sps:$4 sm:$0xff]   ;;  %v10789_v33 = vrot.slane %v966_v48, %v10678_v49  ;;  %v9992_v48 = vld [vmem:[#allocation5 + $0x15a4] ss:$16 sps:$4 sm:$0xff]  }
 0x29e   :  { %5250 = vmatprep.subr.bf16.mxu0 %v9824_v56  ;;  %5742 = vmatprep.subr.bf16.mxu1 %v9827_v57  ;;  %v9906_v56 = vld [vmem:[#allocation5 + $0x13e0] ss:$16 sps:$4 sm:$0xff]   ;;  %v9909_v57 = vld [vmem:[#allocation5 + $0x13e8] ss:$16 sps:$4 sm:$0xff]  }
 0x29f   :  { %5280 = vmatprep.mubr.bf16.mxu0 %v1013_v58  ;;  %5772 = vmatprep.mubr.bf16.mxu1 %v1013_v58  ;;  %v9914_v58 = vld [vmem:[#allocation5 + $0x1404] ss:$16 sps:$4 sm:$0xff]   ;;  %v982_v52 = vcombine.high %v10789_v33, %v10789_v33 }
 0x2a1   :  { %5251 = vmatpush1.bf16.msra.mxu0 %v9822_v59  ;;  %5743 = vmatpush1.bf16.msra.mxu1 %v9825_v43  ;;  %v9917_v59 = vld [vmem:[#allocation5 + $0x140c] ss:$16 sps:$4 sm:$0xff]   ;;  %v1011_v43 = vcombine.high %v10780_v54, %v10780_v54  ;;  %v9926_v54 = vld [vmem:[#allocation5 + $0x1444] ss:$16 sps:$4 sm:$0xff]  }
 0x2a2   :  { %5252 = vmatprep.subr.bf16.mxu0 %v9830_v60  ;;  %5744 = vmatprep.subr.bf16.mxu1 %v9833_v61  ;;  %v9912_v60 = vld [vmem:[#allocation5 + $0x1400] ss:$16 sps:$4 sm:$0xff]   ;;  %v9915_v61 = vld [vmem:[#allocation5 + $0x1408] ss:$16 sps:$4 sm:$0xff]  }
 0x2a5   :  { %5253 = vmatpush1.bf16.msra.mxu0 %v9828_v62  ;;  %5745 = vmatpush1.bf16.msra.mxu1 %v9831_v63  ;;  %v9920_v62 = vld [vmem:[#allocation5 + $0x1424] ss:$16 sps:$4 sm:$0xff]   ;;  %v9923_v63 = vld [vmem:[#allocation5 + $0x142c] ss:$16 sps:$4 sm:$0xff]  }
 0x2a6   :  { %5254 = vmatprep.subr.bf16.mxu0 %v9836_v42  ;;  %5746 = vmatprep.subr.bf16.mxu1 %v9839_v0  ;;  %v10796_v42 = vrot.slane %v982_v52, %v10678_v49  ;;  %v9918_v0 = vld [vmem:[#allocation5 + $0x1420] ss:$16 sps:$4 sm:$0xff]   ;;  %v10007_v52 = vld [vmem:[#allocation5 + $0x15ec] ss:$16 sps:$4 sm:$0xff]  }
 0x2a9   :  { %5255 = vmatpush1.bf16.msra.mxu0 %v9834_v1  ;;  %5747 = vmatpush1.bf16.msra.mxu1 %v9837_v2  ;;  %v9921_v1 = vld [vmem:[#allocation5 + $0x1428] ss:$16 sps:$4 sm:$0xff]   ;;  %v9929_v2 = vld [vmem:[#allocation5 + $0x144c] ss:$16 sps:$4 sm:$0xff]  }
 0x2aa   :  { %5256 = vmatprep.subr.bf16.mxu0 %v9842_v3  ;;  %5748 = vmatprep.subr.bf16.mxu1 %v9845_v4  ;;  %v9924_v3 = vld [vmem:[#allocation5 + $0x1440] ss:$16 sps:$4 sm:$0xff]   ;;  %v9927_v4 = vld [vmem:[#allocation5 + $0x1448] ss:$16 sps:$4 sm:$0xff]  }
 0x2ad   :  { %5257 = vmatpush1.bf16.msra.mxu0 %v9840_v5  ;;  %5749 = vmatpush1.bf16.msra.mxu1 %v9843_v6  ;;  %v9932_v5 = vld [vmem:[#allocation5 + $0x1464] ss:$16 sps:$4 sm:$0xff]   ;;  %v9935_v6 = vld [vmem:[#allocation5 + $0x146c] ss:$16 sps:$4 sm:$0xff]  }
 0x2ae   :  { %5258 = vmatprep.subr.bf16.mxu0 %v9848_v7  ;;  %5750 = vmatprep.subr.bf16.mxu1 %v9851_v8  ;;  %v9930_v7 = vld [vmem:[#allocation5 + $0x1460] ss:$16 sps:$4 sm:$0xff]   ;;  %v9933_v8 = vld [vmem:[#allocation5 + $0x1468] ss:$16 sps:$4 sm:$0xff]  }
 0x2b1   :  { %5259 = vmatpush1.bf16.msra.mxu0 %v9846_v9  ;;  %5751 = vmatpush1.bf16.msra.mxu1 %v9849_v10  ;;  %v9938_v9 = vld [vmem:[#allocation5 + $0x1484] ss:$16 sps:$4 sm:$0xff]   ;;  %v9941_v10 = vld [vmem:[#allocation5 + $0x148c] ss:$16 sps:$4 sm:$0xff]  }
 0x2b2   :  { %5260 = vmatprep.subr.bf16.mxu0 %v9854_v11  ;;  %5752 = vmatprep.subr.bf16.mxu1 %v9857_v12  ;;  %v9936_v11 = vld [vmem:[#allocation5 + $0x1480] ss:$16 sps:$4 sm:$0xff]   ;;  %v9939_v12 = vld [vmem:[#allocation5 + $0x1488] ss:$16 sps:$4 sm:$0xff]  }
 0x2b5   :  { %5261 = vmatpush1.bf16.msra.mxu0 %v9852_v15  ;;  %5753 = vmatpush1.bf16.msra.mxu1 %v9855_v16  ;;  %v9944_v15 = vld [vmem:[#allocation5 + $0x14a4] ss:$16 sps:$4 sm:$0xff]   ;;  %v9947_v16 = vld [vmem:[#allocation5 + $0x14ac] ss:$16 sps:$4 sm:$0xff]  }
 0x2b6   :  { %5262 = vmatprep.subr.bf16.mxu0 %v9860_v17  ;;  %5754 = vmatprep.subr.bf16.mxu1 %v9863_v18  ;;  %v9942_v17 = vld [vmem:[#allocation5 + $0x14a0] ss:$16 sps:$4 sm:$0xff]   ;;  %v9945_v18 = vld [vmem:[#allocation5 + $0x14a8] ss:$16 sps:$4 sm:$0xff]  }
 0x2b9   :  { %5263 = vmatpush1.bf16.msra.mxu0 %v9858_v19  ;;  %5755 = vmatpush1.bf16.msra.mxu1 %v9861_v20  ;;  %v9950_v19 = vld [vmem:[#allocation5 + $0x14c4] ss:$16 sps:$4 sm:$0xff]   ;;  %v9953_v20 = vld [vmem:[#allocation5 + $0x14cc] ss:$16 sps:$4 sm:$0xff]  }
 0x2ba   :  { %5264 = vmatprep.subr.bf16.mxu0 %v9866_v21  ;;  %5756 = vmatprep.subr.bf16.mxu1 %v9869_v22  ;;  %v9948_v21 = vld [vmem:[#allocation5 + $0x14c0] ss:$16 sps:$4 sm:$0xff]   ;;  %v9951_v22 = vld [vmem:[#allocation5 + $0x14c8] ss:$16 sps:$4 sm:$0xff]  }
 0x2bd   :  { %5265 = vmatpush1.bf16.msra.mxu0 %v9864_v23  ;;  %5757 = vmatpush1.bf16.msra.mxu1 %v9867_v26  ;;  %v9956_v23 = vld [vmem:[#allocation5 + $0x14e4] ss:$16 sps:$4 sm:$0xff]   ;;  %v9959_v26 = vld [vmem:[#allocation5 + $0x14ec] ss:$16 sps:$4 sm:$0xff]  }
 0x2be   :  { %5266 = vmatprep.subr.bf16.mxu0 %v9872_v27  ;;  %5758 = vmatprep.subr.bf16.mxu1 %v9875_v13  ;;  %v9954_v27 = vld [vmem:[#allocation5 + $0x14e0] ss:$16 sps:$4 sm:$0xff]   ;;  %v9957_v13 = vld [vmem:[#allocation5 + $0x14e8] ss:$16 sps:$4 sm:$0xff]  }
 0x2c1   :  { %5267 = vmatpush1.bf16.msra.mxu0 %v9870_v28  ;;  %5759 = vmatpush1.bf16.msra.mxu1 %v9873_v29  ;;  %v9962_v28 = vld [vmem:[#allocation5 + $0x1504] ss:$16 sps:$4 sm:$0xff]   ;;  %v9965_v29 = vld [vmem:[#allocation5 + $0x150c] ss:$16 sps:$4 sm:$0xff]  }
 0x2c2   :  { %5268 = vmatprep.subr.bf16.mxu0 %v9878_v30  ;;  %5760 = vmatprep.subr.bf16.mxu1 %v9881_v14  ;;  %v9960_v30 = vld [vmem:[#allocation5 + $0x1500] ss:$16 sps:$4 sm:$0xff]   ;;  %v9963_v14 = vld [vmem:[#allocation5 + $0x1508] ss:$16 sps:$4 sm:$0xff]  }
 0x2c5   :  { %5269 = vmatpush1.bf16.msra.mxu0 %v9876_v31  ;;  %5761 = vmatpush1.bf16.msra.mxu1 %v9879_v24  ;;  %v9968_v31 = vld [vmem:[#allocation5 + $0x1524] ss:$16 sps:$4 sm:$0xff]   ;;  %v9971_v24 = vld [vmem:[#allocation5 + $0x152c] ss:$16 sps:$4 sm:$0xff]  }
 0x2c6   :  { %5270 = vmatprep.subr.bf16.mxu0 %v9884_v25  ;;  %5762 = vmatprep.subr.bf16.mxu1 %v9887_v35  ;;  %v9966_v25 = vld [vmem:[#allocation5 + $0x1520] ss:$16 sps:$4 sm:$0xff]   ;;  %v9969_v35 = vld [vmem:[#allocation5 + $0x1528] ss:$16 sps:$4 sm:$0xff]  }
 0x2c9   :  { %5271 = vmatpush1.bf16.msra.mxu0 %v9882_v36  ;;  %5763 = vmatpush1.bf16.msra.mxu1 %v9885_v37  ;;  %v9974_v36 = vld [vmem:[#allocation5 + $0x1544] ss:$16 sps:$4 sm:$0xff]   ;;  %v9977_v37 = vld [vmem:[#allocation5 + $0x154c] ss:$16 sps:$4 sm:$0xff]  }
 0x2ca   :  { %5272 = vmatprep.subr.bf16.mxu0 %v9890_v38  ;;  %5764 = vmatprep.subr.bf16.mxu1 %v9893_v39  ;;  %v9972_v38 = vld [vmem:[#allocation5 + $0x1540] ss:$16 sps:$4 sm:$0xff]   ;;  %v9975_v39 = vld [vmem:[#allocation5 + $0x1548] ss:$16 sps:$4 sm:$0xff]  }
 0x2cd   :  { %5273 = vmatpush1.bf16.msra.mxu0 %v9888_v40  ;;  %5765 = vmatpush1.bf16.msra.mxu1 %v9891_v41  ;;  %v9980_v40 = vld [vmem:[#allocation5 + $0x1564] ss:$16 sps:$4 sm:$0xff]   ;;  %v9983_v41 = vld [vmem:[#allocation5 + $0x156c] ss:$16 sps:$4 sm:$0xff]  }
 0x2ce   :  { %5274 = vmatprep.subr.bf16.mxu0 %v9896_v44  ;;  %5766 = vmatprep.subr.bf16.mxu1 %v9899_v32  ;;  %v9978_v44 = vld [vmem:[#allocation5 + $0x1560] ss:$16 sps:$4 sm:$0xff]   ;;  %v9981_v32 = vld [vmem:[#allocation5 + $0x1568] ss:$16 sps:$4 sm:$0xff]  }
 0x2d1   :  { %5275 = vmatpush1.bf16.msra.mxu0 %v9894_v45  ;;  %5767 = vmatpush1.bf16.msra.mxu1 %v9897_v46  ;;  %v9986_v45 = vld [vmem:[#allocation5 + $0x1584] ss:$16 sps:$4 sm:$0xff]   ;;  %v9989_v46 = vld [vmem:[#allocation5 + $0x158c] ss:$16 sps:$4 sm:$0xff]  }
 0x2d2   :  { %5276 = vmatprep.subr.bf16.mxu0 %v9902_v47  ;;  %5768 = vmatprep.subr.bf16.mxu1 %v9905_v34  ;;  %v9984_v47 = vld [vmem:[#allocation5 + $0x1580] ss:$16 sps:$4 sm:$0xff]   ;;  %v9987_v34 = vld [vmem:[#allocation5 + $0x1588] ss:$16 sps:$4 sm:$0xff]  }
 0x2d5   :  { %5277 = vmatpush1.bf16.msra.mxu0 %v9900_v50  ;;  %5769 = vmatpush1.bf16.msra.mxu1 %v9903_v51  ;;  %v9995_v50 = vld [vmem:[#allocation5 + $0x15ac] ss:$16 sps:$4 sm:$0xff]   ;;  %v9990_v51 = vld [vmem:[#allocation5 + $0x15a0] ss:$16 sps:$4 sm:$0xff]  }
 0x2d6   :  { %5278 = vmatprep.subr.bf16.mxu0 %v9908_v53  ;;  %5770 = vmatprep.subr.bf16.mxu1 %v9911_v55  ;;  %v9993_v53 = vld [vmem:[#allocation5 + $0x15a8] ss:$16 sps:$4 sm:$0xff]   ;;  %v9998_v55 = vld [vmem:[#allocation5 + $0x15c4] ss:$16 sps:$4 sm:$0xff]  }
 0x2d9   :  { %5279 = vmatpush1.bf16.msra.mxu0 %v9906_v56  ;;  %5771 = vmatpush1.bf16.msra.mxu1 %v9909_v57  ;;  %v10001_v56 = vld [vmem:[#allocation5 + $0x15cc] ss:$16 sps:$4 sm:$0xff]   ;;  %v9996_v57 = vld [vmem:[#allocation5 + $0x15c0] ss:$16 sps:$4 sm:$0xff]  }
 0x2da   :  { %5289 = vmatprep.subr.bf16.mxu0 %v9914_v58  ;;  %5781 = vmatprep.subr.bf16.mxu1 %v9917_v59  ;;  %v9999_v58 = vld [vmem:[#allocation5 + $0x15c8] ss:$16 sps:$4 sm:$0xff]   ;;  %v10004_v59 = vld [vmem:[#allocation5 + $0x15e4] ss:$16 sps:$4 sm:$0xff]  }
 0x2dc   :  { %5281 = vmatmul.mubr.bf16.vlgmr.msra.gmra.mrb[0].mxu0 %v1011_v43  ;;  %5773 = vmatmul.mubr.bf16.vlgmr.msra.gmra.mrb[0].mxu1 %v1011_v43  ;;  %v10002_v43 = vld [vmem:[#allocation5 + $0x15e0] ss:$16 sps:$4 sm:$0xff]  }
 0x2dd   :  { %5290 = vmatpush1.bf16.msra.mxu0 %v9912_v60  ;;  %5782 = vmatpush1.bf16.msra.mxu1 %v9915_v61  ;;  %v10005_v60 = vld [vmem:[#allocation5 + $0x15e8] ss:$16 sps:$4 sm:$0xff]   ;;  %v10011_v61 = vld [vmem:[#allocation5 + $0x1604] ss:$16 sps:$4 sm:$0xff]  }
 0x2de   :  { %5291 = vmatprep.subr.bf16.mxu0 %v9920_v62  ;;  %5783 = vmatprep.subr.bf16.mxu1 %v9923_v63  ;;  %v10014_v62 = vld [vmem:[#allocation5 + $0x160c] ss:$16 sps:$4 sm:$0xff]   ;;  %v10802_v63 = vrot.slane %v10789_v33, %v10678_v49  ;;  %v10018_v49 = vld [vmem:[#allocation5 + $0x1628] ss:$16 sps:$4 sm:$0xff]   ;;  %v10023_v33 = vld [vmem:[#allocation5 + $0x1644] ss:$16 sps:$4 sm:$0xff]  }
 0x2df   :  { %5321 = vmatprep.mubr.bf16.mxu0 %v10796_v42  ;;  %5813 = vmatprep.mubr.bf16.mxu1 %v10796_v42 }
 0x2e1   :  { %5292 = vmatpush1.bf16.msra.mxu0 %v9918_v0  ;;  %5784 = vmatpush1.bf16.msra.mxu1 %v9921_v1  ;;  %v10009_v0 = vld [vmem:[#allocation5 + $0x1600] ss:$16 sps:$4 sm:$0xff]   ;;  %v10012_v1 = vld [vmem:[#allocation5 + $0x1608] ss:$16 sps:$4 sm:$0xff]  }
 0x2e2   :  { %5293 = vmatprep.subr.bf16.mxu0 %v9926_v54  ;;  %5785 = vmatprep.subr.bf16.mxu1 %v9929_v2  ;;  %v10017_v54 = vld [vmem:[#allocation5 + $0x1624] ss:$16 sps:$4 sm:$0xff]   ;;  %v10020_v2 = vld [vmem:[#allocation5 + $0x162c] ss:$16 sps:$4 sm:$0xff]  }
 0x2e5   :  { %5294 = vmatpush1.bf16.msra.mxu0 %v9924_v3  ;;  %5786 = vmatpush1.bf16.msra.mxu1 %v9927_v4  ;;  %v1014_v3 = vcombine.high %v10796_v42, %v10796_v42  ;;  %v10015_v4 = vld [vmem:[#allocation5 + $0x1620] ss:$16 sps:$4 sm:$0xff]   ;;  %v10029_v42 = vld [vmem:[#allocation5 + $0x1664] ss:$16 sps:$4 sm:$0xff]  }
 0x2e6   :  { %5295 = vmatprep.subr.bf16.mxu0 %v9932_v5  ;;  %5787 = vmatprep.subr.bf16.mxu1 %v9935_v6  ;;  %v10026_v5 = vld [vmem:[#allocation5 + $0x164c] ss:$16 sps:$4 sm:$0xff]   ;;  %v10021_v6 = vld [vmem:[#allocation5 + $0x1640] ss:$16 sps:$4 sm:$0xff]  }
 0x2e9   :  { %5296 = vmatpush1.bf16.msra.mxu0 %v9930_v7  ;;  %5788 = vmatpush1.bf16.msra.mxu1 %v9933_v8  ;;  %v10024_v7 = vld [vmem:[#allocation5 + $0x1648] ss:$16 sps:$4 sm:$0xff]   ;;  %v10032_v8 = vld [vmem:[#allocation5 + $0x166c] ss:$16 sps:$4 sm:$0xff]  }
 0x2ea   :  { %5297 = vmatprep.subr.bf16.mxu0 %v9938_v9  ;;  %5789 = vmatprep.subr.bf16.mxu1 %v9941_v10  ;;  %v10027_v9 = vld [vmem:[#allocation5 + $0x1660] ss:$16 sps:$4 sm:$0xff]   ;;  %v10030_v10 = vld [vmem:[#allocation5 + $0x1668] ss:$16 sps:$4 sm:$0xff]  }
 0x2ed   :  { %5298 = vmatpush1.bf16.msra.mxu0 %v9936_v11  ;;  %5790 = vmatpush1.bf16.msra.mxu1 %v9939_v12  ;;  %v10035_v11 = vld [vmem:[#allocation5 + $0x1684] ss:$16 sps:$4 sm:$0xff]   ;;  %v10038_v12 = vld [vmem:[#allocation5 + $0x168c] ss:$16 sps:$4 sm:$0xff]  }
 0x2ee   :  { %5299 = vmatprep.subr.bf16.mxu0 %v9944_v15  ;;  %5791 = vmatprep.subr.bf16.mxu1 %v9947_v16  ;;  %v10033_v15 = vld [vmem:[#allocation5 + $0x1680] ss:$16 sps:$4 sm:$0xff]   ;;  %v10036_v16 = vld [vmem:[#allocation5 + $0x1688] ss:$16 sps:$4 sm:$0xff]  }
 0x2f1   :  { %5300 = vmatpush1.bf16.msra.mxu0 %v9942_v17  ;;  %5792 = vmatpush1.bf16.msra.mxu1 %v9945_v18  ;;  %v10041_v17 = vld [vmem:[#allocation5 + $0x16a4] ss:$16 sps:$4 sm:$0xff]   ;;  %v10044_v18 = vld [vmem:[#allocation5 + $0x16ac] ss:$16 sps:$4 sm:$0xff]  }
 0x2f2   :  { %5301 = vmatprep.subr.bf16.mxu0 %v9950_v19  ;;  %5793 = vmatprep.subr.bf16.mxu1 %v9953_v20  ;;  %v10039_v19 = vld [vmem:[#allocation5 + $0x16a0] ss:$16 sps:$4 sm:$0xff]   ;;  %v10042_v20 = vld [vmem:[#allocation5 + $0x16a8] ss:$16 sps:$4 sm:$0xff]  }
 0x2f5   :  { %5302 = vmatpush1.bf16.msra.mxu0 %v9948_v21  ;;  %5794 = vmatpush1.bf16.msra.mxu1 %v9951_v22  ;;  %v10047_v21 = vld [vmem:[#allocation5 + $0x16c4] ss:$16 sps:$4 sm:$0xff]   ;;  %v10050_v22 = vld [vmem:[#allocation5 + $0x16cc] ss:$16 sps:$4 sm:$0xff]  }
 0x2f6   :  { %5303 = vmatprep.subr.bf16.mxu0 %v9956_v23  ;;  %5795 = vmatprep.subr.bf16.mxu1 %v9959_v26  ;;  %v10045_v23 = vld [vmem:[#allocation5 + $0x16c0] ss:$16 sps:$4 sm:$0xff]   ;;  %v10048_v26 = vld [vmem:[#allocation5 + $0x16c8] ss:$16 sps:$4 sm:$0xff]  }
 0x2f9   :  { %5304 = vmatpush1.bf16.msra.mxu0 %v9954_v27  ;;  %5796 = vmatpush1.bf16.msra.mxu1 %v9957_v13  ;;  %v10053_v27 = vld [vmem:[#allocation5 + $0x16e4] ss:$16 sps:$4 sm:$0xff]   ;;  %v10056_v13 = vld [vmem:[#allocation5 + $0x16ec] ss:$16 sps:$4 sm:$0xff]  }
 0x2fa   :  { %5305 = vmatprep.subr.bf16.mxu0 %v9962_v28  ;;  %5797 = vmatprep.subr.bf16.mxu1 %v9965_v29  ;;  %v10051_v28 = vld [vmem:[#allocation5 + $0x16e0] ss:$16 sps:$4 sm:$0xff]   ;;  %v10054_v29 = vld [vmem:[#allocation5 + $0x16e8] ss:$16 sps:$4 sm:$0xff]  }
 0x2fd   :  { %5306 = vmatpush1.bf16.msra.mxu0 %v9960_v30  ;;  %5798 = vmatpush1.bf16.msra.mxu1 %v9963_v14  ;;  %v10059_v30 = vld [vmem:[#allocation5 + $0x1704] ss:$16 sps:$4 sm:$0xff]   ;;  %v10062_v14 = vld [vmem:[#allocation5 + $0x170c] ss:$16 sps:$4 sm:$0xff]  }
 0x2fe   :  { %5307 = vmatprep.subr.bf16.mxu0 %v9968_v31  ;;  %5799 = vmatprep.subr.bf16.mxu1 %v9971_v24  ;;  %v10057_v31 = vld [vmem:[#allocation5 + $0x1700] ss:$16 sps:$4 sm:$0xff]   ;;  %v10060_v24 = vld [vmem:[#allocation5 + $0x1708] ss:$16 sps:$4 sm:$0xff]  }
 0x301   :  { %5308 = vmatpush1.bf16.msra.mxu0 %v9966_v25  ;;  %5800 = vmatpush1.bf16.msra.mxu1 %v9969_v35  ;;  %v10065_v25 = vld [vmem:[#allocation5 + $0x1724] ss:$16 sps:$4 sm:$0xff]   ;;  %v10068_v35 = vld [vmem:[#allocation5 + $0x172c] ss:$16 sps:$4 sm:$0xff]  }
 0x302   :  { %5309 = vmatprep.subr.bf16.mxu0 %v9974_v36  ;;  %5801 = vmatprep.subr.bf16.mxu1 %v9977_v37  ;;  %v10063_v36 = vld [vmem:[#allocation5 + $0x1720] ss:$16 sps:$4 sm:$0xff]   ;;  %v10066_v37 = vld [vmem:[#allocation5 + $0x1728] ss:$16 sps:$4 sm:$0xff]  }
 0x305   :  { %5310 = vmatpush1.bf16.msra.mxu0 %v9972_v38  ;;  %5802 = vmatpush1.bf16.msra.mxu1 %v9975_v39  ;;  %v10071_v38 = vld [vmem:[#allocation5 + $0x1744] ss:$16 sps:$4 sm:$0xff]   ;;  %v10074_v39 = vld [vmem:[#allocation5 + $0x174c] ss:$16 sps:$4 sm:$0xff]  }
 0x306   :  { %5311 = vmatprep.subr.bf16.mxu0 %v9980_v40  ;;  %5803 = vmatprep.subr.bf16.mxu1 %v9983_v41  ;;  %v10069_v40 = vld [vmem:[#allocation5 + $0x1740] ss:$16 sps:$4 sm:$0xff]   ;;  %v10072_v41 = vld [vmem:[#allocation5 + $0x1748] ss:$16 sps:$4 sm:$0xff]  }
 0x309   :  { %5312 = vmatpush1.bf16.msra.mxu0 %v9978_v44  ;;  %5804 = vmatpush1.bf16.msra.mxu1 %v9981_v32  ;;  %v10077_v44 = vld [vmem:[#allocation5 + $0x1764] ss:$16 sps:$4 sm:$0xff]   ;;  %v10080_v32 = vld [vmem:[#allocation5 + $0x176c] ss:$16 sps:$4 sm:$0xff]  }
 0x30a   :  { %5313 = vmatprep.subr.bf16.mxu0 %v9986_v45  ;;  %5805 = vmatprep.subr.bf16.mxu1 %v9989_v46  ;;  %v10075_v45 = vld [vmem:[#allocation5 + $0x1760] ss:$16 sps:$4 sm:$0xff]   ;;  %v10078_v46 = vld [vmem:[#allocation5 + $0x1768] ss:$16 sps:$4 sm:$0xff]  }
 0x30d   :  { %5314 = vmatpush1.bf16.msra.mxu0 %v9984_v47  ;;  %5806 = vmatpush1.bf16.msra.mxu1 %v9987_v34  ;;  %v10083_v47 = vld [vmem:[#allocation5 + $0x1784] ss:$16 sps:$4 sm:$0xff]   ;;  %v10086_v34 = vld [vmem:[#allocation5 + $0x178c] ss:$16 sps:$4 sm:$0xff]  }
 0x30e   :  { %5315 = vmatprep.subr.bf16.mxu0 %v9992_v48  ;;  %5807 = vmatprep.subr.bf16.mxu1 %v9995_v50  ;;  %v10081_v48 = vld [vmem:[#allocation5 + $0x1780] ss:$16 sps:$4 sm:$0xff]   ;;  %v10084_v50 = vld [vmem:[#allocation5 + $0x1788] ss:$16 sps:$4 sm:$0xff]  }
 0x311   :  { %5316 = vmatpush1.bf16.msra.mxu0 %v9990_v51  ;;  %5808 = vmatpush1.bf16.msra.mxu1 %v9993_v53  ;;  %v10089_v51 = vld [vmem:[#allocation5 + $0x17a4] ss:$16 sps:$4 sm:$0xff]   ;;  %v10092_v53 = vld [vmem:[#allocation5 + $0x17ac] ss:$16 sps:$4 sm:$0xff]  }
 0x312   :  { %5317 = vmatprep.subr.bf16.mxu0 %v9998_v55  ;;  %5809 = vmatprep.subr.bf16.mxu1 %v10001_v56  ;;  %v10087_v55 = vld [vmem:[#allocation5 + $0x17a0] ss:$16 sps:$4 sm:$0xff]   ;;  %v10090_v56 = vld [vmem:[#allocation5 + $0x17a8] ss:$16 sps:$4 sm:$0xff]  }
 0x315   :  { %5318 = vmatpush1.bf16.msra.mxu0 %v9996_v57  ;;  %5810 = vmatpush1.bf16.msra.mxu1 %v9999_v58  ;;  %v10095_v57 = vld [vmem:[#allocation5 + $0x17c4] ss:$16 sps:$4 sm:$0xff]   ;;  %v10098_v58 = vld [vmem:[#allocation5 + $0x17cc] ss:$16 sps:$4 sm:$0xff]  }
 0x316   :  { %5319 = vmatprep.subr.bf16.mxu0 %v10004_v59  ;;  %5811 = vmatprep.subr.bf16.mxu1 %v10007_v52  ;;  %v10093_v59 = vld [vmem:[#allocation5 + $0x17c0] ss:$16 sps:$4 sm:$0xff]   ;;  %v10096_v52 = vld [vmem:[#allocation5 + $0x17c8] ss:$16 sps:$4 sm:$0xff]  }
 0x319   :  { %5320 = vmatpush1.bf16.msra.mxu0 %v10002_v43  ;;  %5812 = vmatpush1.bf16.msra.mxu1 %v10005_v60  ;;  %v10101_v43 = vld [vmem:[#allocation5 + $0x17e4] ss:$16 sps:$4 sm:$0xff]   ;;  %v10104_v60 = vld [vmem:[#allocation5 + $0x17ec] ss:$16 sps:$4 sm:$0xff]  }
 0x31a   :  { %5330 = vmatprep.subr.bf16.mxu0 %v10011_v61  ;;  %5822 = vmatprep.subr.bf16.mxu1 %v10014_v62  ;;  %v10099_v61 = vld [vmem:[#allocation5 + $0x17e0] ss:$16 sps:$4 sm:$0xff]   ;;  %v10102_v62 = vld [vmem:[#allocation5 + $0x17e8] ss:$16 sps:$4 sm:$0xff]  }
 0x31c   :  { %5322 = vmatmul.mubr.bf16.vlgmr.msra.gmra.mrb[0].mxu0 %v10802_v63  ;;  %5814 = vmatmul.mubr.bf16.vlgmr.msra.gmra.mrb[0].mxu1 %v10802_v63 }
 0x31d   :  { %5331 = vmatpush1.bf16.msra.mxu0 %v10009_v0  ;;  %5823 = vmatpush1.bf16.msra.mxu1 %v10012_v1  ;;  %v10107_v0 = vld [vmem:[#allocation2 + $0x4] ss:$16 sps:$4 sm:$0xff]   ;;  %v10127_v1 = vld [vmem:[#allocation2 + $0xc] ss:$16 sps:$4 sm:$0xff]  }
 0x31e   :  { %5332 = vmatprep.subr.bf16.mxu0 %v10017_v54  ;;  %5824 = vmatprep.subr.bf16.mxu1 %v10020_v2  ;;  %v1012_v54 = vcombine.high %v10802_v63, %v10802_v63  ;;  %v10105_v2 = vld [vmem:[#allocation2] ss:$16 sps:$4 sm:$0xff]   ;;  %v10133_v63 = vld [vmem:[#allocation2 + $0x4c] ss:$16 sps:$4 sm:$0xff]  }
 0x31f   :  { %5362 = vmatprep.mubr.bf16.mxu0 %v1014_v3  ;;  %5854 = vmatprep.mubr.bf16.mxu1 %v1014_v3  ;;  %v10110_v3 = vld [vmem:[#allocation2 + $0x24] ss:$16 sps:$4 sm:$0xff]  }
 0x321   :  { %5333 = vmatpush1.bf16.msra.mxu0 %v10015_v4  ;;  %5825 = vmatpush1.bf16.msra.mxu1 %v10018_v49  ;;  %v10125_v4 = vld [vmem:[#allocation2 + $0x8] ss:$16 sps:$4 sm:$0xff]   ;;  %v10130_v49 = vld [vmem:[#allocation2 + $0x2c] ss:$16 sps:$4 sm:$0xff]  }
 0x322   :  { %5334 = vmatprep.subr.bf16.mxu0 %v10023_v33  ;;  %5826 = vmatprep.subr.bf16.mxu1 %v10026_v5  ;;  %v10108_v33 = vld [vmem:[#allocation2 + $0x20] ss:$16 sps:$4 sm:$0xff]   ;;  %v10553_v5 = vmov 0  }
 0x325   :  { %5335 = vmatpush1.bf16.msra.mxu0 %v10021_v6  ;;  %5827 = vmatpush1.bf16.msra.mxu1 %v10024_v7  ;;  %v10113_v6 = vld [vmem:[#allocation2 + $0x44] ss:$16 sps:$4 sm:$0xff]   ;;  %v10128_v7 = vld [vmem:[#allocation2 + $0x28] ss:$16 sps:$4 sm:$0xff]  }
 0x326   :  { %5336 = vmatprep.subr.bf16.mxu0 %v10029_v42  ;;  %5828 = vmatprep.subr.bf16.mxu1 %v10032_v8  ;;  %v10111_v42 = vld [vmem:[#allocation2 + $0x40] ss:$16 sps:$4 sm:$0xff]   ;;  %v10116_v8 = vld [vmem:[#allocation2 + $0x64] ss:$16 sps:$4 sm:$0xff]  }
 0x329   :  { %5337 = vmatpush1.bf16.msra.mxu0 %v10027_v9  ;;  %5829 = vmatpush1.bf16.msra.mxu1 %v10030_v10  ;;  %v10131_v9 = vld [vmem:[#allocation2 + $0x48] ss:$16 sps:$4 sm:$0xff]   ;;  %v10136_v10 = vld [vmem:[#allocation2 + $0x6c] ss:$16 sps:$4 sm:$0xff]  }
 0x32a   :  { %5338 = vmatprep.subr.bf16.mxu0 %v10035_v11  ;;  %5830 = vmatprep.subr.bf16.mxu1 %v10038_v12  ;;  %v10114_v11 = vld [vmem:[#allocation2 + $0x60] ss:$16 sps:$4 sm:$0xff]   ;;  %v10119_v12 = vld [vmem:[#allocation2 + $0x84] ss:$16 sps:$4 sm:$0xff]  }
 0x32d   :  { %5339 = vmatpush1.bf16.msra.mxu0 %v10033_v15  ;;  %5831 = vmatpush1.bf16.msra.mxu1 %v10036_v16  ;;  %v10134_v15 = vld [vmem:[#allocation2 + $0x68] ss:$16 sps:$4 sm:$0xff]   ;;  %v10139_v16 = vld [vmem:[#allocation2 + $0x8c] ss:$16 sps:$4 sm:$0xff]  }
 0x32e   :  { %5340 = vmatprep.subr.bf16.mxu0 %v10041_v17  ;;  %5832 = vmatprep.subr.bf16.mxu1 %v10044_v18  ;;  %v10117_v17 = vld [vmem:[#allocation2 + $0x80] ss:$16 sps:$4 sm:$0xff]   ;;  %v10122_v18 = vld [vmem:[#allocation2 + $0xa4] ss:$16 sps:$4 sm:$0xff]  }
 0x331   :  { %5341 = vmatpush1.bf16.msra.mxu0 %v10039_v19  ;;  %5833 = vmatpush1.bf16.msra.mxu1 %v10042_v20  ;;  %v10137_v19 = vld [vmem:[#allocation2 + $0x88] ss:$16 sps:$4 sm:$0xff]   ;;  %v5888_v20 = vld [vmem:[#allocation2 + $0xc0] sm:$0x33] }
 0x332   :  { %5342 = vmatprep.subr.bf16.mxu0 %v10047_v21  ;;  %5834 = vmatprep.subr.bf16.mxu1 %v10050_v22  ;;  %v10142_v21 = vld [vmem:[#allocation2 + $0xac] ss:$16 sps:$4 sm:$0xff]  }
 0x333   :  { %v5889_v22 = vld [vmem:[#allocation2 + $0xc8] sm:$0x33] }
 0x335   :  { %5343 = vmatpush1.bf16.msra.mxu0 %v10045_v23  ;;  %5835 = vmatpush1.bf16.msra.mxu1 %v10048_v26  ;;  %v10120_v23 = vld [vmem:[#allocation2 + $0xa0] ss:$16 sps:$4 sm:$0xff]   ;;  %v8554_v26 = vcombine.high %v5888_v20, %v5888_v20 }
 0x336   :  { %5344 = vmatprep.subr.bf16.mxu0 %v10053_v27  ;;  %5836 = vmatprep.subr.bf16.mxu1 %v10056_v13  ;;  %v8553_v27 = vcombine.low %v5888_v20, %v5888_v20  ;;  %v10140_v13 = vld [vmem:[#allocation2 + $0xa8] ss:$16 sps:$4 sm:$0xff]   ;;  %v10225_v20 = vld [vmem:[#allocation7 + $0x1a4] ss:$16 sps:$4 sm:$0xff]  }
 0x339   :  { %5345 = vmatpush1.bf16.msra.mxu0 %v10051_v28  ;;  %5837 = vmatpush1.bf16.msra.mxu1 %v10054_v29  ;;  %v8556_v28 = vcombine.high %v5889_v22, %v5889_v22  ;;  %v8555_v29 = vcombine.low %v5889_v22, %v5889_v22  ;;  %v10223_v22 = vld [vmem:[#allocation7 + $0x1a0] ss:$16 sps:$4 sm:$0xff]  }
 0x33a   :  { %5346 = vmatprep.subr.bf16.mxu0 %v10059_v30  ;;  %5838 = vmatprep.subr.bf16.mxu1 %v10062_v14  ;;  %v6026_v30 = vsel %vm6024_vm0, %v8553_v27, 0  ;;  %v10147_v14 = vld [vmem:[#allocation7 + $0x4] ss:$16 sps:$4 sm:$0xff]   ;;  %v10234_v27 = vld [vmem:[#allocation7 + $0x1cc] ss:$16 sps:$4 sm:$0xff]  }
 0x33d   :  { %5347 = vmatpush1.bf16.msra.mxu0 %v10057_v31  ;;  %5839 = vmatpush1.bf16.msra.mxu1 %v10060_v24  ;;  %v6032_v31 = vsel %vm6024_vm0, %v8555_v29, 0  ;;  %v10150_v24 = vld [vmem:[#allocation7 + $0xc] ss:$16 sps:$4 sm:$0xff]   ;;  %v10237_v29 = vld [vmem:[#allocation7 + $0x1e4] ss:$16 sps:$4 sm:$0xff]  }
 0x33e   :  { %5348 = vmatprep.subr.bf16.mxu0 %v10065_v25  ;;  %5840 = vmatprep.subr.bf16.mxu1 %v10068_v35  ;;  %v5863_v25 = vld [vmem:[%s10846_s1] sm:$0x1]  ;;  %s10554_s1 = smov [#allocation11]  }
 0x33f   :  { %v10145_v35 = vld [vmem:[#allocation7] ss:$16 sps:$4 sm:$0xff]   ;;  %s7750_s24 = sshll.u32 %s10554_s1, 4  ;;  %s7751_s24 = int_to_ptr.vmem [resolvable:$true] %s7750_s24 }
 0x340   :  { %s10513_s3 = scalar_lea.vmem %s7751_s24, 32  ;;  %p10518_p13 = scmp.lt.s32.totalorder %s7751_s24, %s7751_s24 }
 0x341   :  { %5349 = vmatpush1.bf16.msra.mxu0 %v10063_v36  ;;  %5841 = vmatpush1.bf16.msra.mxu1 %v10066_v37  ;;  %v10148_v36 = vld [vmem:[#allocation7 + $0x8] ss:$16 sps:$4 sm:$0xff]   ;;  %v10153_v37 = vld [vmem:[#allocation7 + $0x24] ss:$16 sps:$4 sm:$0xff]   ;;  %p10514_p12 = scmp.ne.s32.totalorder %s7751_s24, %s10513_s3  ;;  %p10519_p0 = scmp.lt.s32.totalorder %s10513_s3, %s10513_s3 }
 0x342   :  { %5350 = vmatprep.subr.bf16.mxu0 %v10071_v38  ;;  %5842 = vmatprep.subr.bf16.mxu1 %v10074_v39  ;;  %v10156_v38 = vld [vmem:[#allocation7 + $0x2c] ss:$16 sps:$4 sm:$0xff]   ;;  %v10151_v39 = vld [vmem:[#allocation7 + $0x20] ss:$16 sps:$4 sm:$0xff]  }
 0x343   :  { %p10520_p1 = por %p10519_p0, %p10518_p13 }
 0x345   :  { %5351 = vmatpush1.bf16.msra.mxu0 %v10069_v40  ;;  %5843 = vmatpush1.bf16.msra.mxu1 %v10072_v41  ;;  %v10154_v40 = vld [vmem:[#allocation7 + $0x28] ss:$16 sps:$4 sm:$0xff]   ;;  %v10159_v41 = vld [vmem:[#allocation7 + $0x44] ss:$16 sps:$4 sm:$0xff]   ;;  %p10521_p2 = pnand %p10520_p1, %p10514_p12 }
 0x346   :  { %5352 = vmatprep.subr.bf16.mxu0 %v10077_v44  ;;  %5844 = vmatprep.subr.bf16.mxu1 %v10080_v32  ;;  %v10162_v44 = vld [vmem:[#allocation7 + $0x4c] ss:$16 sps:$4 sm:$0xff]   ;;  %v10157_v32 = vld [vmem:[#allocation7 + $0x40] ss:$16 sps:$4 sm:$0xff]  }
 0x349   :  { %5353 = vmatpush1.bf16.msra.mxu0 %v10075_v45  ;;  %5845 = vmatpush1.bf16.msra.mxu1 %v10078_v46  ;;  %v10160_v45 = vld [vmem:[#allocation7 + $0x48] ss:$16 sps:$4 sm:$0xff]   ;;  %v10165_v46 = vld [vmem:[#allocation7 + $0x64] ss:$16 sps:$4 sm:$0xff]  }
 0x34a   :  { %5354 = vmatprep.subr.bf16.mxu0 %v10083_v47  ;;  %5846 = vmatprep.subr.bf16.mxu1 %v10086_v34  ;;  %v10168_v47 = vld [vmem:[#allocation7 + $0x6c] ss:$16 sps:$4 sm:$0xff]   ;;  %v10163_v34 = vld [vmem:[#allocation7 + $0x60] ss:$16 sps:$4 sm:$0xff]  }
 0x34d   :  { %5355 = vmatpush1.bf16.msra.mxu0 %v10081_v48  ;;  %5847 = vmatpush1.bf16.msra.mxu1 %v10084_v50  ;;  %v10166_v48 = vld [vmem:[#allocation7 + $0x68] ss:$16 sps:$4 sm:$0xff]   ;;  %v10171_v50 = vld [vmem:[#allocation7 + $0x84] ss:$16 sps:$4 sm:$0xff]  }
 0x34e   :  { %5356 = vmatprep.subr.bf16.mxu0 %v10089_v51  ;;  %5848 = vmatprep.subr.bf16.mxu1 %v10092_v53  ;;  %v10174_v51 = vld [vmem:[#allocation7 + $0x8c] ss:$16 sps:$4 sm:$0xff]   ;;  %v10169_v53 = vld [vmem:[#allocation7 + $0x80] ss:$16 sps:$4 sm:$0xff]  }
 0x351   :  { %5357 = vmatpush1.bf16.msra.mxu0 %v10087_v55  ;;  %5849 = vmatpush1.bf16.msra.mxu1 %v10090_v56  ;;  %v10172_v55 = vld [vmem:[#allocation7 + $0x88] ss:$16 sps:$4 sm:$0xff]   ;;  %v10177_v56 = vld [vmem:[#allocation7 + $0xa4] ss:$16 sps:$4 sm:$0xff]  }
 0x352   :  { %5358 = vmatprep.subr.bf16.mxu0 %v10095_v57  ;;  %5850 = vmatprep.subr.bf16.mxu1 %v10098_v58  ;;  %v10180_v57 = vld [vmem:[#allocation7 + $0xac] ss:$16 sps:$4 sm:$0xff]   ;;  %v10175_v58 = vld [vmem:[#allocation7 + $0xa0] ss:$16 sps:$4 sm:$0xff]  }
 0x355   :  { %5359 = vmatpush1.bf16.msra.mxu0 %v10093_v59  ;;  %5851 = vmatpush1.bf16.msra.mxu1 %v10096_v52  ;;  %v10178_v59 = vld [vmem:[#allocation7 + $0xa8] ss:$16 sps:$4 sm:$0xff]   ;;  %v10183_v52 = vld [vmem:[#allocation7 + $0xc4] ss:$16 sps:$4 sm:$0xff]  }
 0x356   :  { %5360 = vmatprep.subr.bf16.mxu0 %v10101_v43  ;;  %5852 = vmatprep.subr.bf16.mxu1 %v10104_v60  ;;  %v10186_v43 = vld [vmem:[#allocation7 + $0xcc] ss:$16 sps:$4 sm:$0xff]   ;;  %v10181_v60 = vld [vmem:[#allocation7 + $0xc0] ss:$16 sps:$4 sm:$0xff]  }
 0x359   :  { %5361 = vmatpush1.bf16.msra.mxu0 %v10099_v61  ;;  %5853 = vmatpush1.bf16.msra.mxu1 %v10102_v62  ;;  %v10184_v61 = vld [vmem:[#allocation7 + $0xc8] ss:$16 sps:$4 sm:$0xff]   ;;  %v10189_v62 = vld [vmem:[#allocation7 + $0xe4] ss:$16 sps:$4 sm:$0xff]  }
 0x35a   :  { %6037 = vmatprep.subr.bf16.mxu0 %v10107_v0  ;;  %6078 = vmatprep.subr.bf16.mxu1 %v10127_v1  ;;  %v10192_v0 = vld [vmem:[#allocation7 + $0xec] ss:$16 sps:$4 sm:$0xff]   ;;  %v10187_v1 = vld [vmem:[#allocation7 + $0xe0] ss:$16 sps:$4 sm:$0xff]  }
 0x35c   :  { %5363 = vmatmul.mubr.bf16.vlgmr.msra.gmra.mrb[0].mxu0 %v1012_v54  ;;  %5855 = vmatmul.mubr.bf16.vlgmr.msra.gmra.mrb[0].mxu1 %v1012_v54  ;;  %v10190_v54 = vld [vmem:[#allocation7 + $0xe8] ss:$16 sps:$4 sm:$0xff]  }
 0x35d   :  { %6038 = vmatpush1.bf16.msra.mxu0 %v10105_v2  ;;  %6069 = vmatprep.mubr.bf16.mxu0 %v10553_v5  ;;  %v10195_v2 = vld [vmem:[#allocation7 + $0x104] ss:$16 sps:$4 sm:$0xff]  }
 0x35e   :  { %6039 = vmatprep.subr.bf16.mxu0 %v10110_v3  ;;  %6079 = vmatpush1.bf16.msra.mxu1 %v10125_v4  ;;  %v10198_v3 = vld [vmem:[#allocation7 + $0x10c] ss:$16 sps:$4 sm:$0xff]   ;;  %v10193_v4 = vld [vmem:[#allocation7 + $0x100] ss:$16 sps:$4 sm:$0xff]  }
 0x35f   :  { %6080 = vmatprep.subr.bf16.mxu1 %v10130_v49  ;;  %6110 = vmatprep.mubr.bf16.mxu1 %v10553_v5  ;;  %v10196_v49 = vld [vmem:[#allocation7 + $0x108] ss:$16 sps:$4 sm:$0xff]   ;;  %v10204_v5 = vld [vmem:[#allocation7 + $0x12c] ss:$16 sps:$4 sm:$0xff]  }
 0x361   :  { %6040 = vmatpush1.bf16.msra.mxu0 %v10108_v33  ;;  %v10201_v33 = vld [vmem:[#allocation7 + $0x124] ss:$16 sps:$4 sm:$0xff]  }
 0x362   :  { %6041 = vmatprep.subr.bf16.mxu0 %v10113_v6  ;;  %6081 = vmatpush1.bf16.msra.mxu1 %v10128_v7  ;;  %v10199_v6 = vld [vmem:[#allocation7 + $0x120] ss:$16 sps:$4 sm:$0xff]   ;;  %v10202_v7 = vld [vmem:[#allocation7 + $0x128] ss:$16 sps:$4 sm:$0xff]  }
 0x363   :  { %6082 = vmatprep.subr.bf16.mxu1 %v10133_v63  ;;  %v10207_v63 = vld [vmem:[#allocation7 + $0x144] ss:$16 sps:$4 sm:$0xff]  }
 0x365   :  { %6042 = vmatpush1.bf16.msra.mxu0 %v10111_v42  ;;  %v10210_v42 = vld [vmem:[#allocation7 + $0x14c] ss:$16 sps:$4 sm:$0xff]  }
 0x366   :  { %6043 = vmatprep.subr.bf16.mxu0 %v10116_v8  ;;  %6083 = vmatpush1.bf16.msra.mxu1 %v10131_v9  ;;  %v10205_v8 = vld [vmem:[#allocation7 + $0x140] ss:$16 sps:$4 sm:$0xff]   ;;  %v10208_v9 = vld [vmem:[#allocation7 + $0x148] ss:$16 sps:$4 sm:$0xff]  }
 0x367   :  { %6084 = vmatprep.subr.bf16.mxu1 %v10136_v10  ;;  %v10213_v10 = vld [vmem:[#allocation7 + $0x164] ss:$16 sps:$4 sm:$0xff]  }
 0x369   :  { %6044 = vmatpush1.bf16.msra.mxu0 %v10114_v11  ;;  %v10216_v11 = vld [vmem:[#allocation7 + $0x16c] ss:$16 sps:$4 sm:$0xff]  }
 0x36a   :  { %6045 = vmatprep.subr.bf16.mxu0 %v10119_v12  ;;  %6085 = vmatpush1.bf16.msra.mxu1 %v10134_v15  ;;  %v10211_v12 = vld [vmem:[#allocation7 + $0x160] ss:$16 sps:$4 sm:$0xff]   ;;  %v10214_v15 = vld [vmem:[#allocation7 + $0x168] ss:$16 sps:$4 sm:$0xff]  }
 0x36b   :  { %6086 = vmatprep.subr.bf16.mxu1 %v10139_v16  ;;  %v10219_v16 = vld [vmem:[#allocation7 + $0x184] ss:$16 sps:$4 sm:$0xff]  }
 0x36d   :  { %6046 = vmatpush1.bf16.msra.mxu0 %v10117_v17  ;;  %v10222_v17 = vld [vmem:[#allocation7 + $0x18c] ss:$16 sps:$4 sm:$0xff]  }
 0x36e   :  { %6047 = vmatprep.subr.bf16.mxu0 %v10122_v18  ;;  %6087 = vmatpush1.bf16.msra.mxu1 %v10137_v19  ;;  %v10217_v18 = vld [vmem:[#allocation7 + $0x180] ss:$16 sps:$4 sm:$0xff]   ;;  %v10220_v19 = vld [vmem:[#allocation7 + $0x188] ss:$16 sps:$4 sm:$0xff]  }
 0x36f   :  { %6088 = vmatprep.subr.bf16.mxu1 %v10142_v21  ;;  %v10228_v21 = vld [vmem:[#allocation7 + $0x1ac] ss:$16 sps:$4 sm:$0xff]  }
 0x371   :  { %6048 = vmatpush1.bf16.msra.mxu0 %v10120_v23  ;;  %v10226_v23 = vld [vmem:[#allocation7 + $0x1a8] ss:$16 sps:$4 sm:$0xff]  }
 0x372   :  { %8557 = vmatprep.subr.msk.bf16.mxu0 %vm6024_vm0, %v8554_v26  ;;  %6089 = vmatpush1.bf16.msra.mxu1 %v10140_v13  ;;  %v10231_v26 = vld [vmem:[#allocation7 + $0x1c4] ss:$16 sps:$4 sm:$0xff]   ;;  %v10229_v13 = vld [vmem:[#allocation7 + $0x1c0] ss:$16 sps:$4 sm:$0xff]  }
 0x373   :  { %8559 = vmatprep.subr.msk.bf16.mxu1 %vm6024_vm0, %v8556_v28  ;;  %v10232_v28 = vld [vmem:[#allocation7 + $0x1c8] ss:$16 sps:$4 sm:$0xff]  }
 0x375   :  { %6050 = vmatpush1.bf16.msra.mxu0 %v6026_v30  ;;  %v10240_v30 = vld [vmem:[#allocation7 + $0x1ec] ss:$16 sps:$4 sm:$0xff]  }
 0x376   :  { %6091 = vmatpush1.bf16.msra.mxu1 %v6032_v31  ;;  %6891 = vmatprep.subr.bf16.mxu0 %v10147_v14  ;;  %v10235_v14 = vld [vmem:[#allocation7 + $0x1e0] ss:$16 sps:$4 sm:$0xff]   ;;  %v10238_v31 = vld [vmem:[#allocation7 + $0x1e8] ss:$16 sps:$4 sm:$0xff]  }
 0x377   :  { %6973 = vmatprep.subr.bf16.mxu1 %v10150_v24  ;;  %v10243_v24 = vld [vmem:[#allocation7 + $0x204] ss:$16 sps:$4 sm:$0xff]  }
 0x378   :  { %8558 = vmatmul.mubr.msk.bf16.vlgmr.msra.gmra.mrb[4].mxu0 %vm6020_vm1, %v5863_v25 }
 0x379   :  { %8560 = vmatmul.mubr.msk.bf16.vlgmr.msra.gmra.mrb[4].mxu1 %vm6020_vm1, %v5863_v25  ;;  %6892 = vmatpush1.bf16.msra.mxu0 %v10145_v35  ;;  %v10246_v25 = vld [vmem:[#allocation7 + $0x20c] ss:$16 sps:$4 sm:$0xff]  }
 0x37a   :  { %6974 = vmatpush1.bf16.msra.mxu1 %v10148_v36  ;;  %6893 = vmatprep.subr.bf16.mxu0 %v10153_v37 }
 0x37b   :  { %6975 = vmatprep.subr.bf16.mxu1 %v10156_v38 }
 0x37d   :  { %6894 = vmatpush1.bf16.msra.mxu0 %v10151_v39 }
 0x37e   :  { %6976 = vmatpush1.bf16.msra.mxu1 %v10154_v40  ;;  %6895 = vmatprep.subr.bf16.mxu0 %v10159_v41 }
 0x37f   :  { %6977 = vmatprep.subr.bf16.mxu1 %v10162_v44 }
 0x381   :  { %6896 = vmatpush1.bf16.msra.mxu0 %v10157_v32 }
 0x382   :  { %6978 = vmatpush1.bf16.msra.mxu1 %v10160_v45  ;;  %6897 = vmatprep.subr.bf16.mxu0 %v10165_v46 }
 0x383   :  { %6979 = vmatprep.subr.bf16.mxu1 %v10168_v47 }
 0x385   :  { %6898 = vmatpush1.bf16.msra.mxu0 %v10163_v34 }
 0x386   :  { %6980 = vmatpush1.bf16.msra.mxu1 %v10166_v48  ;;  %6899 = vmatprep.subr.bf16.mxu0 %v10171_v50  ;;  %v10241_v48 = vld [vmem:[#allocation7 + $0x200] ss:$16 sps:$4 sm:$0xff]   ;;  %v10244_v50 = vld [vmem:[#allocation7 + $0x208] ss:$16 sps:$4 sm:$0xff]  }
 0x387   :  { %6981 = vmatprep.subr.bf16.mxu1 %v10174_v51 }
 0x389   :  { %6900 = vmatpush1.bf16.msra.mxu0 %v10169_v53 }
 0x38a   :  { %6982 = vmatpush1.bf16.msra.mxu1 %v10172_v55  ;;  %6901 = vmatprep.subr.bf16.mxu0 %v10177_v56  ;;  %v10249_v56 = vld [vmem:[#allocation7 + $0x224] ss:$16 sps:$4 sm:$0xff]  }
 0x38b   :  { %6983 = vmatprep.subr.bf16.mxu1 %v10180_v57  ;;  %v10252_v57 = vld [vmem:[#allocation7 + $0x22c] ss:$16 sps:$4 sm:$0xff]  }
 0x38d   :  { %6902 = vmatpush1.bf16.msra.mxu0 %v10175_v58 }
 0x38e   :  { %6984 = vmatpush1.bf16.msra.mxu1 %v10178_v59  ;;  %6903 = vmatprep.subr.bf16.mxu0 %v10183_v52 }
 0x38f   :  { %6985 = vmatprep.subr.bf16.mxu1 %v10186_v43  ;;  %v10247_v43 = vld [vmem:[#allocation7 + $0x220] ss:$16 sps:$4 sm:$0xff]  }
 0x391   :  { %6904 = vmatpush1.bf16.msra.mxu0 %v10181_v60  ;;  %v10250_v60 = vld [vmem:[#allocation7 + $0x228] ss:$16 sps:$4 sm:$0xff]  }
 0x392   :  { %6986 = vmatpush1.bf16.msra.mxu1 %v10184_v61  ;;  %6905 = vmatprep.subr.bf16.mxu0 %v10189_v62  ;;  %v10255_v61 = vld [vmem:[#allocation7 + $0x244] ss:$16 sps:$4 sm:$0xff]   ;;  %v10258_v62 = vld [vmem:[#allocation7 + $0x24c] ss:$16 sps:$4 sm:$0xff]  }
 0x393   :  { %6987 = vmatprep.subr.bf16.mxu1 %v10192_v0  ;;  %v10253_v0 = vld [vmem:[#allocation7 + $0x240] ss:$16 sps:$4 sm:$0xff]  }
 0x395   :  { %6906 = vmatpush1.bf16.msra.mxu0 %v10187_v1  ;;  %v10256_v1 = vld [vmem:[#allocation7 + $0x248] ss:$16 sps:$4 sm:$0xff]  }
 0x396   :  { %6988 = vmatpush1.bf16.msra.mxu1 %v10190_v54  ;;  %6907 = vmatprep.subr.bf16.mxu0 %v10195_v2  ;;  %v10261_v54 = vld [vmem:[#allocation7 + $0x264] ss:$16 sps:$4 sm:$0xff]   ;;  %v10264_v2 = vld [vmem:[#allocation7 + $0x26c] ss:$16 sps:$4 sm:$0xff]  }
 0x397   :  { %6989 = vmatprep.subr.bf16.mxu1 %v10198_v3  ;;  %v10259_v3 = vld [vmem:[#allocation7 + $0x260] ss:$16 sps:$4 sm:$0xff]  }
 0x399   :  { %6908 = vmatpush1.bf16.msra.mxu0 %v10193_v4  ;;  %v10262_v4 = vld [vmem:[#allocation7 + $0x268] ss:$16 sps:$4 sm:$0xff]  }
 0x39a   :  { %6990 = vmatpush1.bf16.msra.mxu1 %v10196_v49  ;;  %6909 = vmatprep.subr.bf16.mxu0 %v10201_v33  ;;  %v10267_v49 = vld [vmem:[#allocation7 + $0x284] ss:$16 sps:$4 sm:$0xff]   ;;  %v10270_v33 = vld [vmem:[#allocation7 + $0x28c] ss:$16 sps:$4 sm:$0xff]  }
 0x39b   :  { %6991 = vmatprep.subr.bf16.mxu1 %v10204_v5  ;;  %v10265_v5 = vld [vmem:[#allocation7 + $0x280] ss:$16 sps:$4 sm:$0xff]  }
 0x39d   :  { %6910 = vmatpush1.bf16.msra.mxu0 %v10199_v6  ;;  %v10268_v6 = vld [vmem:[#allocation7 + $0x288] ss:$16 sps:$4 sm:$0xff]  }
 0x39e   :  { %6992 = vmatpush1.bf16.msra.mxu1 %v10202_v7  ;;  %6911 = vmatprep.subr.bf16.mxu0 %v10207_v63  ;;  %v10273_v7 = vld [vmem:[#allocation7 + $0x2a4] ss:$16 sps:$4 sm:$0xff]   ;;  %v10276_v63 = vld [vmem:[#allocation7 + $0x2ac] ss:$16 sps:$4 sm:$0xff]  }
 0x39f   :  { %6993 = vmatprep.subr.bf16.mxu1 %v10210_v42  ;;  %v10271_v42 = vld [vmem:[#allocation7 + $0x2a0] ss:$16 sps:$4 sm:$0xff]  }
 0x3a1   :  { %6912 = vmatpush1.bf16.msra.mxu0 %v10205_v8  ;;  %v10274_v8 = vld [vmem:[#allocation7 + $0x2a8] ss:$16 sps:$4 sm:$0xff]  }
 0x3a2   :  { %6994 = vmatpush1.bf16.msra.mxu1 %v10208_v9  ;;  %6913 = vmatprep.subr.bf16.mxu0 %v10213_v10  ;;  %v10279_v9 = vld [vmem:[#allocation7 + $0x2c4] ss:$16 sps:$4 sm:$0xff]   ;;  %v10282_v10 = vld [vmem:[#allocation7 + $0x2cc] ss:$16 sps:$4 sm:$0xff]  }
 0x3a3   :  { %6995 = vmatprep.subr.bf16.mxu1 %v10216_v11  ;;  %v10277_v11 = vld [vmem:[#allocation7 + $0x2c0] ss:$16 sps:$4 sm:$0xff]  }
 0x3a5   :  { %6914 = vmatpush1.bf16.msra.mxu0 %v10211_v12  ;;  %v10280_v12 = vld [vmem:[#allocation7 + $0x2c8] ss:$16 sps:$4 sm:$0xff]  }
 0x3a6   :  { %6996 = vmatpush1.bf16.msra.mxu1 %v10214_v15  ;;  %6915 = vmatprep.subr.bf16.mxu0 %v10219_v16  ;;  %v10285_v15 = vld [vmem:[#allocation7 + $0x2e4] ss:$16 sps:$4 sm:$0xff]   ;;  %v10288_v16 = vld [vmem:[#allocation7 + $0x2ec] ss:$16 sps:$4 sm:$0xff]  }
 0x3a7   :  { %6997 = vmatprep.subr.bf16.mxu1 %v10222_v17  ;;  %v10283_v17 = vld [vmem:[#allocation7 + $0x2e0] ss:$16 sps:$4 sm:$0xff]  }
 0x3a9   :  { %6916 = vmatpush1.bf16.msra.mxu0 %v10217_v18  ;;  %v10286_v18 = vld [vmem:[#allocation7 + $0x2e8] ss:$16 sps:$4 sm:$0xff]  }
 0x3aa   :  { %6998 = vmatpush1.bf16.msra.mxu1 %v10220_v19  ;;  %6917 = vmatprep.subr.bf16.mxu0 %v10225_v20  ;;  %v10291_v19 = vld [vmem:[#allocation7 + $0x304] ss:$16 sps:$4 sm:$0xff]   ;;  %v10294_v20 = vld [vmem:[#allocation7 + $0x30c] ss:$16 sps:$4 sm:$0xff]  }
 0x3ab   :  { %6999 = vmatprep.subr.bf16.mxu1 %v10228_v21  ;;  %v10289_v21 = vld [vmem:[#allocation7 + $0x300] ss:$16 sps:$4 sm:$0xff]  }
 0x3ad   :  { %6918 = vmatpush1.bf16.msra.mxu0 %v10223_v22  ;;  %v10292_v22 = vld [vmem:[#allocation7 + $0x308] ss:$16 sps:$4 sm:$0xff]  }
 0x3ae   :  { %7000 = vmatpush1.bf16.msra.mxu1 %v10226_v23  ;;  %6919 = vmatprep.subr.bf16.mxu0 %v10231_v26  ;;  %v10297_v23 = vld [vmem:[#allocation7 + $0x324] ss:$16 sps:$4 sm:$0xff]   ;;  %v10300_v26 = vld [vmem:[#allocation7 + $0x32c] ss:$16 sps:$4 sm:$0xff]  }
 0x3af   :  { %7001 = vmatprep.subr.bf16.mxu1 %v10234_v27  ;;  %v10295_v27 = vld [vmem:[#allocation7 + $0x320] ss:$16 sps:$4 sm:$0xff]  }
 0x3b1   :  { %6920 = vmatpush1.bf16.msra.mxu0 %v10229_v13  ;;  %v10298_v13 = vld [vmem:[#allocation7 + $0x328] ss:$16 sps:$4 sm:$0xff]  }
 0x3b2   :  { %7002 = vmatpush1.bf16.msra.mxu1 %v10232_v28  ;;  %6921 = vmatprep.subr.bf16.mxu0 %v10237_v29  ;;  %v10303_v28 = vld [vmem:[#allocation7 + $0x344] ss:$16 sps:$4 sm:$0xff]   ;;  %v10306_v29 = vld [vmem:[#allocation7 + $0x34c] ss:$16 sps:$4 sm:$0xff]  }
 0x3b3   :  { %7003 = vmatprep.subr.bf16.mxu1 %v10240_v30  ;;  %v10301_v30 = vld [vmem:[#allocation7 + $0x340] ss:$16 sps:$4 sm:$0xff]  }
 0x3b5   :  { %6922 = vmatpush1.bf16.msra.mxu0 %v10235_v14  ;;  %v10304_v14 = vld [vmem:[#allocation7 + $0x348] ss:$16 sps:$4 sm:$0xff]  }
 0x3b6   :  { %7004 = vmatpush1.bf16.msra.mxu1 %v10238_v31  ;;  %6932 = vmatprep.subr.bf16.mxu0 %v10243_v24  ;;  %v10309_v31 = vld [vmem:[#allocation7 + $0x364] ss:$16 sps:$4 sm:$0xff]   ;;  %v10312_v24 = vld [vmem:[#allocation7 + $0x36c] ss:$16 sps:$4 sm:$0xff]  }
 0x3b7   :  { %7014 = vmatprep.subr.bf16.mxu1 %v10246_v25  ;;  %v10307_v25 = vld [vmem:[#allocation7 + $0x360] ss:$16 sps:$4 sm:$0xff]  }
 0x42f   :  { %v10813_v35 = vpop.f32.mrb[0].mxu0  ;;  %v10815_v36 = vpop.f32.mrb[0].mxu1 }
 0x430   :  { %v10817_v37 = vpop.f32.mrb[1].mxu0  ;;  %v10819_v38 = vpop.f32.mrb[1].mxu1 }
 0x431   :  { %v5368_v39 = vpop.f32.mrb[2].mxu0  ;;  %v5860_v40 = vpop.f32.mrb[2].mxu1 }
 0x432   :  { %v5369_v41 = vpop.f32.mrb[3].mxu0  ;;  %v5861_v44 = vpop.f32.mrb[3].mxu1  ;;  %v10310_v39 = vld [vmem:[#allocation7 + $0x368] ss:$16 sps:$4 sm:$0xff]   ;;  %v10315_v40 = vld [vmem:[#allocation7 + $0x384] ss:$16 sps:$4 sm:$0xff]  }
 0x433   :  { %v10318_v41 = vld [vmem:[#allocation7 + $0x38c] ss:$16 sps:$4 sm:$0xff]   ;;  %v10313_v44 = vld [vmem:[#allocation7 + $0x380] ss:$16 sps:$4 sm:$0xff]  }
 0x44b   :  { %v6071_v32 = vpop.f32.mrb[4].mxu0 }
 0x44c   :  { %v6073_v45 = vpop.f32.mrb[5].mxu0  ;;  %v10821_v46 = vpop.f32.mrb[4].mxu1  ;;  %v6119_v53 = vpack.c.bf16 %v6071_v32, %v6071_v32  ;;  %v10316_v32 = vld [vmem:[#allocation7 + $0x388] ss:$16 sps:$4 sm:$0xff]  }
 0x44d   :  { %v6120_v47 = vpack.c.bf16 %v6073_v45, %v6073_v45  ;;  %v6075_v34 = vpop.f32.mrb[6].mxu0  ;;  %v6114_v51 = vpop.f32.mrb[5].mxu1  ;;  %v10321_v45 = vld [vmem:[#allocation7 + $0x3a4] ss:$16 sps:$4 sm:$0xff]  }
 0x44e   :  { %v6076_v55 = vpop.f32.mrb[7].mxu0  ;;  %v6116_v58 = vpop.f32.mrb[6].mxu1  ;;  %v6122_v59 = vpack.c.bf16 %v6114_v51, %v6114_v51  ;;  %v10319_v34 = vld [vmem:[#allocation7 + $0x3a0] ss:$16 sps:$4 sm:$0xff]   ;;  %v10330_v51 = vld [vmem:[#allocation7 + $0x3cc] ss:$16 sps:$4 sm:$0xff]  }
 0x44f   :  { %6923 = vmatprep.mubr.bf16.mxu0 %v6120_v47  ;;  %7005 = vmatprep.mubr.bf16.mxu1 %v6120_v47  ;;  %v6117_v52 = vpop.f32.mrb[7].mxu1  ;;  %v10324_v47 = vld [vmem:[#allocation7 + $0x3ac] ss:$16 sps:$4 sm:$0xff]   ;;  %v10328_v55 = vld [vmem:[#allocation7 + $0x3c8] ss:$16 sps:$4 sm:$0xff]  }
 0x450   :  { %6924 = vmatmul.mubr.bf16.vlgmr.msra.gmra.mrb[8].mxu0 %v6119_v53  ;;  %7006 = vmatmul.mubr.bf16.vlgmr.msra.gmra.mrb[8].mxu1 %v6119_v53  ;;  %v10325_v53 = vld [vmem:[#allocation7 + $0x3c0] ss:$16 sps:$4 sm:$0xff]  }
 0x451   :  { %6933 = vmatpush1.bf16.msra.mxu0 %v10241_v48  ;;  %7015 = vmatpush1.bf16.msra.mxu1 %v10244_v50  ;;  %v10322_v48 = vld [vmem:[#allocation7 + $0x3a8] ss:$16 sps:$4 sm:$0xff]   ;;  %v10327_v50 = vld [vmem:[#allocation7 + $0x3c4] ss:$16 sps:$4 sm:$0xff]   ;;  %v10331_v58 = vld [vmem:[#allocation7 + $0x3e0] ss:$16 sps:$4 sm:$0xff]  }
 0x452   :  { %6934 = vmatprep.subr.bf16.mxu0 %v10249_v56  ;;  %7016 = vmatprep.subr.bf16.mxu1 %v10252_v57  ;;  %v10333_v56 = vld [vmem:[#allocation7 + $0x3e4] ss:$16 sps:$4 sm:$0xff]   ;;  %v10336_v57 = vld [vmem:[#allocation7 + $0x3ec] ss:$16 sps:$4 sm:$0xff]  }
 0x453   :  { %6964 = vmatprep.mubr.bf16.mxu0 %v6122_v59  ;;  %7046 = vmatprep.mubr.bf16.mxu1 %v6122_v59  ;;  %v10334_v59 = vld [vmem:[#allocation7 + $0x3e8] ss:$16 sps:$4 sm:$0xff]   ;;  %v10337_v52 = vld [vmem:[#allocation8 + $0x140] sm:$0xff]  }
 0x455   :  { %6935 = vmatpush1.bf16.msra.mxu0 %v10247_v43  ;;  %7017 = vmatpush1.bf16.msra.mxu1 %v10250_v60  ;;  %v10338_v43 = vld [vmem:[#allocation8 + $0x1c0] sm:$0xff]  }
 0x456   :  { %6936 = vmatprep.subr.bf16.mxu0 %v10255_v61  ;;  %7018 = vmatprep.subr.bf16.mxu1 %v10258_v62  ;;  %v10339_v60 = vld [vmem:[#allocation8 + $0x100] sm:$0xff]   ;;  %v6121_v62 = vpack.c.bf16 %v10821_v46, %v10821_v46  ;;  %v10349_v46 = vld [vmem:[#allocation8 + $0x158] sm:$0xff]  }
 0x457   :  { %v10340_v61 = vld [vmem:[#allocation8 + $0x180] sm:$0xff]  }
 0x459   :  { %6937 = vmatpush1.bf16.msra.mxu0 %v10253_v0  ;;  %7019 = vmatpush1.bf16.msra.mxu1 %v10256_v1  ;;  %v10341_v0 = vld [vmem:[#allocation8 + $0x148] sm:$0xff]  }
 0x45a   :  { %6938 = vmatprep.subr.bf16.mxu0 %v10261_v54  ;;  %7020 = vmatprep.subr.bf16.mxu1 %v10264_v2  ;;  %v10342_v1 = vld [vmem:[#allocation8 + $0x1c8] sm:$0xff]  }
 0x45b   :  { %v10343_v54 = vld [vmem:[#allocation8 + $0x108] sm:$0xff]  }
 0x45c   :  { %v10344_v2 = vld [vmem:[#allocation8 + $0x188] sm:$0xff]  }
 0x45d   :  { %6939 = vmatpush1.bf16.msra.mxu0 %v10259_v3  ;;  %7021 = vmatpush1.bf16.msra.mxu1 %v10262_v4  ;;  %v10345_v3 = vld [vmem:[#allocation8 + $0x150] sm:$0xff]  }
 0x45e   :  { %6940 = vmatprep.subr.bf16.mxu0 %v10267_v49  ;;  %7022 = vmatprep.subr.bf16.mxu1 %v10270_v33  ;;  %v10346_v4 = vld [vmem:[#allocation8 + $0x1d0] sm:$0xff]  }
 0x45f   :  { %v10347_v49 = vld [vmem:[#allocation8 + $0x110] sm:$0xff]  }
 0x460   :  { %v10348_v33 = vld [vmem:[#allocation8 + $0x190] sm:$0xff]  }
 0x461   :  { %6941 = vmatpush1.bf16.msra.mxu0 %v10265_v5  ;;  %7023 = vmatpush1.bf16.msra.mxu1 %v10268_v6  ;;  %v10350_v5 = vld [vmem:[#allocation8 + $0x1d8] sm:$0xff]  }
 0x462   :  { %6942 = vmatprep.subr.bf16.mxu0 %v10273_v7  ;;  %7024 = vmatprep.subr.bf16.mxu1 %v10276_v63  ;;  %v10351_v6 = vld [vmem:[#allocation8 + $0x118] sm:$0xff]   ;;  %v10353_v63 = vld [vmem:[#allocation8 + $0x160] sm:$0xff]  }
 0x463   :  { %v10352_v7 = vld [vmem:[#allocation8 + $0x198] sm:$0xff]  }
 0x465   :  { %6943 = vmatpush1.bf16.msra.mxu0 %v10271_v42  ;;  %7025 = vmatpush1.bf16.msra.mxu1 %v10274_v8  ;;  %v10354_v42 = vld [vmem:[#allocation8 + $0x1e0] sm:$0xff]  }
 0x466   :  { %6944 = vmatprep.subr.bf16.mxu0 %v10279_v9  ;;  %7026 = vmatprep.subr.bf16.mxu1 %v10282_v10  ;;  %v10355_v8 = vld [vmem:[#allocation8 + $0x120] sm:$0xff]   ;;  %v10357_v10 = vld [vmem:[#allocation8 + $0x168] sm:$0xff]  }
 0x467   :  { %v10356_v9 = vld [vmem:[#allocation8 + $0x1a0] sm:$0xff]  }
 0x469   :  { %6945 = vmatpush1.bf16.msra.mxu0 %v10277_v11  ;;  %7027 = vmatpush1.bf16.msra.mxu1 %v10280_v12  ;;  %v10358_v11 = vld [vmem:[#allocation8 + $0x1e8] sm:$0xff]  }
 0x46a   :  { %6946 = vmatprep.subr.bf16.mxu0 %v10285_v15  ;;  %7028 = vmatprep.subr.bf16.mxu1 %v10288_v16  ;;  %v10359_v12 = vld [vmem:[#allocation8 + $0x128] sm:$0xff]   ;;  %v10361_v16 = vld [vmem:[#allocation8 + $0x170] sm:$0xff]  }
 0x46b   :  { %v10360_v15 = vld [vmem:[#allocation8 + $0x1a8] sm:$0xff]  }
 0x46d   :  { %6947 = vmatpush1.bf16.msra.mxu0 %v10283_v17  ;;  %7029 = vmatpush1.bf16.msra.mxu1 %v10286_v18  ;;  %v10362_v17 = vld [vmem:[#allocation8 + $0x1f0] sm:$0xff]  }
 0x46e   :  { %6948 = vmatprep.subr.bf16.mxu0 %v10291_v19  ;;  %7030 = vmatprep.subr.bf16.mxu1 %v10294_v20  ;;  %v10363_v18 = vld [vmem:[#allocation8 + $0x130] sm:$0xff]   ;;  %v10365_v20 = vld [vmem:[#allocation8 + $0x178] sm:$0xff]  }
 0x46f   :  { %v10364_v19 = vld [vmem:[#allocation8 + $0x1b0] sm:$0xff]  }
 0x471   :  { %6949 = vmatpush1.bf16.msra.mxu0 %v10289_v21  ;;  %7031 = vmatpush1.bf16.msra.mxu1 %v10292_v22  ;;  %v10366_v21 = vld [vmem:[#allocation8 + $0x1f8] sm:$0xff]  }
 0x472   :  { %6950 = vmatprep.subr.bf16.mxu0 %v10297_v23  ;;  %7032 = vmatprep.subr.bf16.mxu1 %v10300_v26  ;;  %v10367_v22 = vld [vmem:[#allocation8 + $0x138] sm:$0xff]   ;;  %v10369_v26 = vld [vmem:[#allocation8 + $0x40] sm:$0xff]  }
 0x473   :  { %v10368_v23 = vld [vmem:[#allocation8 + $0x1b8] sm:$0xff]  }
 0x475   :  { %6951 = vmatpush1.bf16.msra.mxu0 %v10295_v27  ;;  %7033 = vmatpush1.bf16.msra.mxu1 %v10298_v13  ;;  %v10370_v27 = vld [vmem:[#allocation8 + $0xc0] sm:$0xff]  }
 0x476   :  { %6952 = vmatprep.subr.bf16.mxu0 %v10303_v28  ;;  %7034 = vmatprep.subr.bf16.mxu1 %v10306_v29 }
 0x479   :  { %6953 = vmatpush1.bf16.msra.mxu0 %v10301_v30  ;;  %7035 = vmatpush1.bf16.msra.mxu1 %v10304_v14 }
 0x47a   :  { %6954 = vmatprep.subr.bf16.mxu0 %v10309_v31  ;;  %7036 = vmatprep.subr.bf16.mxu1 %v10312_v24 }
 0x47d   :  { %6955 = vmatpush1.bf16.msra.mxu0 %v10307_v25  ;;  %7037 = vmatpush1.bf16.msra.mxu1 %v10310_v39  ;;  %v10371_v39 = vld [vmem:[#allocation8] sm:$0xff]  }
 0x47e   :  { %6956 = vmatprep.subr.bf16.mxu0 %v10315_v40  ;;  %7038 = vmatprep.subr.bf16.mxu1 %v10318_v41  ;;  %v10372_v40 = vld [vmem:[#allocation8 + $0x80] sm:$0xff]  }
 0x481   :  { %6957 = vmatpush1.bf16.msra.mxu0 %v10313_v44  ;;  %7039 = vmatpush1.bf16.msra.mxu1 %v10316_v32 }
 0x482   :  { %6958 = vmatprep.subr.bf16.mxu0 %v10321_v45  ;;  %7040 = vmatprep.subr.bf16.mxu1 %v10324_v47  ;;  %v10373_v47 = vld [vmem:[#allocation8 + $0x48] sm:$0xff]  }
 0x485   :  { %6959 = vmatpush1.bf16.msra.mxu0 %v10319_v34  ;;  %7041 = vmatpush1.bf16.msra.mxu1 %v10322_v48  ;;  %v10374_v34 = vld [vmem:[#allocation8 + $0xc8] sm:$0xff]   ;;  %v7056_v48 = vpack.c.bf16 %v10817_v37, %v10817_v37  ;;  %v10381_v37 = vld [vmem:[#allocation8 + $0x58] sm:$0xff]  }
 0x486   :  { %6960 = vmatprep.subr.bf16.mxu0 %v10327_v50  ;;  %7042 = vmatprep.subr.bf16.mxu1 %v10330_v51  ;;  %v7058_v50 = vpack.c.bf16 %v10819_v38, %v10819_v38  ;;  %v10375_v51 = vld [vmem:[#allocation8 + $0x8] sm:$0xff]   ;;  %v10382_v38 = vld [vmem:[#allocation8 + $0xd8] sm:$0xff]  }
 0x489   :  { %6961 = vmatpush1.bf16.msra.mxu0 %v10325_v53  ;;  %7043 = vmatpush1.bf16.msra.mxu1 %v10328_v55  ;;  %v10376_v53 = vld [vmem:[#allocation8 + $0x88] sm:$0xff]   ;;  %v10377_v55 = vld [vmem:[#allocation8 + $0x50] sm:$0xff]  }
 0x48a   :  { %6962 = vmatprep.subr.bf16.mxu0 %v10333_v56  ;;  %7044 = vmatprep.subr.bf16.mxu1 %v10336_v57  ;;  %v10378_v56 = vld [vmem:[#allocation8 + $0xd0] sm:$0xff]  }
 0x48b   :  { %v10379_v57 = vld [vmem:[#allocation8 + $0x10] sm:$0xff]  }
 0x48d   :  { %6963 = vmatpush1.bf16.msra.mxu0 %v10331_v58  ;;  %7045 = vmatpush1.bf16.msra.mxu1 %v10334_v59  ;;  %v10380_v58 = vld [vmem:[#allocation8 + $0x90] sm:$0xff]   ;;  %v10383_v59 = vld [vmem:[#allocation8 + $0x18] sm:$0xff]  }
 0x48e   :  { %8754 = vmatprep.subr.bf16.mxu0 %v10337_v52  ;;  %8776 = vmatprep.subr.bf16.mxu1 %v10338_v43  ;;  %v10384_v52 = vld [vmem:[#allocation8 + $0x98] sm:$0xff]   ;;  %v10385_v43 = vld [vmem:[#allocation8 + $0x60] sm:$0xff]  }
 0x490   :  { %6965 = vmatmul.mubr.bf16.vlgmr.msra.gmra.mrb[8].mxu0 %v6121_v62  ;;  %7047 = vmatmul.mubr.bf16.vlgmr.msra.gmra.mrb[8].mxu1 %v6121_v62  ;;  %v10388_v62 = vld [vmem:[#allocation8 + $0xa0] sm:$0xff]  }
 0x491   :  { %8755 = vmatpush3.bf16.msra.mxu0 %v10339_v60  ;;  %8777 = vmatpush3.bf16.msra.mxu1 %v10340_v61  ;;  %v10386_v60 = vld [vmem:[#allocation8 + $0xe0] sm:$0xff]  }
 0x492   :  { %8756 = vmatprep.subr.bf16.mxu0 %v10341_v0  ;;  %8778 = vmatprep.subr.bf16.mxu1 %v10342_v1  ;;  %v10387_v61 = vld [vmem:[#allocation8 + $0x20] sm:$0xff]   ;;  %v10389_v0 = vld [vmem:[#allocation8 + $0x68] sm:$0xff]  }
 0x493   :  { %v10390_v1 = vld [vmem:[#allocation8 + $0xe8] sm:$0xff]  }
 0x495   :  { %8757 = vmatpush3.bf16.msra.mxu0 %v10343_v54  ;;  %8779 = vmatpush3.bf16.msra.mxu1 %v10344_v2  ;;  %v10391_v54 = vld [vmem:[#allocation8 + $0x28] sm:$0xff]  }
 0x496   :  { %8758 = vmatprep.subr.bf16.mxu0 %v10345_v3  ;;  %8780 = vmatprep.subr.bf16.mxu1 %v10346_v4  ;;  %v10392_v2 = vld [vmem:[#allocation8 + $0xa8] sm:$0xff]   ;;  %v10393_v3 = vld [vmem:[#allocation8 + $0x70] sm:$0xff]  }
 0x497   :  { %v10394_v4 = vld [vmem:[#allocation8 + $0xf0] sm:$0xff]  }
 0x499   :  { %8759 = vmatpush3.bf16.msra.mxu0 %v10347_v49  ;;  %8781 = vmatpush3.bf16.msra.mxu1 %v10348_v33  ;;  %v10395_v49 = vld [vmem:[#allocation8 + $0x30] sm:$0xff]  }
 0x49a   :  { %8760 = vmatprep.subr.bf16.mxu0 %v10349_v46  ;;  %8782 = vmatprep.subr.bf16.mxu1 %v10350_v5  ;;  %v10396_v33 = vld [vmem:[#allocation8 + $0xb0] sm:$0xff]   ;;  %v10397_v46 = vld [vmem:[#allocation8 + $0x78] sm:$0xff]  }
 0x49b   :  { %v10398_v5 = vld [vmem:[#allocation8 + $0xf8] sm:$0xff]  }
 0x49d   :  { %8761 = vmatpush3.bf16.msra.mxu0 %v10351_v6  ;;  %8783 = vmatpush3.bf16.msra.mxu1 %v10352_v7  ;;  %v10399_v6 = vld [vmem:[#allocation8 + $0x38] sm:$0xff]  }
 0x49e   :  { %8762 = vmatprep.subr.bf16.mxu0 %v10353_v63  ;;  %8784 = vmatprep.subr.bf16.mxu1 %v10354_v42  ;;  %v10400_v7 = vld [vmem:[#allocation8 + $0xb8] sm:$0xff]   ;;  %v7055_v63 = vpack.c.bf16 %v10813_v35, %v10813_v35  ;;  %v7057_v42 = vpack.c.bf16 %v10815_v36, %v10815_v36 }
 0x4a1   :  { %8763 = vmatpush3.bf16.msra.mxu0 %v10355_v8  ;;  %8785 = vmatpush3.bf16.msra.mxu1 %v10356_v9 }
 0x4a2   :  { %8764 = vmatprep.subr.bf16.mxu0 %v10357_v10  ;;  %8786 = vmatprep.subr.bf16.mxu1 %v10358_v11 }
 0x4a5   :  { %8765 = vmatpush3.bf16.msra.mxu0 %v10359_v12  ;;  %8787 = vmatpush3.bf16.msra.mxu1 %v10360_v15 }
 0x4a6   :  { %8766 = vmatprep.subr.bf16.mxu0 %v10361_v16  ;;  %8788 = vmatprep.subr.bf16.mxu1 %v10362_v17 }
 0x4a9   :  { %8767 = vmatpush3.bf16.msra.mxu0 %v10363_v18  ;;  %8789 = vmatpush3.bf16.msra.mxu1 %v10364_v19 }
 0x4aa   :  { %8768 = vmatprep.subr.bf16.mxu0 %v10365_v20  ;;  %8790 = vmatprep.subr.bf16.mxu1 %v10366_v21 }
 0x4ad   :  { %8769 = vmatpush3.bf16.msra.mxu0 %v10367_v22  ;;  %8791 = vmatpush3.bf16.msra.mxu1 %v10368_v23 }
 0x4ae   :  { %8798 = vmatprep.subr.bf16.mxu0 %v10369_v26  ;;  %8820 = vmatprep.subr.bf16.mxu1 %v10370_v27 }
 0x563   :  { %v6966_v13 = vpop.f32.mrb[8].mxu0  ;;  %v7048_v28 = vpop.f32.mrb[8].mxu1 }
 0x564   :  { %v6968_v29 = vpop.f32.mrb[9].mxu0  ;;  %v7050_v30 = vpop.f32.mrb[9].mxu1  ;;  %v7123_v41 = vpack.c.bf16 %v6966_v13, %v6966_v13  ;;  %v7125_v44 = vpack.c.bf16 %v7048_v28, %v7048_v28 }
 0x565   :  { %v7124_v14 = vpack.c.bf16 %v6968_v29, %v6968_v29  ;;  %v7126_v31 = vpack.c.bf16 %v7050_v30, %v7050_v30  ;;  %v6970_v24 = vpop.f32.mrb[10].mxu0  ;;  %v7052_v25 = vpop.f32.mrb[10].mxu1 }
 0x566   :  { %v6971_v32 = vpop.f32.mrb[11].mxu0  ;;  %v7053_v45 = vpop.f32.mrb[11].mxu1 }
 0x567   :  { %7415 = vmatprep.mubr.bf16.mxu0 %v7124_v14  ;;  %7455 = vmatprep.mubr.bf16.mxu1 %v7126_v31  ;;  %v8753_v14 = vld [vmem:[#allocation10] ss:$0 sm:$0xff] }
 0x568   :  { %7416 = vmatmul.mubr.bf16.vlgmr.msra.gmra.mrb[12].mxu0 %v7123_v41  ;;  %7456 = vmatmul.mubr.bf16.vlgmr.msra.gmra.mrb[12].mxu1 %v7125_v44 }
 0x569   :  { %8799 = vmatpush3.bf16.msra.mxu0 %v10371_v39  ;;  %8821 = vmatpush3.bf16.msra.mxu1 %v10372_v40 }
 0x56a   :  { %7687 = vmatprep.mubr.bf16.mxu0 %v7056_v48  ;;  %7727 = vmatprep.mubr.bf16.mxu1 %v7058_v50 }
 0x56b   :  { %8800 = vmatprep.subr.bf16.mxu0 %v10373_v47  ;;  %8822 = vmatprep.subr.bf16.mxu1 %v10374_v34 }
 0x56d   :  { %8801 = vmatpush3.bf16.msra.mxu0 %v10375_v51  ;;  %8823 = vmatpush3.bf16.msra.mxu1 %v10376_v53 }
 0x56e   :  { %8802 = vmatprep.subr.bf16.mxu0 %v10377_v55  ;;  %8824 = vmatprep.subr.bf16.mxu1 %v10378_v56 }
 0x571   :  { %8803 = vmatpush3.bf16.msra.mxu0 %v10379_v57  ;;  %8825 = vmatpush3.bf16.msra.mxu1 %v10380_v58 }
 0x572   :  { %8804 = vmatprep.subr.bf16.mxu0 %v10381_v37  ;;  %8826 = vmatprep.subr.bf16.mxu1 %v10382_v38 }
 0x575   :  { %8805 = vmatpush3.bf16.msra.mxu0 %v10383_v59  ;;  %8827 = vmatpush3.bf16.msra.mxu1 %v10384_v52 }
 0x576   :  { %8806 = vmatprep.subr.bf16.mxu0 %v10385_v43  ;;  %8828 = vmatprep.subr.bf16.mxu1 %v10386_v60 }
 0x579   :  { %8807 = vmatpush3.bf16.msra.mxu0 %v10387_v61  ;;  %8829 = vmatpush3.bf16.msra.mxu1 %v10388_v62 }
 0x57a   :  { %8808 = vmatprep.subr.bf16.mxu0 %v10389_v0  ;;  %8830 = vmatprep.subr.bf16.mxu1 %v10390_v1 }
 0x57d   :  { %8809 = vmatpush3.bf16.msra.mxu0 %v10391_v54  ;;  %8831 = vmatpush3.bf16.msra.mxu1 %v10392_v2 }
 0x57e   :  { %8810 = vmatprep.subr.bf16.mxu0 %v10393_v3  ;;  %8832 = vmatprep.subr.bf16.mxu1 %v10394_v4 }
 0x581   :  { %8811 = vmatpush3.bf16.msra.mxu0 %v10395_v49  ;;  %8833 = vmatpush3.bf16.msra.mxu1 %v10396_v33 }
 0x582   :  { %8812 = vmatprep.subr.bf16.mxu0 %v10397_v46  ;;  %8834 = vmatprep.subr.bf16.mxu1 %v10398_v5 }
 0x585   :  { %8813 = vmatpush3.bf16.msra.mxu0 %v10399_v6  ;;  %8835 = vmatpush3.bf16.msra.mxu1 %v10400_v7 }
 0x588   :  { %7688 = vmatmul.mubr.bf16.vlgmr.msra.gmra.mrb[16].mxu0 %v7055_v63  ;;  %7728 = vmatmul.mubr.bf16.vlgmr.msra.gmra.mrb[16].mxu1 %v7057_v42 }
 0x63b   :  { %v8770_v8 = vpop.f32.mrb[12].mxu0  ;;  %v8792_v9 = vpop.f32.mrb[12].mxu1 }
 0x63c   :  { %v8771_v10 = vpop.f32.mrb[13].mxu0  ;;  %v8793_v11 = vpop.f32.mrb[13].mxu1 }
 0x63d   :  { %v8772_v12 = vadd.f32 %v8771_v10, %v8770_v8  ;;  %v8794_v15 = vadd.f32 %v8793_v11, %v8792_v9  ;;  %v8773_v16 = vpop.f32.mrb[14].mxu0  ;;  %v8795_v17 = vpop.f32.mrb[14].mxu1 }
 0x63e   :  { %v8774_v18 = vpop.f32.mrb[15].mxu0  ;;  %v8796_v19 = vpop.f32.mrb[15].mxu1 }
 0x63f   :  { %v7458_v20 = vadd.f32 %v8794_v15, %v8772_v12 }
 0x65b   :  { %v8814_v21 = vpop.f32.mrb[16].mxu0  ;;  %v8836_v22 = vpop.f32.mrb[16].mxu1 }
 0x65c   :  { %v8815_v23 = vpop.f32.mrb[17].mxu0  ;;  %v8837_v35 = vpop.f32.mrb[17].mxu1 }
 0x65d   :  { %v8816_v26 = vadd.f32 %v8815_v23, %v8814_v21  ;;  %v8838_v27 = vadd.f32 %v8837_v35, %v8836_v22  ;;  %v8817_v36 = vpop.f32.mrb[18].mxu0  ;;  %v8839_v13 = vpop.f32.mrb[18].mxu1 }
 0x65e   :  { %v8818_v28 = vpop.f32.mrb[19].mxu0  ;;  %v8840_v29 = vpop.f32.mrb[19].mxu1 }
 0x65f   :  { %v7690_v30 = vadd.f32 %v8816_v26, %v7458_v20 }
 0x661   :  { %v7730_v31 = vadd.f32 %v8838_v27, %v7690_v30 }
 0x663   :  { %v7742_v24 = vadd.f32 %v8753_v14, %v7730_v31 }
 0x665   :  { %7743 = vst [vmem:[#allocation11] sm:$0x3] %v7742_v24 }
 0x666   :  { %10524 = shalt.err (!%p10521_p2)
}
 0x667   :  { %s10525_s2 = scalar_lea.hbm %s10852_s7, 32 }
 0x668   :  { %p10526_p3 = scmp.ne.s32.totalorder %s10852_s7, %s10525_s2  ;;  %p10529_p4 = scmp.lt.u32.totalorder %s10525_s2, %s10852_s7 }
 0x66a   :  { %p10531_p5 = pnand %p10529_p4, %p10526_p3 }
 0x66c   :  { %10534 = shalt.err (!%p10531_p5)
}
 0x66d   :  { %7753 = dma.vmem_to_hbm [thread:$0]  %s7751_s24, 32, %s10852_s7, [#allocation4]  }
 0x66e   :  { %10541 = dma.done.wait [#allocation4], 32  }
 0x66f   :  { %10542 = vsyncadd [#allocation4], 4294967264 }
 0x670   :  { %7757 = vsyncpa [#allocation3], 1 }
 0x671   :  { %7758 = vsyncpa [#allocation6], 1 }
 0x672   :  { %7759 = vsyncpa [#allocation9], 1 }
 0x673   :  { %7760 = vsyncpa [#allocation4], 1 }

</bundles_post_ra>
